<compile_context>
chip_gen: v7x
topology: tpu7x:2x2x1
jax: 0.10.0
libtpu: 0.0.40
codegen_flags: <defaults>
</compile_context>

<pallas_src>
import functools

import jax
import jax.numpy as jnp
from jax.experimental import pallas as pl
from jax.experimental.pallas import tpu as pltpu


def _mlp_kernel(x_ref, wp_ref, bp_ref, w1_ref, b1_ref, o_ref, xb_ref):
    j = pl.program_id(1)

    @pl.when(j == 0)
    def _():
        x = x_ref[...]                                  # (tm, D_pad) f32 row tile
        xb_ref[...] = x.astype(jnp.bfloat16)            # hoisted cast: once per row tile
        o_ref[...] = x + b1_ref[...]                    # init output with residual + b1

    # matmul 1, N-block j: h_j = relu(x @ Wp[:, j*th:(j+1)*th] + bp_j)   (f32 MXU accum)
    h = jnp.dot(xb_ref[...], wp_ref[...], preferred_element_type=jnp.float32)
    h = jnp.maximum(h + bp_ref[...], 0.0)
    # matmul 2, K-block j: out += h_j @ W1[j*th:(j+1)*th, :]   (accumulate into f32 out)
    o_ref[...] += jnp.dot(h.astype(jnp.bfloat16), w1_ref[...],
                          preferred_element_type=jnp.float32)


def _round_up(n, m):
    return (n + m - 1) // m * m


def _vmem_capacity_bytes():
    try:
        return int(pltpu.get_tpu_info().vmem_capacity_bytes)
    except Exception:
        return 64 * 1024 * 1024  # conservative fallback (v7x per-TensorCore VMEM)


def _pick_tiles(B, D, vmem_capacity, max_th):
    """Choose (tm, th, D_pad) from shape + the device VMEM budget."""
    D_pad0 = _round_up(D, 128)
    budget = int(vmem_capacity * 0.70)  # leave headroom for compiler/internal scratch

    def need(tm, th, d_pad):
        x_o = 2 * (tm * d_pad * 4) * 2          # x and out f32 blocks, double-buffered
        xb = tm * d_pad * 2                     # bf16 x scratch, single buffer
        w = 2 * (d_pad * th * 2) * 2            # Wp + W1 bf16 blocks, double-buffered
        bias = 2 * (8 * d_pad * 4) * 2          # bp / b1 (sublane-padded), double-buffered
        return x_o + xb + w + bias

    B8 = _round_up(max(B, 1), 8)
    # Roofline-driven row-tile target: ~tm FLOPs per streamed bf16 weight byte.
    tm_target = 768 if vmem_capacity >= (96 << 20) else 512   # v5e/v6e (128 MiB) vs v7x
    tm = min(tm_target, B8)

    th_cap = D_pad0 if max_th is None else min(D_pad0, _round_up(max_th, 128))

    def best_th(tm):
        th = th_cap
        while th >= 128:
            if need(tm, th, _round_up(D_pad0, th)) <= budget:
                return th
            th -= 128
        return None

    th = best_th(tm)
    while th is None and tm > 8:
        tm = max(8, _round_up(tm // 2, 8))
        th = best_th(tm)
    if th is None:
        tm, th = 8, 128  # last resort for extreme D; may spill

    d_pad = _round_up(D_pad0, th)

    # Weights VMEM-resident -> arithmetic intensity no longer depends on tm; prefer >= 2
    # row tiles so a 2-TensorCore chip (v7x) can split the "parallel" row axis.
    if th == d_pad and B8 >= 16:
        tm = min(tm, _round_up(-(-B8 // 2), 8))

    return tm, th, d_pad


@functools.partial(jax.jit, static_argnames=("max_th",))
def mlp_forward(x, wp, bp, w1, b1, *, max_th=None):
    """Fused out_1 = channel_1(relu(projection(x))) + x.

    x      : (B, D) float32
    wp, w1 : (D, D) weights in (D_in, D_out) layout (i.e. torch weight transposed)
    bp, b1 : (D,) biases
    """
    B, D = x.shape
    assert wp.shape == (D, D) and w1.shape == (D, D), "residual `+ x` requires D_in == D_out"

    capacity = _vmem_capacity_bytes()
    tm, th, D_pad = _pick_tiles(B, D, capacity, max_th)
    B_pad = _round_up(_round_up(B, 8), tm)

    # Zero padding is exact for this op (pad rows/cols sliced off at the end).
    xp = jnp.pad(x.astype(jnp.float32), ((0, B_pad - B), (0, D_pad - D)))
    wpp = jnp.pad(wp.astype(jnp.bfloat16), ((0, D_pad - D), (0, D_pad - D)))
    w1p = jnp.pad(w1.astype(jnp.bfloat16), ((0, D_pad - D), (0, D_pad - D)))
    bpp = jnp.pad(bp.reshape(1, D).astype(jnp.float32), ((0, 0), (0, D_pad - D)))
    b1p = jnp.pad(b1.reshape(1, D).astype(jnp.float32), ((0, 0), (0, D_pad - D)))

    grid = (B_pad // tm, D_pad // th)  # (parallel row tiles, hidden-block reduction)
    out = pl.pallas_call(
        _mlp_kernel,
        out_shape=jax.ShapeDtypeStruct((B_pad, D_pad), jnp.float32),
        grid=grid,
        in_specs=[
            pl.BlockSpec((tm, D_pad), lambda i, j: (i, 0)),   # x row tile (const over j)
            pl.BlockSpec((D_pad, th), lambda i, j: (0, j)),   # Wp column block
            pl.BlockSpec((1, th),     lambda i, j: (0, j)),   # bp block
            pl.BlockSpec((th, D_pad), lambda i, j: (j, 0)),   # W1 row block
            pl.BlockSpec((1, D_pad),  lambda i, j: (0, 0)),   # b1 (fetched once)
        ],
        out_specs=pl.BlockSpec((tm, D_pad), lambda i, j: (i, 0)),
        scratch_shapes=[pltpu.VMEM((tm, D_pad), jnp.bfloat16)],   # hoisted bf16 x
        compiler_params=pltpu.CompilerParams(
            dimension_semantics=("parallel", "arbitrary"),
            vmem_limit_bytes=int(capacity * 0.9),
        ),
    )(xp, wpp, bpp, w1p, b1p)
    return out[:B, :D].astype(x.dtype)


def _xavier_uniform(key, fan_in, fan_out, dtype=jnp.float32):
    # Matches torch.nn.init.xavier_uniform_ bound: sqrt(6 / (fan_in + fan_out))
    bound = (6.0 / (fan_in + fan_out)) ** 0.5
    return jax.random.uniform(key, (fan_in, fan_out), dtype, minval=-bound, maxval=bound)


def _reference(x, wp, bp, w1, b1):
    # Mirrors the kernel's numerics: bf16-rounded matmul operands, f32 accumulation,
    # f32 bias / ReLU / residual.
    f32 = jnp.float32
    xb = x.astype(jnp.bfloat16).astype(f32)
    wpb = wp.astype(jnp.bfloat16).astype(f32)
    w1b = w1.astype(jnp.bfloat16).astype(f32)
    h = jnp.maximum(xb @ wpb + bp.reshape(1, -1), 0.0)
    hb = h.astype(jnp.bfloat16).astype(f32)
    return hb @ w1b + b1.reshape(1, -1) + x


if __name__ == "__main__":
    key = jax.random.PRNGKey(0)

    # Case 1: resident weights, 2 row tiles (exercises megacore split + output writeback).
    # Case 2: tiny toy shape (exercises the 32 -> 128 pad path, single tile).
    # Case 3: forced th < D_pad (exercises the multi-step reduction / o_ref accumulation).
    cases = [(384, 512, None), (8, 32, None), (128, 512, 256)]
    for (B, D, max_th) in cases:
        kx, kp, k1, key = jax.random.split(key, 4)
        x = jax.random.normal(kx, (B, D), jnp.float32)
        wp = _xavier_uniform(kp, D, D)   # stored as (D_in, D_out): kernel does x @ W
        w1 = _xavier_uniform(k1, D, D)
        bp = jnp.zeros((D,), jnp.float32)   # torch: bias.data.fill_(0.0)
        b1 = jnp.zeros((D,), jnp.float32)

        out = mlp_forward(x, wp, bp, w1, b1, max_th=max_th)
        out = jax.block_until_ready(out)

        ref = _reference(x, wp, bp, w1, b1)
        assert out.shape == (B, D)
        assert jnp.allclose(out, ref, atol=1e-2, rtol=1e-2), (
            f"mismatch vs reference at B={B}, D={D}, max_th={max_th}: "
            f"max abs err {jnp.max(jnp.abs(out - ref))}")

    print("KERNEL_OK")
</pallas_src>

<mosaic_0001>
module attributes {stable_mosaic.version = 11 : i64} {
  func.func @_mlp_kernel(%arg0: i32, %arg1: i32, %arg2: memref<192x512xf32, #tpu.memory_space<vmem>>, %arg3: memref<512x512xbf16, #tpu.memory_space<vmem>>, %arg4: memref<1x512xf32, #tpu.memory_space<vmem>>, %arg5: memref<512x512xbf16, #tpu.memory_space<vmem>>, %arg6: memref<1x512xf32, #tpu.memory_space<vmem>>, %arg7: memref<192x512xf32, #tpu.memory_space<vmem>>, %arg8: memref<192x512xbf16, #tpu.memory_space<vmem>>) attributes {dimension_semantics = [#tpu.dimension_semantics<parallel>, #tpu.dimension_semantics<arbitrary>], iteration_bounds = array<i64: 2, 1>, scalar_prefetch = 0 : i64, scratch_operands = 1 : i64, tpu.core_type = #tpu.core_type<tc>, window_params = [{transform_indices = @transform_0, window_bounds = array<i64: 192, 512>}, {transform_indices = @transform_1, window_bounds = array<i64: 512, 512>}, {transform_indices = @transform_2, window_bounds = array<i64: 1, 512>}, {transform_indices = @transform_3, window_bounds = array<i64: 512, 512>}, {pipeline_mode = #tpu.pipeline_mode<synchronous>, transform_indices = @transform_4, window_bounds = array<i64: 1, 512>}, {transform_indices = @transform_5, window_bounds = array<i64: 192, 512>}]} {
    %c0_i32 = arith.constant 0 : i32
    %0 = arith.cmpi eq, %arg1, %c0_i32 : i32
    %1 = arith.extui %0 : i1 to i32
    %c0_i32_0 = arith.constant 0 : i32
    %2 = arith.cmpi ne, %1, %c0_i32_0 : i32
    scf.if %2 {
      %c0_14 = arith.constant 0 : index
      %c0_15 = arith.constant 0 : index
      %17 = vector.load %arg2[%c0_14, %c0_15] : memref<192x512xf32, #tpu.memory_space<vmem>>, vector<192x512xf32>
      %18 = arith.truncf %17 : vector<192x512xf32> to vector<192x512xbf16>
      %c0_16 = arith.constant 0 : index
      %c0_17 = arith.constant 0 : index
      %19 = vector.load %arg8[%c0_16, %c0_17] : memref<192x512xbf16, #tpu.memory_space<vmem>>, vector<192x512xbf16>
      tpu.vector_store %arg8[%c0_16, %c0_17], %18 {strides = array<i32>} : memref<192x512xbf16, #tpu.memory_space<vmem>>, vector<192x512xbf16>,
      %c0_18 = arith.constant 0 : index
      %c0_19 = arith.constant 0 : index
      %20 = vector.load %arg6[%c0_18, %c0_19] : memref<1x512xf32, #tpu.memory_space<vmem>>, vector<1x512xf32>
      %21 = vector.broadcast %20 : vector<1x512xf32> to vector<192x512xf32>
      %22 = arith.addf %17, %21 : vector<192x512xf32>
      %c0_20 = arith.constant 0 : index
      %c0_21 = arith.constant 0 : index
      %23 = vector.load %arg7[%c0_20, %c0_21] : memref<192x512xf32, #tpu.memory_space<vmem>>, vector<192x512xf32>
      tpu.vector_store %arg7[%c0_20, %c0_21], %22 {strides = array<i32>} : memref<192x512xf32, #tpu.memory_space<vmem>>, vector<192x512xf32>,
    } else {
    }
    %c0 = arith.constant 0 : index
    %c0_1 = arith.constant 0 : index
    %3 = vector.load %arg8[%c0, %c0_1] : memref<192x512xbf16, #tpu.memory_space<vmem>>, vector<192x512xbf16>
    %c0_2 = arith.constant 0 : index
    %c0_3 = arith.constant 0 : index
    %4 = vector.load %arg3[%c0_2, %c0_3] : memref<512x512xbf16, #tpu.memory_space<vmem>>, vector<512x512xbf16>
    %cst = arith.constant dense<0.000000e+00> : vector<192x512xf32>
    %5 = tpu.matmul %3, %4, %cst {dimension_numbers = #tpu.dot_dimension_numbers<[1], [0], [0], [1], [0, 0, 1, 1], [], []>} : vector<192x512xbf16>, vector<512x512xbf16>, vector<192x512xf32> -> vector<192x512xf32>
    %c0_4 = arith.constant 0 : index
    %c0_5 = arith.constant 0 : index
    %6 = vector.load %arg4[%c0_4, %c0_5] : memref<1x512xf32, #tpu.memory_space<vmem>>, vector<1x512xf32>
    %7 = vector.broadcast %6 : vector<1x512xf32> to vector<192x512xf32>
    %8 = arith.addf %5, %7 : vector<192x512xf32>
    %cst_6 = arith.constant 0.000000e+00 : f32
    %9 = vector.broadcast %cst_6 : f32 to vector<192x512xf32>
    %10 = arith.maximumf %8, %9 : vector<192x512xf32>
    %c0_7 = arith.constant 0 : index
    %c0_8 = arith.constant 0 : index
    %11 = vector.load %arg7[%c0_7, %c0_8] : memref<192x512xf32, #tpu.memory_space<vmem>>, vector<192x512xf32>
    %12 = arith.truncf %10 : vector<192x512xf32> to vector<192x512xbf16>
    %c0_9 = arith.constant 0 : index
    %c0_10 = arith.constant 0 : index
    %13 = vector.load %arg5[%c0_9, %c0_10] : memref<512x512xbf16, #tpu.memory_space<vmem>>, vector<512x512xbf16>
    %cst_11 = arith.constant dense<0.000000e+00> : vector<192x512xf32>
    %14 = tpu.matmul %12, %13, %cst_11 {dimension_numbers = #tpu.dot_dimension_numbers<[1], [0], [0], [1], [0, 0, 1, 1], [], []>} : vector<192x512xbf16>, vector<512x512xbf16>, vector<192x512xf32> -> vector<192x512xf32>
    %15 = arith.addf %11, %14 : vector<192x512xf32>
    %c0_12 = arith.constant 0 : index
    %c0_13 = arith.constant 0 : index
    %16 = vector.load %arg7[%c0_12, %c0_13] : memref<192x512xf32, #tpu.memory_space<vmem>>, vector<192x512xf32>
    tpu.vector_store %arg7[%c0_12, %c0_13], %15 {strides = array<i32>} : memref<192x512xf32, #tpu.memory_space<vmem>>, vector<192x512xf32>,
    return
  }
  func.func @transform_0(%arg0: i32, %arg1: i32) -> (i32, i32) {
    %c0_i32 = arith.constant 0 : i32
    %c0_i32_0 = arith.constant 0 : i32
    return %arg0, %c0_i32 : i32, i32
  }
  func.func @transform_1(%arg0: i32, %arg1: i32) -> (i32, i32) {
    %c0_i32 = arith.constant 0 : i32
    %c0_i32_0 = arith.constant 0 : i32
    return %c0_i32, %arg1 : i32, i32
  }
  func.func @transform_2(%arg0: i32, %arg1: i32) -> (i32, i32) {
    %c0_i32 = arith.constant 0 : i32
    %c0_i32_0 = arith.constant 0 : i32
    return %c0_i32, %arg1 : i32, i32
  }
  func.func @transform_3(%arg0: i32, %arg1: i32) -> (i32, i32) {
    %c0_i32 = arith.constant 0 : i32
    %c0_i32_0 = arith.constant 0 : i32
    return %arg1, %c0_i32 : i32, i32
  }
  func.func @transform_4(%arg0: i32, %arg1: i32) -> (i32, i32) {
    %c0_i32 = arith.constant 0 : i32
    %c0_i32_0 = arith.constant 0 : i32
    %c0_i32_1 = arith.constant 0 : i32
    return %c0_i32, %c0_i32_0 : i32, i32
  }
  func.func @transform_5(%arg0: i32, %arg1: i32) -> (i32, i32) {
    %c0_i32 = arith.constant 0 : i32
    %c0_i32_0 = arith.constant 0 : i32
    return %arg0, %c0_i32 : i32, i32
  }
}

</mosaic_0001>

<bundles_post_ra>
// kernel: mlp_forward.1
= control target key start
LH: loop header
LB: loop body
LE: loop exit
PB: predicated region body
PF: predicated region fallthrough
CT: control target
= control target key end

     0   :  { %10 = vsyncpa [#allocation4], 0  ;;  %s7143_s0 = inlined_call_operand.vmem [shape: f32[384,512], index: 0, kind: input, shape index: {}]   ;;  %s7144_s1 = inlined_call_operand.vmem [shape: bf16[512,512], index: 1, kind: input, shape index: {}]   ;;  %s7145_s2 = inlined_call_operand.vmem [shape: f32[1,512], index: 2, kind: input, shape index: {}]   ;;  %s7146_s3 = inlined_call_operand.vmem [shape: bf16[512,512], index: 3, kind: input, shape index: {}]   ;;  %s7147_s4 = inlined_call_operand.vmem [shape: f32[1,512], index: 4, kind: input, shape index: {}]   ;;  %s7148_s5 = inlined_call_operand.hbm [shape: f32[384,512], index: 5, kind: output, shape index: {}]  }
   0x1   :  { %12 = vsyncpa [#allocation4 + $0x1], 0  ;;  %s5225_s18 = smov 0   ;;  %s5227_s19 = smov 0  }
   0x2   :  { %s5229_s20 = smov 0   ;;  %s5231_s21 = smov 0  }
   0x3   :  { %s5233_s22 = smov 0   ;;  %s5235_s23 = smov 0  }
   0x4 LB: > { %s4106_s24 = sadd.s32 4294967295, %s5190_s23   ;;  %s4107_s25 = sadd.s32 4294967294, %s5190_s23   ;;  %s5190_s23 = sphi %s5235_s23, %s18_s23   ;;  %s5186_s22 = sphi %s5233_s22, %s7173_s22   ;;  %s5182_s21 = sphi %s5231_s21, %s7172_s21   ;;  %s5178_s20 = sphi %s5229_s20, %s7171_s20   ;;  %s5174_s19 = sphi %s5227_s19, %s7170_s19   ;;  %s5170_s18 = sphi %s5225_s18, %s7169_s18  }
   0x5   : > { %s30_s26 = sadd.s32 1, %s5186_s22  ;;  %s162_s27 = sadd.s32 1, %s5178_s20 }
   0x6   : > { %p32_p0 = scmp.ge.s32.totalorder %s30_s26, 2  ;;  %p172_p1 = scmp.ne.s32.totalorder %s5178_s20, %s5174_s19 }
   0x7   : > { %p173_p2 = scmp.eq.s32.totalorder %s4106_s24, 1  ;;  %p178_p3 = scmp.ne.s32.totalorder %s5174_s19, %s5170_s18 }
   0x8   : > { %s7175_s26 = smov (%p32_p0, %s30_s26), 0  ;;  %p179_p5 = scmp.eq.s32.totalorder %s4107_s25, 1 }
   0x9   : > { %p5265_p4 = por %p173_p2, %p172_p1  ;;  %s159_s29 = ssub.s32 %s5186_s22, %s7175_s26 }
   0xa   : > { %p4113_p6 = scmp.ge.s32.totalorder %s5190_s23, 1  ;;  %p160_p7 = scmp.eq.s32.totalorder %s159_s29, 0 }
   0xb   : > { %p5272_p8 = por %p179_p5, %p178_p3  ;;  %p237_p9 = scmp.lt.s32.totalorder %s5190_s23, 3 }
   0xc   : > { %s5278_s6 = scalar_select %p160_p7, %s5178_s20, %s162_s27  }
   0xd   : > { %p238_p10 = pnand %p4113_p6, %p237_p9 }
   0xf   : > { %241 = sbr.rel (%p238_p10) target bundleno = 822 (0x336), region = 40 }
  0x16   : > { %v4726_v0 = vld [vmem:[%s7144_s1 + $0x4] ss:$16 sps:$4 sm:$0xff]   ;;  %v4728_v1 = vld [vmem:[%s7144_s1 + $0xc] ss:$16 sps:$4 sm:$0xff]   ;;  %v4730_v2 = vld [vmem:[%s7144_s1] ss:$16 sps:$4 sm:$0xff]   ;;  %v505_v38 = vlaneseq }
  0x17   : > { %1555 = vmatprep.subr.bf16.mxu0 %v4726_v0  ;;  %v4731_v3 = vld [vmem:[%s7144_s1 + $0x8] ss:$16 sps:$4 sm:$0xff]   ;;  %1861 = vmatprep.subr.bf16.mxu1 %v4728_v1  ;;  %v4732_v4 = vld [vmem:[%s7144_s1 + $0x24] ss:$16 sps:$4 sm:$0xff]   ;;  %v4734_v5 = vld [vmem:[%s7144_s1 + $0x2c] ss:$16 sps:$4 sm:$0xff]  }
  0x18   : > { %1556 = vmatpush1.bf16.msra.mxu0 %v4730_v2  ;;  %1862 = vmatpush1.bf16.msra.mxu1 %v4731_v3  ;;  %v4736_v6 = vld [vmem:[%s7144_s1 + $0x20] ss:$16 sps:$4 sm:$0xff]   ;;  %v4737_v7 = vld [vmem:[%s7144_s1 + $0x28] ss:$16 sps:$4 sm:$0xff]   ;;  %v4738_v8 = vld [vmem:[%s7144_s1 + $0x44] ss:$16 sps:$4 sm:$0xff]  }
  0x19   : > { %1557 = vmatprep.subr.bf16.mxu0 %v4732_v4  ;;  %1863 = vmatprep.subr.bf16.mxu1 %v4734_v5  ;;  %v4740_v9 = vld [vmem:[%s7144_s1 + $0x4c] ss:$16 sps:$4 sm:$0xff]   ;;  %v4742_v10 = vld [vmem:[%s7144_s1 + $0x40] ss:$16 sps:$4 sm:$0xff]   ;;  %v4743_v11 = vld [vmem:[%s7144_s1 + $0x48] ss:$16 sps:$4 sm:$0xff]  }
  0x1a   : > { %v4744_v12 = vld [vmem:[%s7144_s1 + $0x64] ss:$16 sps:$4 sm:$0xff]   ;;  %v4746_v13 = vld [vmem:[%s7144_s1 + $0x6c] ss:$16 sps:$4 sm:$0xff]   ;;  %v4748_v14 = vld [vmem:[%s7144_s1 + $0x60] ss:$16 sps:$4 sm:$0xff]  }
  0x1b   : > { %v4749_v15 = vld [vmem:[%s7144_s1 + $0x68] ss:$16 sps:$4 sm:$0xff]   ;;  %v4750_v16 = vld [vmem:[%s7144_s1 + $0x84] ss:$16 sps:$4 sm:$0xff]   ;;  %v4752_v17 = vld [vmem:[%s7144_s1 + $0x8c] ss:$16 sps:$4 sm:$0xff]  }
  0x1c   : > { %1558 = vmatpush1.bf16.msra.mxu0 %v4736_v6  ;;  %1864 = vmatpush1.bf16.msra.mxu1 %v4737_v7  ;;  %v4754_v18 = vld [vmem:[%s7144_s1 + $0x80] ss:$16 sps:$4 sm:$0xff]   ;;  %v4755_v19 = vld [vmem:[%s7144_s1 + $0x88] ss:$16 sps:$4 sm:$0xff]   ;;  %v4756_v20 = vld [vmem:[%s7144_s1 + $0xa4] ss:$16 sps:$4 sm:$0xff]  }
  0x1d   : > { %1559 = vmatprep.subr.bf16.mxu0 %v4738_v8  ;;  %1865 = vmatprep.subr.bf16.mxu1 %v4740_v9  ;;  %v4758_v21 = vld [vmem:[%s7144_s1 + $0xac] ss:$16 sps:$4 sm:$0xff]   ;;  %v4760_v22 = vld [vmem:[%s7144_s1 + $0xa0] ss:$16 sps:$4 sm:$0xff]   ;;  %v4761_v23 = vld [vmem:[%s7144_s1 + $0xa8] ss:$16 sps:$4 sm:$0xff]  }
  0x1e   : > { %v4762_v24 = vld [vmem:[%s7144_s1 + $0xc4] ss:$16 sps:$4 sm:$0xff]   ;;  %v4764_v25 = vld [vmem:[%s7144_s1 + $0xcc] ss:$16 sps:$4 sm:$0xff]   ;;  %v4766_v26 = vld [vmem:[%s7144_s1 + $0xc0] ss:$16 sps:$4 sm:$0xff]  }
  0x1f   : > { %v4767_v27 = vld [vmem:[%s7144_s1 + $0xc8] ss:$16 sps:$4 sm:$0xff]   ;;  %v4768_v28 = vld [vmem:[%s7144_s1 + $0xe4] ss:$16 sps:$4 sm:$0xff]   ;;  %s281_s27 = smul.u32 24, %s5182_s21  ;;  %s278_s25 = sand.u32 1, %s5174_s19  }
  0x20   : > { %1560 = vmatpush1.bf16.msra.mxu0 %v4742_v10  ;;  %1866 = vmatpush1.bf16.msra.mxu1 %v4743_v11  ;;  %v4770_v29 = vld [vmem:[%s7144_s1 + $0xec] ss:$16 sps:$4 sm:$0xff]   ;;  %v4772_v30 = vld [vmem:[%s7144_s1 + $0xe0] ss:$16 sps:$4 sm:$0xff]   ;;  %v4773_v31 = vld [vmem:[%s7144_s1 + $0xe8] ss:$16 sps:$4 sm:$0xff]  }
  0x21   : > { %1561 = vmatprep.subr.bf16.mxu0 %v4744_v12  ;;  %1867 = vmatprep.subr.bf16.mxu1 %v4746_v13  ;;  %v4774_v32 = vld [vmem:[%s7144_s1 + $0x104] ss:$16 sps:$4 sm:$0xff]   ;;  %p282_p11 = scmp.lt.s32.totalorder %s281_s27, 47  ;;  %v4776_v33 = vld [vmem:[%s7144_s1 + $0x10c] ss:$16 sps:$4 sm:$0xff]   ;;  %v5408_v43 = vshrl.u32 %v505_v38, 7 }
  0x22   : > { %v4778_v34 = vld [vmem:[%s7144_s1 + $0x100] ss:$16 sps:$4 sm:$0xff]   ;;  %v4779_v35 = vld [vmem:[%s7144_s1 + $0x108] ss:$16 sps:$4 sm:$0xff]   ;;  %v4780_v36 = vld [vmem:[%s7144_s1 + $0x124] ss:$16 sps:$4 sm:$0xff]  }
  0x23   : > { %s7177_s27 = smov (!%p282_p11, %s281_s27), 47  ;;  %v4782_v37 = vld [vmem:[%s7144_s1 + $0x12c] ss:$16 sps:$4 sm:$0xff]   ;;  %v4784_v39 = vld [vmem:[%s7144_s1 + $0x120] ss:$16 sps:$4 sm:$0xff]   ;;  %7159 = vst [vmem:[#allocation6_spill] sm:$0xff] %v5408_v43 }
  0x24   : > { %1562 = vmatpush1.bf16.msra.mxu0 %v4748_v14  ;;  %1868 = vmatpush1.bf16.msra.mxu1 %v4749_v15  ;;  %v4785_v40 = vld [vmem:[%s7144_s1 + $0x128] ss:$16 sps:$4 sm:$0xff]   ;;  %v4786_v41 = vld [vmem:[%s7144_s1 + $0x144] ss:$16 sps:$4 sm:$0xff]   ;;  %s4376_s16 = sshll.u32 %s7177_s27, 5  ;;  %s5429_s17 = smul.u32 768, %s278_s25 }
  0x25   : > { %1563 = vmatprep.subr.bf16.mxu0 %v4750_v16  ;;  %1869 = vmatprep.subr.bf16.mxu1 %v4752_v17  ;;  %v4788_v42 = vld [vmem:[%s7144_s1 + $0x14c] ss:$16 sps:$4 sm:$0xff]   ;;  %v4790_v44 = vld [vmem:[%s7144_s1 + $0x140] ss:$16 sps:$4 sm:$0xff]   ;;  %v4791_v45 = vld [vmem:[%s7144_s1 + $0x148] ss:$16 sps:$4 sm:$0xff]   ;;  %s5419_s27 = scalar_lea.vmem %s7143_s0, %s4376_s16 }
  0x26   : > { %v4792_v46 = vld [vmem:[%s7144_s1 + $0x164] ss:$16 sps:$4 sm:$0xff]   ;;  %v4794_v47 = vld [vmem:[%s7144_s1 + $0x16c] ss:$16 sps:$4 sm:$0xff]   ;;  %v4796_v48 = vld [vmem:[%s7144_s1 + $0x160] ss:$16 sps:$4 sm:$0xff]  }
  0x27   : > { %v312_v49 = vld [vmem:[%s5419_s27 + $0x8] sm:$0xff]  ;;  %v7150_v50 = vsub.s32 1, %v5408_v43  ;;  %v7152_v51 = vsub.s32 0, %v5408_v43  ;;  %v5444_v54 = vld [vmem:[%s7147_s4] sm:$0xf]  ;;  %s5490_s29 = scalar_lea.vmem [#allocation3], %s5429_s17 }
  0x28   : > { %1564 = vmatpush1.bf16.msra.mxu0 %v4754_v18  ;;  %1870 = vmatpush1.bf16.msra.mxu1 %v4755_v19  ;;  %v4797_v52 = vld [vmem:[%s7144_s1 + $0x168] ss:$16 sps:$4 sm:$0xff]   ;;  %v4798_v55 = vld [vmem:[%s7144_s1 + $0x184] ss:$16 sps:$4 sm:$0xff]   ;;  %v4800_v59 = vld [vmem:[%s7144_s1 + $0x18c] ss:$16 sps:$4 sm:$0xff]  }
  0x29   : > { %1565 = vmatprep.subr.bf16.mxu0 %v4756_v20  ;;  %1871 = vmatprep.subr.bf16.mxu1 %v4758_v21  ;;  %v316_v53 = vld [vmem:[%s5419_s27 + $0x28] sm:$0xff]  ;;  %v5452_v57 = vrot.slane %v5444_v54, %v7150_v50  ;;  %v5457_v58 = vrot.slane %v5444_v54, %v7152_v51  ;;  %v5463_v60 = vld [vmem:[%s5419_s27] sm:$0xff]  ;;  %v377_v50 = vld [vmem:[%s5419_s27 + $0x210] sm:$0xff]  ;;  %s3994_s8 = sshll.u32 %s5490_s29, 4  ;;  %s7097_s11 = scalar_lea.sflag [#allocation4], %s278_s25  ;;  %s7087_s8 = int_to_ptr.vmem [resolvable:$true] %s3994_s8 }
  0x2a   : > { %v408_v56 = vpack.c.bf16 %v316_v53, %v312_v49  ;;  %v4802_v61 = vld [vmem:[%s7144_s1 + $0x180] ss:$16 sps:$4 sm:$0xff]   ;;  %v4803_v62 = vld [vmem:[%s7144_s1 + $0x188] ss:$16 sps:$4 sm:$0xff]   ;;  %v4804_v10 = vld [vmem:[%s7144_s1 + $0x1a4] ss:$16 sps:$4 sm:$0xff]  }
  0x2b   : > { %v526_v63 = vadd.f32 %v5452_v57, %v312_v49  ;;  %v530_v0 = vadd.f32 %v5452_v57, %v316_v53  ;;  %v5474_v1 = vld [vmem:[%s5419_s27 + $0x20] sm:$0xff]  ;;  %v525_v2 = vadd.f32 %v5457_v58, %v5463_v60  ;;  %v5481_v4 = vld [vmem:[%s5419_s27 + $0x48] sm:$0xff]  ;;  %v397_v51 = vld [vmem:[%s5419_s27 + $0x2b0] sm:$0xff]  ;;  %s5112_s12 = scalar_lea.vmem %s7087_s8, 12288  ;;  %s5192_s13 = smov [#allocation3]  }
  0x2c   : > { %1566 = vmatpush1.bf16.msra.mxu0 %v4760_v22  ;;  %1872 = vmatpush1.bf16.msra.mxu1 %v4761_v23  ;;  %v529_v3 = vadd.f32 %v5457_v58, %v5474_v1  ;;  %v5484_v5 = vld [vmem:[%s5419_s27 + $0x68] sm:$0xff]  ;;  %v5487_v6 = vld [vmem:[%s5419_s27 + $0x40] sm:$0xff]  ;;  %v534_v7 = vadd.f32 %v5452_v57, %v5481_v4  ;;  %p5113_p12 = scmp.ne.s32.totalorder %s7087_s8, %s5112_s12  ;;  %s5116_s14 = sshll.u32 %s5192_s13, 4  ;;  %s5117_s14 = int_to_ptr.vmem [resolvable:$false] %s5116_s14 }
  0x2d   : > { %1567 = vmatprep.subr.bf16.mxu0 %v4762_v24  ;;  %1873 = vmatprep.subr.bf16.mxu1 %v4764_v25  ;;  %622 = vst [vmem:[%s5490_s29 + $0x8] sm:$0xff] %v526_v63  ;;  %626 = vst [vmem:[%s5490_s29 + $0x28] sm:$0xff] %v530_v0  ;;  %v538_v8 = vadd.f32 %v5452_v57, %v5484_v5  ;;  %v5500_v9 = vld [vmem:[%s5419_s27 + $0x60] sm:$0xff]  ;;  %v4806_v11 = vld [vmem:[%s7144_s1 + $0x1ac] ss:$16 sps:$4 sm:$0xff]   ;;  %v533_v12 = vadd.f32 %v5457_v58, %v5487_v6  ;;  %s5118_s15 = scalar_lea.vmem %s5117_s14, 24576  ;;  %p5119_p1 = scmp.lt.s32.totalorder %s7087_s8, %s5117_s14 }
  0x2e   : > { %1587 = vmatprep.mubr.bf16.mxu0 %v408_v56  ;;  %1893 = vmatprep.mubr.bf16.mxu1 %v408_v56  ;;  %621 = vst [vmem:[%s5490_s29] sm:$0xff] %v525_v2  ;;  %625 = vst [vmem:[%s5490_s29 + $0x20] sm:$0xff] %v529_v3  ;;  %v537_v13 = vadd.f32 %v5457_v58, %v5500_v9  ;;  %v5514_v14 = vld [vmem:[%s5419_s27 + $0x88] sm:$0xff]  ;;  %v4808_v15 = vld [vmem:[%s7144_s1 + $0x1a0] ss:$16 sps:$4 sm:$0xff]   ;;  %p5114_p13 = pnand %p5113_p12, %p5265_p4  ;;  %p5120_p2 = scmp.lt.s32.totalorder %s5118_s15, %s5112_s12 }
  0x2f   : > { %v4809_v16 = vld [vmem:[%s7144_s1 + $0x1a8] ss:$16 sps:$4 sm:$0xff]   ;;  %630 = vst [vmem:[%s5490_s29 + $0x48] sm:$0xff] %v534_v7  ;;  %634 = vst [vmem:[%s5490_s29 + $0x68] sm:$0xff] %v538_v8  ;;  %v542_v18 = vadd.f32 %v5452_v57, %v5514_v14  ;;  %v5530_v19 = vld [vmem:[%s5419_s27 + $0x80] sm:$0xff] }
  0x30   : > { %1568 = vmatpush1.bf16.msra.mxu0 %v4766_v26  ;;  %1874 = vmatpush1.bf16.msra.mxu1 %v4767_v27  ;;  %v5525_v17 = vld [vmem:[%s5419_s27 + $0xa8] sm:$0xff]  ;;  %v4810_v20 = vld [vmem:[%s7144_s1 + $0x1c4] ss:$16 sps:$4 sm:$0xff]   ;;  %629 = vst [vmem:[%s5490_s29 + $0x40] sm:$0xff] %v533_v12  ;;  %633 = vst [vmem:[%s5490_s29 + $0x60] sm:$0xff] %v537_v13  ;;  %v541_v23 = vadd.f32 %v5457_v58, %v5530_v19  ;;  %p5115_p0 = pneg %p5114_p13  ;;  %p5121_p3 = por %p5120_p2, %p5119_p1 }
  0x31   : > { %1569 = vmatprep.subr.bf16.mxu0 %v4768_v28  ;;  %1875 = vmatprep.subr.bf16.mxu1 %v4770_v29  ;;  %v546_v21 = vadd.f32 %v5452_v57, %v5525_v17  ;;  %v5540_v22 = vld [vmem:[%s5419_s27 + $0xa0] sm:$0xff]  ;;  %v4812_v24 = vld [vmem:[%s7144_s1 + $0x1cc] ss:$16 sps:$4 sm:$0xff]   ;;  %638 = vst [vmem:[%s5490_s29 + $0x88] sm:$0xff] %v542_v18 }
  0x32   : > { %v545_v25 = vadd.f32 %v5457_v58, %v5540_v22  ;;  %v5551_v26 = vld [vmem:[%s5419_s27 + $0xc8] sm:$0xff]  ;;  %637 = vst [vmem:[%s5490_s29 + $0x80] sm:$0xff] %v541_v23  ;;  %v4824_v49 = vld [vmem:[%s7144_s1 + $0x204] ss:$16 sps:$4 sm:$0xff]   ;;  %v4822_v2 = vld [vmem:[%s7144_s1 + $0x200] ss:$16 sps:$4 sm:$0xff]   ;;  %v411_v23 = vpack.c.bf16 %v5500_v9, %v5487_v6  ;;  %p5122_p5 = pnand %p5121_p3, %p5115_p0 }
  0x33   : > { %v5554_v27 = vld [vmem:[%s5419_s27 + $0xe8] sm:$0xff]  ;;  %642 = vst [vmem:[%s5490_s29 + $0xa8] sm:$0xff] %v546_v21  ;;  %v550_v28 = vadd.f32 %v5452_v57, %v5551_v26  ;;  %v5641_v63 = vld [vmem:[%s5419_s27 + $0x160] sm:$0xff] }
  0x34   : > { %1570 = vmatpush1.bf16.msra.mxu0 %v4772_v30  ;;  %1876 = vmatpush1.bf16.msra.mxu1 %v4773_v31  ;;  %v554_v29 = vadd.f32 %v5452_v57, %v5554_v27  ;;  %v5563_v30 = vld [vmem:[%s5419_s27 + $0xc0] sm:$0xff]  ;;  %641 = vst [vmem:[%s5490_s29 + $0xa0] sm:$0xff] %v545_v25  ;;  %v5590_v38 = vld [vmem:[%s5419_s27 + $0x108] sm:$0xff]  ;;  %v416_v25 = vpack.c.bf16 %v5525_v17, %v5514_v14 }
  0x35   : > { %1571 = vmatprep.subr.bf16.mxu0 %v4774_v32  ;;  %1877 = vmatprep.subr.bf16.mxu1 %v4776_v33  ;;  %v5566_v31 = vld [vmem:[%s5419_s27 + $0xe0] sm:$0xff]  ;;  %v4815_v33 = vld [vmem:[%s7144_s1 + $0x1c8] ss:$16 sps:$4 sm:$0xff]   ;;  %646 = vst [vmem:[%s5490_s29 + $0xc8] sm:$0xff] %v550_v28  ;;  %v4851_v14 = vld [vmem:[%s7144_s1 + $0x24c] ss:$16 sps:$4 sm:$0xff]  }
  0x36   : > { %v4814_v32 = vld [vmem:[%s7144_s1 + $0x1c0] ss:$16 sps:$4 sm:$0xff]   ;;  %650 = vst [vmem:[%s5490_s29 + $0xe8] sm:$0xff] %v554_v29  ;;  %v5626_v53 = vld [vmem:[%s5419_s27 + $0x148] sm:$0xff]  ;;  %v4827_v3 = vld [vmem:[%s7144_s1 + $0x224] ss:$16 sps:$4 sm:$0xff]  }
  0x37   : > { %v566_v56 = vadd.f32 %v5452_v57, %v5626_v53  ;;  %v4825_v7 = vld [vmem:[%s7144_s1 + $0x220] ss:$16 sps:$4 sm:$0xff]   ;;  %v5669_v8 = vld [vmem:[%s5419_s27 + $0x188] sm:$0xff]  ;;  %v4833_v28 = vld [vmem:[%s7144_s1 + $0x264] ss:$16 sps:$4 sm:$0xff]  }
  0x38   : > { %1572 = vmatpush1.bf16.msra.mxu0 %v4778_v34  ;;  %1878 = vmatpush1.bf16.msra.mxu1 %v4779_v35  ;;  %v549_v34 = vadd.f32 %v5457_v58, %v5563_v30  ;;  %v553_v35 = vadd.f32 %v5457_v58, %v5566_v31  ;;  %v574_v12 = vadd.f32 %v5452_v57, %v5669_v8  ;;  %v4846_v21 = vld [vmem:[%s7144_s1 + $0x228] ss:$16 sps:$4 sm:$0xff]   ;;  %v4831_v29 = vld [vmem:[%s7144_s1 + $0x260] ss:$16 sps:$4 sm:$0xff]  }
  0x39   : > { %1573 = vmatprep.subr.bf16.mxu0 %v4780_v36  ;;  %1879 = vmatprep.subr.bf16.mxu1 %v4782_v37  ;;  %v4816_v36 = vld [vmem:[%s7144_s1 + $0x1e4] ss:$16 sps:$4 sm:$0xff]   ;;  %v4818_v37 = vld [vmem:[%s7144_s1 + $0x1ec] ss:$16 sps:$4 sm:$0xff]   ;;  %662 = vst [vmem:[%s5490_s29 + $0x148] sm:$0xff] %v566_v56 }
  0x3a   : > { %645 = vst [vmem:[%s5490_s29 + $0xc0] sm:$0xff] %v549_v34  ;;  %649 = vst [vmem:[%s5490_s29 + $0xe0] sm:$0xff] %v553_v35  ;;  %v4849_v6 = vld [vmem:[%s7144_s1 + $0x248] ss:$16 sps:$4 sm:$0xff]   ;;  %v5731_v35 = vld [vmem:[%s5419_s27 + $0x1e0] sm:$0xff] }
  0x3b   : > { %670 = vst [vmem:[%s5490_s29 + $0x188] sm:$0xff] %v574_v12  ;;  %v5712_v9 = vld [vmem:[%s5419_s27 + $0x1c8] sm:$0xff]  ;;  %v4834_v56 = vld [vmem:[%s7144_s1 + $0x280] ss:$16 sps:$4 sm:$0xff]  }
  0x3c   : > { %1574 = vmatpush1.bf16.msra.mxu0 %v4784_v39  ;;  %1880 = vmatpush1.bf16.msra.mxu1 %v4785_v40  ;;  %v5593_v39 = vld [vmem:[%s5419_s27 + $0x128] sm:$0xff]  ;;  %v558_v40 = vadd.f32 %v5452_v57, %v5590_v38  ;;  %v5807_v12 = vld [vmem:[%s5419_s27 + $0x260] sm:$0xff] }
  0x3d   : > { %1575 = vmatprep.subr.bf16.mxu0 %v4786_v41  ;;  %1881 = vmatprep.subr.bf16.mxu1 %v4788_v42  ;;  %v562_v41 = vadd.f32 %v5452_v57, %v5593_v39  ;;  %v5600_v42 = vld [vmem:[%s5419_s27 + $0x100] sm:$0xff]  ;;  %v5721_v17 = vld [vmem:[%s5419_s27 + $0x1e8] sm:$0xff] }
  0x3e   : > { %654 = vst [vmem:[%s5490_s29 + $0x108] sm:$0xff] %v558_v40  ;;  %v586_v34 = vadd.f32 %v5452_v57, %v5721_v17  ;;  %v585_v40 = vadd.f32 %v5457_v58, %v5731_v35 }
  0x3f   : > { %658 = vst [vmem:[%s5490_s29 + $0x128] sm:$0xff] %v562_v41  ;;  %v4836_v41 = vld [vmem:[%s7144_s1 + $0x284] ss:$16 sps:$4 sm:$0xff]  }
  0x40   : > { %1576 = vmatpush1.bf16.msra.mxu0 %v4790_v44  ;;  %1882 = vmatpush1.bf16.msra.mxu1 %v4791_v45  ;;  %v5603_v44 = vld [vmem:[%s5419_s27 + $0x120] sm:$0xff]  ;;  %v557_v45 = vadd.f32 %v5457_v58, %v5600_v42  ;;  %682 = vst [vmem:[%s5490_s29 + $0x1e8] sm:$0xff] %v586_v34  ;;  %681 = vst [vmem:[%s5490_s29 + $0x1e0] sm:$0xff] %v585_v40  ;;  %v4870_v34 = vld [vmem:[%s7144_s1 + $0x2c8] ss:$16 sps:$4 sm:$0xff]  }
  0x41   : > { %1577 = vmatprep.subr.bf16.mxu0 %v4792_v46  ;;  %1883 = vmatprep.subr.bf16.mxu1 %v4794_v47  ;;  %v561_v46 = vadd.f32 %v5457_v58, %v5603_v44  ;;  %v4820_v47 = vld [vmem:[%s7144_s1 + $0x1e0] ss:$16 sps:$4 sm:$0xff]   ;;  %v4860_v40 = vld [vmem:[%s7144_s1 + $0x304] ss:$16 sps:$4 sm:$0xff]  }
  0x42   : > { %653 = vst [vmem:[%s5490_s29 + $0x100] sm:$0xff] %v557_v45  ;;  %v415_v45 = vpack.c.bf16 %v5540_v22, %v5530_v19  ;;  %v5765_v22 = vld [vmem:[%s5419_s27 + $0x220] sm:$0xff] }
  0x43   : > { %657 = vst [vmem:[%s5490_s29 + $0x120] sm:$0xff] %v561_v46  ;;  %v5750_v46 = vld [vmem:[%s5419_s27 + $0x208] sm:$0xff] }
  0x44   : > { %1578 = vmatpush1.bf16.msra.mxu0 %v4796_v48  ;;  %1884 = vmatpush1.bf16.msra.mxu1 %v4797_v52  ;;  %v4821_v48 = vld [vmem:[%s7144_s1 + $0x1e8] ss:$16 sps:$4 sm:$0xff]   ;;  %v4842_v52 = vld [vmem:[%s7144_s1 + $0x20c] ss:$16 sps:$4 sm:$0xff]  }
  0x45   : > { %1579 = vmatprep.subr.bf16.mxu0 %v4798_v55  ;;  %1885 = vmatprep.subr.bf16.mxu1 %v4800_v59  ;;  %v5629_v55 = vld [vmem:[%s5419_s27 + $0x168] sm:$0xff]  ;;  %v5634_v59 = vld [vmem:[%s5419_s27 + $0x140] sm:$0xff] }
  0x46   : > { %v565_v0 = vadd.f32 %v5457_v58, %v5634_v59 }
  0x48   : > { %1580 = vmatpush1.bf16.msra.mxu0 %v4802_v61  ;;  %1886 = vmatpush1.bf16.msra.mxu1 %v4803_v62  ;;  %v407_v61 = vpack.c.bf16 %v5474_v1, %v5463_v60  ;;  %v570_v62 = vadd.f32 %v5452_v57, %v5629_v55  ;;  %v412_v60 = vpack.c.bf16 %v5484_v5, %v5481_v4  ;;  %v4840_v4 = vld [vmem:[%s7144_s1 + $0x208] ss:$16 sps:$4 sm:$0xff]   ;;  %v4848_v5 = vld [vmem:[%s7144_s1 + $0x22c] ss:$16 sps:$4 sm:$0xff]  }
  0x49   : > { %1581 = vmatprep.subr.bf16.mxu0 %v4804_v10  ;;  %1887 = vmatprep.subr.bf16.mxu1 %v4806_v11  ;;  %v569_v1 = vadd.f32 %v5457_v58, %v5641_v63  ;;  %661 = vst [vmem:[%s5490_s29 + $0x140] sm:$0xff] %v565_v0  ;;  %v5672_v10 = vld [vmem:[%s5419_s27 + $0x1a8] sm:$0xff]  ;;  %v5675_v11 = vld [vmem:[%s5419_s27 + $0x180] sm:$0xff] }
  0x4a   : > { %666 = vst [vmem:[%s5490_s29 + $0x168] sm:$0xff] %v570_v62  ;;  %v578_v13 = vadd.f32 %v5452_v57, %v5672_v10  ;;  %v573_v18 = vadd.f32 %v5457_v58, %v5675_v11  ;;  %v4839_v62 = vld [vmem:[%s7144_s1 + $0x2a4] ss:$16 sps:$4 sm:$0xff]   ;;  %v4863_v0 = vld [vmem:[%s7144_s1 + $0x28c] ss:$16 sps:$4 sm:$0xff]  }
  0x4b   : > { %665 = vst [vmem:[%s5490_s29 + $0x160] sm:$0xff] %v569_v1  ;;  %v5794_v1 = vld [vmem:[%s5419_s27 + $0x248] sm:$0xff] }
  0x4c   : > { %1582 = vmatpush1.bf16.msra.mxu0 %v4808_v15  ;;  %1888 = vmatpush1.bf16.msra.mxu1 %v4809_v16  ;;  %v5682_v15 = vld [vmem:[%s5419_s27 + $0x1a0] sm:$0xff]  ;;  %674 = vst [vmem:[%s5490_s29 + $0x1a8] sm:$0xff] %v578_v13  ;;  %669 = vst [vmem:[%s5490_s29 + $0x180] sm:$0xff] %v573_v18 }
  0x4d   : > { %1583 = vmatprep.subr.bf16.mxu0 %v4810_v20  ;;  %1889 = vmatprep.subr.bf16.mxu1 %v4812_v24  ;;  %v4830_v16 = vld [vmem:[%s7144_s1 + $0x244] ss:$16 sps:$4 sm:$0xff]   ;;  %v577_v20 = vadd.f32 %v5457_v58, %v5682_v15  ;;  %v4828_v24 = vld [vmem:[%s7144_s1 + $0x240] ss:$16 sps:$4 sm:$0xff]  }
  0x4e   : > { %v4845_v13 = vld [vmem:[%s7144_s1 + $0x2c4] ss:$16 sps:$4 sm:$0xff]  }
  0x4f   : > { %673 = vst [vmem:[%s5490_s29 + $0x1a0] sm:$0xff] %v577_v20  ;;  %v601_v20 = vadd.f32 %v5457_v58, %v5807_v12 }
  0x50   : > { %1584 = vmatpush1.bf16.msra.mxu0 %v4814_v32  ;;  %1890 = vmatpush1.bf16.msra.mxu1 %v4815_v33  ;;  %v582_v32 = vadd.f32 %v5452_v57, %v5712_v9  ;;  %v5726_v33 = vld [vmem:[%s5419_s27 + $0x1c0] sm:$0xff] }
  0x51   : > { %1585 = vmatprep.subr.bf16.mxu0 %v4816_v36  ;;  %1891 = vmatprep.subr.bf16.mxu1 %v4818_v37  ;;  %v4857_v36 = vld [vmem:[%s7144_s1 + $0x26c] ss:$16 sps:$4 sm:$0xff]   ;;  %v581_v37 = vadd.f32 %v5457_v58, %v5726_v33  ;;  %697 = vst [vmem:[%s5490_s29 + $0x260] sm:$0xff] %v601_v20 }
  0x52   : > { %678 = vst [vmem:[%s5490_s29 + $0x1c8] sm:$0xff] %v582_v32  ;;  %v4852_v32 = vld [vmem:[%s7144_s1 + $0x2e0] ss:$16 sps:$4 sm:$0xff]   ;;  %v4887_v20 = vld [vmem:[%s7144_s1 + $0x32c] ss:$16 sps:$4 sm:$0xff]  }
  0x53   : > { %677 = vst [vmem:[%s5490_s29 + $0x1c0] sm:$0xff] %v581_v37 }
  0x54   : > { %1586 = vmatpush1.bf16.msra.mxu0 %v4820_v47  ;;  %1892 = vmatpush1.bf16.msra.mxu1 %v4821_v48  ;;  %v5753_v47 = vld [vmem:[%s5419_s27 + $0x228] sm:$0xff]  ;;  %v5756_v48 = vld [vmem:[%s5419_s27 + $0x200] sm:$0xff] }
  0x55   : > { %1708 = vmatprep.subr.bf16.mxu0 %v4824_v49  ;;  %2014 = vmatprep.subr.bf16.mxu1 %v4842_v52  ;;  %v420_v49 = vpack.c.bf16 %v5554_v27, %v5551_v26  ;;  %v590_v52 = vadd.f32 %v5452_v57, %v5750_v46  ;;  %v594_v19 = vadd.f32 %v5452_v57, %v5753_v47  ;;  %v4855_v26 = vld [vmem:[%s7144_s1 + $0x268] ss:$16 sps:$4 sm:$0xff]  }
  0x56   : > { %v589_v27 = vadd.f32 %v5457_v58, %v5756_v48 }
  0x57   : > { %1588 = vmatmul.mubr.bf16.vlgmr.msra.gmra.mrb[0].mxu0 %v407_v61  ;;  %1894 = vmatmul.mubr.bf16.vlgmr.msra.gmra.mrb[0].mxu1 %v407_v61  ;;  %v593_v61 = vadd.f32 %v5457_v58, %v5765_v22  ;;  %686 = vst [vmem:[%s5490_s29 + $0x208] sm:$0xff] %v590_v52  ;;  %690 = vst [vmem:[%s5490_s29 + $0x228] sm:$0xff] %v594_v19  ;;  %v428_v52 = vpack.c.bf16 %v5629_v55, %v5626_v53  ;;  %v4876_v19 = vld [vmem:[%s7144_s1 + $0x2e8] ss:$16 sps:$4 sm:$0xff]   ;;  %v5897_v53 = vld [vmem:[%s5419_s27 + $0x2c0] sm:$0xff] }
  0x58   : > { %1709 = vmatpush1.bf16.msra.mxu0 %v4822_v2  ;;  %1597 = vmatprep.mubr.bf16.mxu0 %v412_v60  ;;  %v4837_v2 = vld [vmem:[%s7144_s1 + $0x2a0] ss:$16 sps:$4 sm:$0xff]   ;;  %685 = vst [vmem:[%s5490_s29 + $0x200] sm:$0xff] %v589_v27  ;;  %v7149_v27 = vsub.s32 3, %v5408_v43 }
  0x59   : > { %1710 = vmatprep.subr.bf16.mxu0 %v4827_v3  ;;  %1903 = vmatprep.mubr.bf16.mxu1 %v412_v60  ;;  %689 = vst [vmem:[%s5490_s29 + $0x220] sm:$0xff] %v593_v61  ;;  %v4861_v60 = vld [vmem:[%s7144_s1 + $0x288] ss:$16 sps:$4 sm:$0xff]   ;;  %v5900_v55 = vld [vmem:[%s5419_s27 + $0x2e0] sm:$0xff] }
  0x5a   : > { %2015 = vmatpush1.bf16.msra.mxu1 %v4840_v4  ;;  %v5797_v3 = vld [vmem:[%s5419_s27 + $0x268] sm:$0xff]  ;;  %v4869_v61 = vld [vmem:[%s7144_s1 + $0x324] ss:$16 sps:$4 sm:$0xff]  }
  0x5b   : > { %2016 = vmatprep.subr.bf16.mxu1 %v4848_v5  ;;  %v602_v4 = vadd.f32 %v5452_v57, %v5797_v3  ;;  %v5804_v5 = vld [vmem:[%s5419_s27 + $0x240] sm:$0xff] }
  0x5c   : > { %1711 = vmatpush1.bf16.msra.mxu0 %v4825_v7  ;;  %v598_v7 = vadd.f32 %v5452_v57, %v5794_v1  ;;  %v597_v18 = vadd.f32 %v5457_v58, %v5804_v5 }
  0x5d   : > { %1712 = vmatprep.subr.bf16.mxu0 %v4830_v16  ;;  %v4866_v16 = vld [vmem:[%s7144_s1 + $0x2ac] ss:$16 sps:$4 sm:$0xff]   ;;  %698 = vst [vmem:[%s5490_s29 + $0x268] sm:$0xff] %v602_v4  ;;  %v4879_v4 = vld [vmem:[%s7144_s1 + $0x308] ss:$16 sps:$4 sm:$0xff]  }
  0x5e   : > { %2017 = vmatpush1.bf16.msra.mxu1 %v4846_v21  ;;  %v419_v21 = vpack.c.bf16 %v5566_v31, %v5563_v30  ;;  %694 = vst [vmem:[%s5490_s29 + $0x248] sm:$0xff] %v598_v7  ;;  %693 = vst [vmem:[%s5490_s29 + $0x240] sm:$0xff] %v597_v18  ;;  %v4864_v30 = vld [vmem:[%s7144_s1 + $0x2a8] ss:$16 sps:$4 sm:$0xff]   ;;  %v4854_v31 = vld [vmem:[%s7144_s1 + $0x2e4] ss:$16 sps:$4 sm:$0xff]  }
  0x5f   : > { %1598 = vmatmul.mubr.bf16.gmra.mrb[4].mxu0 %v411_v23  ;;  %1904 = vmatmul.mubr.bf16.gmra.mrb[4].mxu1 %v411_v23  ;;  %v424_v23 = vpack.c.bf16 %v5593_v39, %v5590_v38  ;;  %v4872_v38 = vld [vmem:[%s7144_s1 + $0x2cc] ss:$16 sps:$4 sm:$0xff]   ;;  %v4867_v7 = vld [vmem:[%s7144_s1 + $0x320] ss:$16 sps:$4 sm:$0xff]   ;;  %v4875_v18 = vld [vmem:[%s7144_s1 + $0x344] ss:$16 sps:$4 sm:$0xff]  }
  0x60   : > { %1713 = vmatpush1.bf16.msra.mxu0 %v4828_v24  ;;  %1607 = vmatprep.mubr.bf16.mxu0 %v416_v25  ;;  %v4843_v24 = vld [vmem:[%s7144_s1 + $0x2c0] ss:$16 sps:$4 sm:$0xff]   ;;  %v5840_v39 = vld [vmem:[%s5419_s27 + $0x288] sm:$0xff] }
  0x61   : > { %1913 = vmatprep.mubr.bf16.mxu1 %v416_v25  ;;  %1714 = vmatprep.subr.bf16.mxu0 %v4833_v28  ;;  %v5843_v25 = vld [vmem:[%s5419_s27 + $0x2a8] sm:$0xff]  ;;  %v5846_v28 = vld [vmem:[%s5419_s27 + $0x280] sm:$0xff] }
  0x62   : > { %2018 = vmatprep.subr.bf16.mxu1 %v4851_v14  ;;  %v5853_v14 = vld [vmem:[%s5419_s27 + $0x2a0] sm:$0xff] }
  0x63   : > { %2019 = vmatpush1.bf16.msra.mxu1 %v4849_v6  ;;  %v606_v6 = vadd.f32 %v5452_v57, %v5840_v39  ;;  %v609_v37 = vadd.f32 %v5457_v58, %v5853_v14 }
  0x64   : > { %1715 = vmatpush1.bf16.msra.mxu0 %v4831_v29  ;;  %2020 = vmatprep.subr.bf16.mxu1 %v4857_v36  ;;  %v610_v29 = vadd.f32 %v5452_v57, %v5843_v25  ;;  %v605_v36 = vadd.f32 %v5457_v58, %v5846_v28 }
  0x65   : > { %1716 = vmatprep.subr.bf16.mxu0 %v4836_v41  ;;  %v4878_v41 = vld [vmem:[%s7144_s1 + $0x2ec] ss:$16 sps:$4 sm:$0xff]   ;;  %702 = vst [vmem:[%s5490_s29 + $0x288] sm:$0xff] %v606_v6  ;;  %705 = vst [vmem:[%s5490_s29 + $0x2a0] sm:$0xff] %v609_v37  ;;  %v329_v37 = vld [vmem:[%s5419_s27 + $0x90] sm:$0xff] }
  0x66   : > { %706 = vst [vmem:[%s5490_s29 + $0x2a8] sm:$0xff] %v610_v29  ;;  %701 = vst [vmem:[%s5490_s29 + $0x280] sm:$0xff] %v605_v36  ;;  %v330_v6 = vld [vmem:[%s5419_s27 + $0x98] sm:$0xff] }
  0x67   : > { %1608 = vmatmul.mubr.bf16.gmra.mrb[8].mxu0 %v415_v45  ;;  %1914 = vmatmul.mubr.bf16.gmra.mrb[8].mxu1 %v415_v45  ;;  %v423_v45 = vpack.c.bf16 %v5603_v44, %v5600_v42  ;;  %v334_v29 = vld [vmem:[%s5419_s27 + $0xb8] sm:$0xff] }
  0x68   : > { %1617 = vmatprep.mubr.bf16.mxu0 %v420_v49  ;;  %1923 = vmatprep.mubr.bf16.mxu1 %v420_v49  ;;  %v4858_v49 = vld [vmem:[%s7144_s1 + $0x300] ss:$16 sps:$4 sm:$0xff]   ;;  %v6001_v36 = vpack.c.bf16 %v334_v29, %v330_v6 }
  0x69   : > { %1717 = vmatpush1.bf16.msra.mxu0 %v4834_v56  ;;  %2021 = vmatpush1.bf16.msra.mxu1 %v4855_v26  ;;  %v5886_v56 = vld [vmem:[%s5419_s27 + $0x2c8] sm:$0xff] }
  0x6a   : > { %1718 = vmatprep.subr.bf16.mxu0 %v4839_v62  ;;  %2022 = vmatprep.subr.bf16.mxu1 %v4863_v0  ;;  %v5889_v26 = vld [vmem:[%s5419_s27 + $0x2e8] sm:$0xff]  ;;  %v614_v42 = vadd.f32 %v5452_v57, %v5886_v56  ;;  %v613_v0 = vadd.f32 %v5457_v58, %v5897_v53 }
  0x6b   : > { %v618_v44 = vadd.f32 %v5452_v57, %v5889_v26  ;;  %v4881_v62 = vld [vmem:[%s7144_s1 + $0x30c] ss:$16 sps:$4 sm:$0xff]   ;;  %v617_v57 = vadd.f32 %v5457_v58, %v5900_v55 }
  0x6c   : > { %710 = vst [vmem:[%s5490_s29 + $0x2c8] sm:$0xff] %v614_v42  ;;  %709 = vst [vmem:[%s5490_s29 + $0x2c0] sm:$0xff] %v613_v0  ;;  %v337_v42 = vld [vmem:[%s5419_s27 + $0xd0] sm:$0xff] }
  0x6d   : > { %1719 = vmatpush1.bf16.msra.mxu0 %v4837_v2  ;;  %2023 = vmatpush1.bf16.msra.mxu1 %v4861_v60  ;;  %v5915_v2 = vrot.slane %v5444_v54, %v7149_v27  ;;  %v7151_v60 = vsub.s32 2, %v5408_v43  ;;  %714 = vst [vmem:[%s5490_s29 + $0x2e8] sm:$0xff] %v618_v44  ;;  %713 = vst [vmem:[%s5490_s29 + $0x2e0] sm:$0xff] %v617_v57  ;;  %v341_v44 = vld [vmem:[%s5419_s27 + $0xf0] sm:$0xff]  ;;  %v406_v43 = vld [vmem:[%s5419_s27 + $0x2f8] sm:$0xff] }
  0x6e   : > { %1720 = vmatprep.subr.bf16.mxu0 %v4845_v13  ;;  %2024 = vmatprep.subr.bf16.mxu1 %v4866_v16  ;;  %v5934_v13 = vld [vmem:[%s5419_s27 + $0x18] sm:$0xff]  ;;  %v427_v16 = vpack.c.bf16 %v5641_v63, %v5634_v59  ;;  %v5953_v63 = vpack.c.bf16 %v5682_v15, %v5675_v11  ;;  %v373_v27 = vld [vmem:[%s5419_s27 + $0x1f0] sm:$0xff] }
  0x6f   : > { %1618 = vmatmul.mubr.bf16.gmra.mrb[12].mxu0 %v419_v21  ;;  %1924 = vmatmul.mubr.bf16.gmra.mrb[12].mxu1 %v419_v21  ;;  %v5925_v58 = vrot.slane %v5444_v54, %v7151_v60  ;;  %v432_v54 = vpack.c.bf16 %v5672_v10, %v5669_v8  ;;  %v5947_v21 = vld [vmem:[%s5419_s27 + $0x38] sm:$0xff]  ;;  %v528_v59 = vadd.f32 %v5915_v2, %v5934_v13  ;;  %v393_v60 = vld [vmem:[%s5419_s27 + $0x290] sm:$0xff] }
  0x70   : > { %1627 = vmatprep.mubr.bf16.mxu0 %v424_v23  ;;  %1933 = vmatprep.mubr.bf16.mxu1 %v424_v23  ;;  %v5957_v8 = vpack.c.bf16 %v5721_v17, %v5712_v9  ;;  %v5961_v10 = vpack.c.bf16 %v5731_v35, %v5726_v33  ;;  %v4873_v23 = vld [vmem:[%s7144_s1 + $0x340] ss:$16 sps:$4 sm:$0xff]   ;;  %v532_v11 = vadd.f32 %v5915_v2, %v5947_v21  ;;  %v5972_v15 = vld [vmem:[%s5419_s27 + $0x58] sm:$0xff]  ;;  %v4884_v35 = vld [vmem:[%s7144_s1 + $0x364] ss:$16 sps:$4 sm:$0xff]  }
  0x71   : > { %1721 = vmatpush1.bf16.msra.mxu0 %v4843_v24  ;;  %2025 = vmatpush1.bf16.msra.mxu1 %v4864_v30  ;;  %v4885_v24 = vld [vmem:[%s7144_s1 + $0x328] ss:$16 sps:$4 sm:$0xff]   ;;  %v321_v17 = vld [vmem:[%s5419_s27 + $0x50] sm:$0xff]  ;;  %v5980_v33 = vpack.c.bf16 %v5753_v47, %v5750_v46  ;;  %v4893_v30 = vld [vmem:[%s7144_s1 + $0x34c] ss:$16 sps:$4 sm:$0xff]   ;;  %624 = vst [vmem:[%s5490_s29 + $0x18] sm:$0xff] %v528_v59 }
  0x72   : > { %1722 = vmatprep.subr.bf16.mxu0 %v4854_v31  ;;  %2026 = vmatprep.subr.bf16.mxu1 %v4872_v38  ;;  %v5975_v9 = vld [vmem:[%s5419_s27 + $0x78] sm:$0xff]  ;;  %v536_v31 = vadd.f32 %v5915_v2, %v5972_v15  ;;  %v325_v46 = vld [vmem:[%s5419_s27 + $0x70] sm:$0xff]  ;;  %v535_v47 = vadd.f32 %v5925_v58, %v321_v17  ;;  %628 = vst [vmem:[%s5490_s29 + $0x38] sm:$0xff] %v532_v11 }
  0x73   : > { %v540_v38 = vadd.f32 %v5915_v2, %v5975_v9  ;;  %v6034_v11 = vpack.c.bf16 %v341_v44, %v337_v42 }
  0x74   : > { %632 = vst [vmem:[%s5490_s29 + $0x58] sm:$0xff] %v536_v31  ;;  %631 = vst [vmem:[%s5490_s29 + $0x50] sm:$0xff] %v535_v47  ;;  %v354_v31 = vld [vmem:[%s5419_s27 + $0x158] sm:$0xff]  ;;  %v555_v47 = vadd.f32 %v5925_v58, %v341_v44 }
  0x75   : > { %1723 = vmatpush1.bf16.msra.mxu0 %v4852_v32  ;;  %2027 = vmatpush1.bf16.msra.mxu1 %v4870_v34  ;;  %v5998_v32 = vpack.c.bf16 %v325_v46, %v321_v17  ;;  %v539_v34 = vadd.f32 %v5925_v58, %v325_v46  ;;  %636 = vst [vmem:[%s5490_s29 + $0x78] sm:$0xff] %v540_v38  ;;  %v349_v17 = vld [vmem:[%s5419_s27 + $0x130] sm:$0xff]  ;;  %v358_v38 = vld [vmem:[%s5419_s27 + $0x178] sm:$0xff] }
  0x76   : > { %1724 = vmatprep.subr.bf16.mxu0 %v4860_v40  ;;  %2028 = vmatprep.subr.bf16.mxu1 %v4878_v41  ;;  %v333_v40 = vld [vmem:[%s5419_s27 + $0xb0] sm:$0xff]  ;;  %v338_v41 = vld [vmem:[%s5419_s27 + $0xd8] sm:$0xff]  ;;  %v551_v46 = vadd.f32 %v5925_v58, %v337_v42  ;;  %651 = vst [vmem:[%s5490_s29 + $0xf0] sm:$0xff] %v555_v47  ;;  %v6075_v42 = vpack.c.bf16 %v358_v38, %v354_v31 }
  0x77   : > { %1628 = vmatmul.mubr.bf16.gmra.mrb[16].mxu0 %v423_v45  ;;  %1934 = vmatmul.mubr.bf16.gmra.mrb[16].mxu1 %v423_v45  ;;  %v544_v45 = vadd.f32 %v5915_v2, %v330_v6  ;;  %635 = vst [vmem:[%s5490_s29 + $0x70] sm:$0xff] %v539_v34  ;;  %v547_v0 = vadd.f32 %v5925_v58, %v333_v40  ;;  %v357_v34 = vld [vmem:[%s5419_s27 + $0x170] sm:$0xff] }
  0x78   : > { %1637 = vmatprep.mubr.bf16.mxu0 %v428_v52  ;;  %1943 = vmatprep.mubr.bf16.mxu1 %v428_v52  ;;  %v6011_v52 = vpack.c.bf16 %v333_v40, %v329_v37  ;;  %647 = vst [vmem:[%s5490_s29 + $0xd0] sm:$0xff] %v551_v46  ;;  %v568_v44 = vadd.f32 %v5915_v2, %v354_v31  ;;  %v374_v46 = vld [vmem:[%s5419_s27 + $0x1f8] sm:$0xff]  ;;  %v369_v47 = vld [vmem:[%s5419_s27 + $0x1d0] sm:$0xff] }
  0x79   : > { %1725 = vmatpush1.bf16.msra.mxu0 %v4858_v49  ;;  %2029 = vmatpush1.bf16.msra.mxu1 %v4876_v19  ;;  %v548_v49 = vadd.f32 %v5915_v2, %v334_v29  ;;  %v342_v19 = vld [vmem:[%s5419_s27 + $0xf8] sm:$0xff]  ;;  %640 = vst [vmem:[%s5490_s29 + $0x98] sm:$0xff] %v544_v45  ;;  %643 = vst [vmem:[%s5490_s29 + $0xb0] sm:$0xff] %v547_v0  ;;  %v353_v29 = vld [vmem:[%s5419_s27 + $0x150] sm:$0xff]  ;;  %v571_v31 = vadd.f32 %v5925_v58, %v357_v34 }
  0x7a   : > { %1726 = vmatprep.subr.bf16.mxu0 %v4869_v61  ;;  %2030 = vmatprep.subr.bf16.mxu1 %v4881_v62  ;;  %v4882_v61 = vld [vmem:[%s7144_s1 + $0x360] ss:$16 sps:$4 sm:$0xff]   ;;  %v543_v62 = vadd.f32 %v5925_v58, %v329_v37  ;;  %v6022_v57 = vpack.c.bf16 %v342_v19, %v338_v41  ;;  %v556_v59 = vadd.f32 %v5915_v2, %v342_v19  ;;  %v6069_v45 = vld [vmem:[%s7144_s1 + $0x368] ss:$16 sps:$4 sm:$0xff]  }
  0x7b   : > { %644 = vst [vmem:[%s5490_s29 + $0xb8] sm:$0xff] %v548_v49  ;;  %v563_v19 = vadd.f32 %v5925_v58, %v349_v17  ;;  %v365_v0 = vld [vmem:[%s5419_s27 + $0x1b0] sm:$0xff]  ;;  %664 = vst [vmem:[%s5490_s29 + $0x158] sm:$0xff] %v568_v44 }
  0x7c   : > { %639 = vst [vmem:[%s5490_s29 + $0x90] sm:$0xff] %v543_v62  ;;  %652 = vst [vmem:[%s5490_s29 + $0xf8] sm:$0xff] %v556_v59  ;;  %v361_v62 = vld [vmem:[%s5419_s27 + $0x190] sm:$0xff]  ;;  %v6094_v59 = vpack.c.bf16 %v357_v34, %v353_v29 }
  0x7d   : > { %1727 = vmatpush1.bf16.msra.mxu0 %v4867_v7  ;;  %2031 = vmatpush1.bf16.msra.mxu1 %v4879_v4  ;;  %v346_v7 = vld [vmem:[%s5419_s27 + $0x118] sm:$0xff]  ;;  %659 = vst [vmem:[%s5490_s29 + $0x130] sm:$0xff] %v563_v19  ;;  %667 = vst [vmem:[%s5490_s29 + $0x170] sm:$0xff] %v571_v31  ;;  %v4905_v31 = vld [vmem:[%s7144_s1 + $0x3c4] ss:$16 sps:$4 sm:$0xff]  }
  0x7e   : > { %1728 = vmatprep.subr.bf16.mxu0 %v4875_v18  ;;  %2032 = vmatprep.subr.bf16.mxu1 %v4887_v20  ;;  %v350_v4 = vld [vmem:[%s5419_s27 + $0x138] sm:$0xff]  ;;  %v345_v18 = vld [vmem:[%s5419_s27 + $0x110] sm:$0xff]  ;;  %v552_v20 = vadd.f32 %v5915_v2, %v338_v41 }
  0x7f   : > { %1638 = vmatmul.mubr.bf16.gmra.mrb[20].mxu0 %v427_v16  ;;  %1944 = vmatmul.mubr.bf16.gmra.mrb[20].mxu1 %v427_v16  ;;  %v4890_v16 = vld [vmem:[%s7144_s1 + $0x384] ss:$16 sps:$4 sm:$0xff]   ;;  %v6046_v6 = vpack.c.bf16 %v350_v4, %v346_v7  ;;  %v564_v37 = vadd.f32 %v5915_v2, %v350_v4  ;;  %v6057_v40 = vpack.c.bf16 %v349_v17, %v345_v18  ;;  %v362_v41 = vld [vmem:[%s5419_s27 + $0x198] sm:$0xff] }
  0x80   : > { %1647 = vmatprep.mubr.bf16.mxu0 %v432_v54  ;;  %1953 = vmatprep.mubr.bf16.mxu1 %v432_v54  ;;  %v4891_v54 = vld [vmem:[%s7144_s1 + $0x348] ss:$16 sps:$4 sm:$0xff]   ;;  %648 = vst [vmem:[%s5490_s29 + $0xd8] sm:$0xff] %v552_v20  ;;  %v559_v49 = vadd.f32 %v5925_v58, %v345_v18  ;;  %v6084_v4 = vld [vmem:[%s7144_s1 + $0x3a4] ss:$16 sps:$4 sm:$0xff]   ;;  %v572_v20 = vadd.f32 %v5915_v2, %v358_v38 }
  0x81   : > { %1729 = vmatpush1.bf16.msra.mxu0 %v4873_v23  ;;  %2033 = vmatpush1.bf16.msra.mxu1 %v4885_v24  ;;  %v4896_v23 = vld [vmem:[%s7144_s1 + $0x36c] ss:$16 sps:$4 sm:$0xff]   ;;  %v560_v24 = vadd.f32 %v5915_v2, %v346_v7  ;;  %660 = vst [vmem:[%s5490_s29 + $0x138] sm:$0xff] %v564_v37  ;;  %v567_v17 = vadd.f32 %v5925_v58, %v353_v29 }
  0x82   : > { %1730 = vmatprep.subr.bf16.mxu0 %v4884_v35  ;;  %2034 = vmatprep.subr.bf16.mxu1 %v4893_v30  ;;  %v366_v35 = vld [vmem:[%s5419_s27 + $0x1b8] sm:$0xff]  ;;  %v6064_v30 = vld [vmem:[%s7144_s1 + $0x380] ss:$16 sps:$4 sm:$0xff]   ;;  %655 = vst [vmem:[%s5490_s29 + $0x110] sm:$0xff] %v559_v49  ;;  %v576_v29 = vadd.f32 %v5915_v2, %v362_v41  ;;  %668 = vst [vmem:[%s5490_s29 + $0x178] sm:$0xff] %v572_v20 }
  0x83   : > { %v370_v7 = vld [vmem:[%s5419_s27 + $0x1d8] sm:$0xff]  ;;  %656 = vst [vmem:[%s5490_s29 + $0x118] sm:$0xff] %v560_v24  ;;  %v6104_v38 = vpack.c.bf16 %v366_v35, %v362_v41  ;;  %v580_v34 = vadd.f32 %v5915_v2, %v366_v35  ;;  %663 = vst [vmem:[%s5490_s29 + $0x150] sm:$0xff] %v567_v17  ;;  %v579_v41 = vadd.f32 %v5925_v58, %v365_v0  ;;  %v381_v35 = vld [vmem:[%s5419_s27 + $0x230] sm:$0xff] }
  0x84   : > { %v6089_v18 = vld [vmem:[%s7144_s1 + $0x38c] ss:$16 sps:$4 sm:$0xff]   ;;  %672 = vst [vmem:[%s5490_s29 + $0x198] sm:$0xff] %v576_v29  ;;  %v6131_v44 = vpack.c.bf16 %v374_v46, %v370_v7  ;;  %v389_v20 = vld [vmem:[%s5419_s27 + $0x270] sm:$0xff]  ;;  %v583_v29 = vadd.f32 %v5925_v58, %v369_v47 }
  0x85   : > { %1731 = vmatpush1.bf16.msra.mxu0 %v4882_v61  ;;  %2035 = vmatpush1.bf16.msra.mxu1 %v4891_v54  ;;  %v378_v24 = vld [vmem:[%s5419_s27 + $0x218] sm:$0xff]  ;;  %v6114_v61 = vpack.c.bf16 %v365_v0, %v361_v62  ;;  %v575_v54 = vadd.f32 %v5925_v58, %v361_v62  ;;  %676 = vst [vmem:[%s5490_s29 + $0x1b8] sm:$0xff] %v580_v34  ;;  %v385_v0 = vld [vmem:[%s5419_s27 + $0x250] sm:$0xff]  ;;  %675 = vst [vmem:[%s5490_s29 + $0x1b0] sm:$0xff] %v579_v41 }
  0x86   : > { %v382_v37 = vld [vmem:[%s5419_s27 + $0x238] sm:$0xff]  ;;  %1732 = vmatprep.subr.bf16.mxu0 %v4890_v16  ;;  %2036 = vmatprep.subr.bf16.mxu1 %v4896_v23  ;;  %v4897_v16 = vld [vmem:[%s7144_s1 + $0x3a0] ss:$16 sps:$4 sm:$0xff]   ;;  %v584_v62 = vadd.f32 %v5915_v2, %v370_v7  ;;  %v587_v34 = vadd.f32 %v5925_v58, %v373_v27  ;;  %679 = vst [vmem:[%s5490_s29 + $0x1d0] sm:$0xff] %v583_v29 }
  0x87   : > { %v386_v49 = vld [vmem:[%s5419_s27 + $0x258] sm:$0xff]  ;;  %1648 = vmatmul.mubr.bf16.gmra.mrb[24].mxu0 %v5953_v63  ;;  %1954 = vmatmul.mubr.bf16.gmra.mrb[24].mxu1 %v5953_v63  ;;  %v588_v63 = vadd.f32 %v5915_v2, %v374_v46  ;;  %671 = vst [vmem:[%s5490_s29 + $0x190] sm:$0xff] %v575_v54  ;;  %v6148_v46 = vpack.c.bf16 %v373_v27, %v369_v47 }
  0x88   : > { %v390_v19 = vld [vmem:[%s5419_s27 + $0x278] sm:$0xff]  ;;  %1657 = vmatprep.mubr.bf16.mxu0 %v5957_v8  ;;  %1963 = vmatprep.mubr.bf16.mxu1 %v5957_v8  ;;  %680 = vst [vmem:[%s5490_s29 + $0x1d8] sm:$0xff] %v584_v62  ;;  %v6159_v54 = vpack.c.bf16 %v382_v37, %v378_v24  ;;  %v592_v47 = vadd.f32 %v5915_v2, %v378_v24  ;;  %683 = vst [vmem:[%s5490_s29 + $0x1f0] sm:$0xff] %v587_v34  ;;  %v401_v24 = vld [vmem:[%s5419_s27 + $0x2d0] sm:$0xff] }
  0x89   : > { %v4900_v23 = vld [vmem:[%s7144_s1 + $0x388] ss:$16 sps:$4 sm:$0xff]   ;;  %v4908_v7 = vld [vmem:[%s7144_s1 + $0x3ac] ss:$16 sps:$4 sm:$0xff]   ;;  %1733 = vmatpush1.bf16.msra.mxu0 %v6064_v30  ;;  %2037 = vmatpush1.bf16.msra.mxu1 %v6069_v45  ;;  %684 = vst [vmem:[%s5490_s29 + $0x1f8] sm:$0xff] %v588_v63  ;;  %v596_v27 = vadd.f32 %v5915_v2, %v382_v37  ;;  %v6169_v30 = vpack.c.bf16 %v381_v35, %v377_v50  ;;  %v405_v63 = vld [vmem:[%s5419_s27 + $0x2f0] sm:$0xff] }
  0x8a   : > { %v394_v17 = vld [vmem:[%s5419_s27 + $0x298] sm:$0xff]  ;;  %1734 = vmatprep.subr.bf16.mxu0 %v6084_v4  ;;  %2038 = vmatprep.subr.bf16.mxu1 %v6089_v18  ;;  %v591_v45 = vadd.f32 %v5925_v58, %v377_v50  ;;  %v595_v62 = vadd.f32 %v5925_v58, %v381_v35  ;;  %v4903_v37 = vld [vmem:[%s7144_s1 + $0x3c0] ss:$16 sps:$4 sm:$0xff]   ;;  %688 = vst [vmem:[%s5490_s29 + $0x218] sm:$0xff] %v592_v47 }
  0x8b   : > { %v398_v8 = vld [vmem:[%s5419_s27 + $0x2b8] sm:$0xff]  ;;  %7160 = vst [vmem:[#allocation7_spill] sm:$0xff] %v6169_v30  ;;  %692 = vst [vmem:[%s5490_s29 + $0x238] sm:$0xff] %v596_v27  ;;  %v6183_v18 = vpack.c.bf16 %v390_v19, %v386_v49  ;;  %v600_v50 = vadd.f32 %v5915_v2, %v386_v49  ;;  %v604_v35 = vadd.f32 %v5915_v2, %v390_v19  ;;  %v4914_v30 = vld [vmem:[%s7144_s1 + $0x3e4] ss:$16 sps:$4 sm:$0xff]  }
  0x8c   : > { %v402_v41 = vld [vmem:[%s5419_s27 + $0x2d8] sm:$0xff]  ;;  %v6187_v29 = vpack.c.bf16 %v389_v20, %v385_v0  ;;  %687 = vst [vmem:[%s5490_s29 + $0x210] sm:$0xff] %v591_v45  ;;  %691 = vst [vmem:[%s5490_s29 + $0x230] sm:$0xff] %v595_v62  ;;  %v599_v47 = vadd.f32 %v5925_v58, %v385_v0  ;;  %v603_v49 = vadd.f32 %v5925_v58, %v389_v20 }
  0x8d   : > { %v4906_v4 = vld [vmem:[%s7144_s1 + $0x3a8] ss:$16 sps:$4 sm:$0xff]   ;;  %v4911_v34 = vld [vmem:[%s7144_s1 + $0x3cc] ss:$16 sps:$4 sm:$0xff]   ;;  %v6199_v19 = vpack.c.bf16 %v398_v8, %v394_v17  ;;  %v608_v27 = vadd.f32 %v5915_v2, %v394_v17  ;;  %1735 = vmatpush1.bf16.msra.mxu0 %v4897_v16  ;;  %2039 = vmatpush1.bf16.msra.mxu1 %v4900_v23  ;;  %696 = vst [vmem:[%s5490_s29 + $0x258] sm:$0xff] %v600_v50  ;;  %700 = vst [vmem:[%s5490_s29 + $0x278] sm:$0xff] %v604_v35 }
  0x8e   : > { %7161 = vst [vmem:[#allocation8_spill] sm:$0xff] %v6187_v29  ;;  %v612_v29 = vadd.f32 %v5915_v2, %v398_v8  ;;  %v6205_v45 = vpack.c.bf16 %v397_v51, %v393_v60  ;;  %v607_v62 = vadd.f32 %v5925_v58, %v393_v60  ;;  %1736 = vmatprep.subr.bf16.mxu0 %v4905_v31  ;;  %695 = vst [vmem:[%s5490_s29 + $0x250] sm:$0xff] %v599_v47  ;;  %v4915_v8 = vld [vmem:[%s7144_s1 + $0x3e8] ss:$16 sps:$4 sm:$0xff]   ;;  %v4944_v35 = vld [vmem:[%s7146_s3 + $0x84] ss:$16 sps:$4 sm:$0xff]  }
  0x8f   : > { %2040 = vmatprep.subr.bf16.mxu1 %v4908_v7  ;;  %699 = vst [vmem:[%s5490_s29 + $0x270] sm:$0xff] %v603_v49  ;;  %704 = vst [vmem:[%s5490_s29 + $0x298] sm:$0xff] %v608_v27  ;;  %v611_v16 = vadd.f32 %v5925_v58, %v397_v51  ;;  %v6212_v23 = vpack.c.bf16 %v406_v43, %v402_v41  ;;  %v616_v0 = vadd.f32 %v5915_v2, %v402_v41  ;;  %v4923_v41 = vld [vmem:[%s7146_s3 + $0xc] ss:$16 sps:$4 sm:$0xff]   ;;  %v4939_v50 = vld [vmem:[%s7146_s3 + $0x68] ss:$16 sps:$4 sm:$0xff]  }
  0x90   : > { %1658 = vmatmul.mubr.bf16.gmra.mrb[28].mxu0 %v5961_v10  ;;  %1964 = vmatmul.mubr.bf16.gmra.mrb[28].mxu1 %v5961_v10  ;;  %708 = vst [vmem:[%s5490_s29 + $0x2b8] sm:$0xff] %v612_v29  ;;  %703 = vst [vmem:[%s5490_s29 + $0x290] sm:$0xff] %v607_v62  ;;  %v620_v60 = vadd.f32 %v5915_v2, %v406_v43  ;;  %v6220_v20 = vpack.c.bf16 %v405_v63, %v401_v24  ;;  %v4909_v10 = vld [vmem:[%s7144_s1 + $0x3c8] ss:$16 sps:$4 sm:$0xff]   ;;  %v4912_v43 = vld [vmem:[%s7144_s1 + $0x3e0] ss:$16 sps:$4 sm:$0xff]  }
  0x91   : > { %v615_v17 = vadd.f32 %v5925_v58, %v401_v24  ;;  %1667 = vmatprep.mubr.bf16.mxu0 %v5980_v33  ;;  %1973 = vmatprep.mubr.bf16.mxu1 %v5980_v33  ;;  %707 = vst [vmem:[%s5490_s29 + $0x2b0] sm:$0xff] %v611_v16  ;;  %712 = vst [vmem:[%s5490_s29 + $0x2d8] sm:$0xff] %v616_v0  ;;  %v619_v51 = vadd.f32 %v5925_v58, %v405_v63  ;;  %v4917_v2 = vld [vmem:[%s7144_s1 + $0x3ec] ss:$16 sps:$4 sm:$0xff]   ;;  %v4920_v33 = vld [vmem:[%s7146_s3 + $0x4] ss:$16 sps:$4 sm:$0xff]  }
  0x92   : > { %1737 = vmatpush1.bf16.msra.mxu0 %v4903_v37  ;;  %2041 = vmatpush1.bf16.msra.mxu1 %v4906_v4  ;;  %716 = vst [vmem:[%s5490_s29 + $0x2f8] sm:$0xff] %v620_v60  ;;  %v439_v31 = vpack.c.bf16 %v5765_v22, %v5756_v48  ;;  %v444_v7 = vpack.c.bf16 %v5797_v3, %v5794_v1  ;;  %v4933_v24 = vld [vmem:[%s7146_s3 + $0x48] ss:$16 sps:$4 sm:$0xff]   ;;  %v4938_v63 = vld [vmem:[%s7146_s3 + $0x64] ss:$16 sps:$4 sm:$0xff]  }
  0x93   : > { %711 = vst [vmem:[%s5490_s29 + $0x2d0] sm:$0xff] %v615_v17  ;;  %2042 = vmatprep.subr.bf16.mxu1 %v4911_v34  ;;  %1738 = vmatprep.subr.bf16.mxu0 %v4914_v30  ;;  %715 = vst [vmem:[%s5490_s29 + $0x2f0] sm:$0xff] %v619_v51  ;;  %v443_v48 = vpack.c.bf16 %v5807_v12, %v5804_v5  ;;  %v448_v22 = vpack.c.bf16 %v5843_v25, %v5840_v39  ;;  %v313_v39 = vld [vmem:[%s5419_s27 + $0x10] sm:$0xff]  ;;  %v4941_v37 = vld [vmem:[%s7146_s3 + $0x6c] ss:$16 sps:$4 sm:$0xff]  }
  0x94   : > { %v447_v1 = vpack.c.bf16 %v5853_v14, %v5846_v28  ;;  %v452_v3 = vpack.c.bf16 %v5889_v26, %v5886_v56  ;;  %v451_v5 = vpack.c.bf16 %v5900_v55, %v5897_v53  ;;  %v410_v12 = vpack.c.bf16 %v5947_v21, %v5934_v13  ;;  %v317_v25 = vld [vmem:[%s5419_s27 + $0x30] sm:$0xff]  ;;  %v4921_v56 = vld [vmem:[%s7146_s3 + $0x8] ss:$16 sps:$4 sm:$0xff]   ;;  %v4929_v55 = vld [vmem:[%s7146_s3 + $0x2c] ss:$16 sps:$4 sm:$0xff]  }
  0x95   : > { %v409_v28 = vpack.c.bf16 %v317_v25, %v313_v39  ;;  %v4918_v14 = vld [vmem:[%s7146_s3] ss:$16 sps:$4 sm:$0xff]   ;;  %v414_v26 = vpack.c.bf16 %v5975_v9, %v5972_v15  ;;  %v4926_v53 = vld [vmem:[%s7146_s3 + $0x24] ss:$16 sps:$4 sm:$0xff]   ;;  %v4927_v21 = vld [vmem:[%s7146_s3 + $0x28] ss:$16 sps:$4 sm:$0xff]  }
  0x96   : > { %2043 = vmatpush1.bf16.msra.mxu1 %v4909_v10  ;;  %1739 = vmatpush1.bf16.msra.mxu0 %v4912_v43  ;;  %v4924_v13 = vld [vmem:[%s7146_s3 + $0x20] ss:$16 sps:$4 sm:$0xff]   ;;  %v4932_v15 = vld [vmem:[%s7146_s3 + $0x44] ss:$16 sps:$4 sm:$0xff]   ;;  %v4935_v9 = vld [vmem:[%s7146_s3 + $0x4c] ss:$16 sps:$4 sm:$0xff]  }
  0x97   : > { %2044 = vmatprep.subr.bf16.mxu1 %v4917_v2  ;;  %3175 = vmatprep.subr.bf16.mxu0 %v4920_v33  ;;  %v4930_v30 = vld [vmem:[%s7146_s3 + $0x40] ss:$16 sps:$4 sm:$0xff]   ;;  %v4950_v34 = vld [vmem:[%s7146_s3 + $0xa4] ss:$16 sps:$4 sm:$0xff]   ;;  %v4953_v47 = vld [vmem:[%s7146_s3 + $0xac] ss:$16 sps:$4 sm:$0xff]  }
  0x98   : > { %1668 = vmatmul.mubr.bf16.gmra.mrb[32].mxu0 %v439_v31  ;;  %1974 = vmatmul.mubr.bf16.gmra.mrb[32].mxu1 %v439_v31  ;;  %v4936_v4 = vld [vmem:[%s7146_s3 + $0x60] ss:$16 sps:$4 sm:$0xff]   ;;  %v4951_v27 = vld [vmem:[%s7146_s3 + $0xa8] ss:$16 sps:$4 sm:$0xff]   ;;  %v4962_v0 = vld [vmem:[%s7146_s3 + $0xe4] ss:$16 sps:$4 sm:$0xff]  }
  0x99   : > { %1677 = vmatprep.mubr.bf16.mxu0 %v444_v7  ;;  %1983 = vmatprep.mubr.bf16.mxu1 %v444_v7  ;;  %v4942_v29 = vld [vmem:[%s7146_s3 + $0x80] ss:$16 sps:$4 sm:$0xff]   ;;  %v4957_v16 = vld [vmem:[%s7146_s3 + $0xc8] ss:$16 sps:$4 sm:$0xff]   ;;  %v4965_v60 = vld [vmem:[%s7146_s3 + $0xec] ss:$16 sps:$4 sm:$0xff]  }
  0x9a   : > { %2045 = vmatpush1.bf16.msra.mxu1 %v4915_v8  ;;  %v4948_v49 = vld [vmem:[%s7146_s3 + $0xa0] ss:$16 sps:$4 sm:$0xff]   ;;  %v4963_v51 = vld [vmem:[%s7146_s3 + $0xe8] ss:$16 sps:$4 sm:$0xff]   ;;  %v4974_v2 = vld [vmem:[%s7146_s3 + $0x124] ss:$16 sps:$4 sm:$0xff]  }
  0x9b   : > { %3481 = vmatprep.subr.bf16.mxu1 %v4923_v41  ;;  %v4954_v62 = vld [vmem:[%s7146_s3 + $0xc0] ss:$16 sps:$4 sm:$0xff]   ;;  %v4969_v43 = vld [vmem:[%s7146_s3 + $0x108] ss:$16 sps:$4 sm:$0xff]   ;;  %v4977_v33 = vld [vmem:[%s7146_s3 + $0x12c] ss:$16 sps:$4 sm:$0xff]  }
  0x9c   : > { %v4960_v17 = vld [vmem:[%s7146_s3 + $0xe0] ss:$16 sps:$4 sm:$0xff]   ;;  %v4975_v7 = vld [vmem:[%s7146_s3 + $0x128] ss:$16 sps:$4 sm:$0xff]   ;;  %v4998_v39 = vld [vmem:[%s7146_s3 + $0x1a4] ss:$16 sps:$4 sm:$0xff]  }
  0x9d   : > { %v4966_v10 = vld [vmem:[%s7146_s3 + $0x100] ss:$16 sps:$4 sm:$0xff]   ;;  %v4981_v41 = vld [vmem:[%s7146_s3 + $0x148] ss:$16 sps:$4 sm:$0xff]   ;;  %v5001_v25 = vld [vmem:[%s7146_s3 + $0x1ac] ss:$16 sps:$4 sm:$0xff]  }
  0x9e   : > { %v4972_v31 = vld [vmem:[%s7146_s3 + $0x120] ss:$16 sps:$4 sm:$0xff]  }
  0x9f   : > { %v4978_v8 = vld [vmem:[%s7146_s3 + $0x140] ss:$16 sps:$4 sm:$0xff]  }
  0xa0   : > { %1678 = vmatmul.mubr.bf16.gmra.mrb[36].mxu0 %v443_v48  ;;  %1984 = vmatmul.mubr.bf16.gmra.mrb[36].mxu1 %v443_v48  ;;  %v4986_v48 = vld [vmem:[%s7146_s3 + $0x164] ss:$16 sps:$4 sm:$0xff]  }
  0xa1   : > { %1687 = vmatprep.mubr.bf16.mxu0 %v448_v22  ;;  %1993 = vmatprep.mubr.bf16.mxu1 %v448_v22  ;;  %v4989_v22 = vld [vmem:[%s7146_s3 + $0x16c] ss:$16 sps:$4 sm:$0xff]  }
  0xa8   : > { %1688 = vmatmul.mubr.bf16.gmra.mrb[40].mxu0 %v447_v1  ;;  %1994 = vmatmul.mubr.bf16.gmra.mrb[40].mxu1 %v447_v1  ;;  %v4984_v1 = vld [vmem:[%s7146_s3 + $0x160] ss:$16 sps:$4 sm:$0xff]  }
  0xa9   : > { %1697 = vmatprep.mubr.bf16.mxu0 %v452_v3  ;;  %2003 = vmatprep.mubr.bf16.mxu1 %v452_v3  ;;  %v4987_v3 = vld [vmem:[%s7146_s3 + $0x168] ss:$16 sps:$4 sm:$0xff]  }
  0xb0   : > { %1698 = vmatmul.mubr.bf16.gmra.mrb[44].mxu0 %v451_v5  ;;  %2004 = vmatmul.mubr.bf16.gmra.mrb[44].mxu1 %v451_v5  ;;  %v4990_v5 = vld [vmem:[%s7146_s3 + $0x180] ss:$16 sps:$4 sm:$0xff]  }
  0xb1   : > { %1740 = vmatprep.mubr.bf16.mxu0 %v410_v12  ;;  %2046 = vmatprep.mubr.bf16.mxu1 %v410_v12  ;;  %v4993_v12 = vld [vmem:[%s7146_s3 + $0x188] ss:$16 sps:$4 sm:$0xff]  }
  0xb8   : > { %1741 = vmatmul.mubr.bf16.vlgmr.msra.gmra.mrb[0].mxu0 %v409_v28  ;;  %2047 = vmatmul.mubr.bf16.vlgmr.msra.gmra.mrb[0].mxu1 %v409_v28  ;;  %v4996_v28 = vld [vmem:[%s7146_s3 + $0x1a0] ss:$16 sps:$4 sm:$0xff]  }
  0xb9   : > { %1750 = vmatprep.mubr.bf16.mxu0 %v414_v26  ;;  %2056 = vmatprep.mubr.bf16.mxu1 %v414_v26  ;;  %v5005_v26 = vld [vmem:[%s7146_s3 + $0x1c8] ss:$16 sps:$4 sm:$0xff]  }
  0xba   : > { %3176 = vmatpush1.bf16.msra.mxu0 %v4918_v14  ;;  %3482 = vmatpush1.bf16.msra.mxu1 %v4921_v56  ;;  %v4999_v14 = vld [vmem:[%s7146_s3 + $0x1a8] ss:$16 sps:$4 sm:$0xff]   ;;  %v5002_v56 = vld [vmem:[%s7146_s3 + $0x1c0] ss:$16 sps:$4 sm:$0xff]  }
  0xbb   : > { %3177 = vmatprep.subr.bf16.mxu0 %v4926_v53  ;;  %3483 = vmatprep.subr.bf16.mxu1 %v4929_v55  ;;  %v7162_v53 = vld [vmem:[#allocation7_spill] sm:$0xff]  ;;  %v7163_v55 = vld [vmem:[#allocation8_spill] sm:$0xff] }
  0xbe   : > { %3178 = vmatpush1.bf16.msra.mxu0 %v4924_v13  ;;  %3484 = vmatpush1.bf16.msra.mxu1 %v4927_v21  ;;  %v7164_v13 = vld [vmem:[#allocation6_spill] sm:$0xff] }
  0xbf   : > { %3179 = vmatprep.subr.bf16.mxu0 %v4932_v15  ;;  %3485 = vmatprep.subr.bf16.mxu1 %v4935_v9  ;;  %v7165_v21 = vsub.s32 0, %v7164_v13  ;;  %v7166_v9 = vsub.s32 2, %v7164_v13 }
  0xc0   : > { %1751 = vmatmul.mubr.bf16.gmra.mrb[4].mxu0 %v5998_v32  ;;  %2057 = vmatmul.mubr.bf16.gmra.mrb[4].mxu1 %v5998_v32  ;;  %v4947_v32 = vld [vmem:[%s7146_s3 + $0x8c] ss:$16 sps:$4 sm:$0xff]  }
  0xc1   : > { %1760 = vmatprep.mubr.bf16.mxu0 %v6001_v36  ;;  %2066 = vmatprep.mubr.bf16.mxu1 %v6001_v36  ;;  %v4945_v36 = vld [vmem:[%s7146_s3 + $0x88] ss:$16 sps:$4 sm:$0xff]  }
  0xc2   : > { %3180 = vmatpush1.bf16.msra.mxu0 %v4930_v30  ;;  %3486 = vmatpush1.bf16.msra.mxu1 %v4933_v24  ;;  %v7167_v24 = vsub.s32 1, %v7164_v13 }
  0xc3   : > { %3181 = vmatprep.subr.bf16.mxu0 %v4938_v63  ;;  %3487 = vmatprep.subr.bf16.mxu1 %v4941_v37  ;;  %v7168_v37 = vsub.s32 3, %v7164_v13 }
  0xc6   : > { %3182 = vmatpush1.bf16.msra.mxu0 %v4936_v4  ;;  %3488 = vmatpush1.bf16.msra.mxu1 %v4939_v50 }
  0xc7   : > { %3183 = vmatprep.subr.bf16.mxu0 %v4944_v35  ;;  %3489 = vmatprep.subr.bf16.mxu1 %v4947_v32 }
  0xc8   : > { %1761 = vmatmul.mubr.bf16.gmra.mrb[8].mxu0 %v6011_v52  ;;  %2067 = vmatmul.mubr.bf16.gmra.mrb[8].mxu1 %v6011_v52  ;;  %v4956_v52 = vld [vmem:[%s7146_s3 + $0xc4] ss:$16 sps:$4 sm:$0xff]  }
  0xc9   : > { %1770 = vmatprep.mubr.bf16.mxu0 %v6022_v57  ;;  %2076 = vmatprep.mubr.bf16.mxu1 %v6022_v57  ;;  %v4959_v57 = vld [vmem:[%s7146_s3 + $0xcc] ss:$16 sps:$4 sm:$0xff]  }
  0xca   : > { %3184 = vmatpush1.bf16.msra.mxu0 %v4942_v29  ;;  %3490 = vmatpush1.bf16.msra.mxu1 %v4945_v36 }
  0xcb   : > { %3185 = vmatprep.subr.bf16.mxu0 %v4950_v34  ;;  %3491 = vmatprep.subr.bf16.mxu1 %v4953_v47 }
  0xce   : > { %3186 = vmatpush1.bf16.msra.mxu0 %v4948_v49  ;;  %3492 = vmatpush1.bf16.msra.mxu1 %v4951_v27 }
  0xcf   : > { %3187 = vmatprep.subr.bf16.mxu0 %v4956_v52  ;;  %3493 = vmatprep.subr.bf16.mxu1 %v4959_v57 }
  0xd0   : > { %1771 = vmatmul.mubr.bf16.gmra.mrb[12].mxu0 %v6034_v11  ;;  %2077 = vmatmul.mubr.bf16.gmra.mrb[12].mxu1 %v6034_v11  ;;  %v4968_v11 = vld [vmem:[%s7146_s3 + $0x104] ss:$16 sps:$4 sm:$0xff]  }
  0xd1   : > { %1780 = vmatprep.mubr.bf16.mxu0 %v6046_v6  ;;  %2086 = vmatprep.mubr.bf16.mxu1 %v6046_v6  ;;  %v4971_v6 = vld [vmem:[%s7146_s3 + $0x10c] ss:$16 sps:$4 sm:$0xff]  }
  0xd2   : > { %3188 = vmatpush1.bf16.msra.mxu0 %v4954_v62  ;;  %3494 = vmatpush1.bf16.msra.mxu1 %v4957_v16 }
  0xd3   : > { %3189 = vmatprep.subr.bf16.mxu0 %v4962_v0  ;;  %3495 = vmatprep.subr.bf16.mxu1 %v4965_v60 }
  0xd6   : > { %3190 = vmatpush1.bf16.msra.mxu0 %v4960_v17  ;;  %3496 = vmatpush1.bf16.msra.mxu1 %v4963_v51 }
  0xd7   : > { %3191 = vmatprep.subr.bf16.mxu0 %v4968_v11  ;;  %3497 = vmatprep.subr.bf16.mxu1 %v4971_v6 }
  0xd8   : > { %1781 = vmatmul.mubr.bf16.gmra.mrb[16].mxu0 %v6057_v40  ;;  %2087 = vmatmul.mubr.bf16.gmra.mrb[16].mxu1 %v6057_v40  ;;  %v4980_v40 = vld [vmem:[%s7146_s3 + $0x144] ss:$16 sps:$4 sm:$0xff]  }
  0xd9   : > { %1790 = vmatprep.mubr.bf16.mxu0 %v6075_v42  ;;  %2096 = vmatprep.mubr.bf16.mxu1 %v6075_v42  ;;  %v4983_v42 = vld [vmem:[%s7146_s3 + $0x14c] ss:$16 sps:$4 sm:$0xff]  }
  0xda   : > { %3192 = vmatpush1.bf16.msra.mxu0 %v4966_v10  ;;  %3498 = vmatpush1.bf16.msra.mxu1 %v4969_v43 }
  0xdb   : > { %3193 = vmatprep.subr.bf16.mxu0 %v4974_v2  ;;  %3499 = vmatprep.subr.bf16.mxu1 %v4977_v33 }
  0xde   : > { %3194 = vmatpush1.bf16.msra.mxu0 %v4972_v31  ;;  %3500 = vmatpush1.bf16.msra.mxu1 %v4975_v7 }
  0xdf   : > { %3195 = vmatprep.subr.bf16.mxu0 %v4980_v40  ;;  %3501 = vmatprep.subr.bf16.mxu1 %v4983_v42 }
  0xe0   : > { %1791 = vmatmul.mubr.bf16.gmra.mrb[20].mxu0 %v6094_v59  ;;  %2097 = vmatmul.mubr.bf16.gmra.mrb[20].mxu1 %v6094_v59  ;;  %v4992_v59 = vld [vmem:[%s7146_s3 + $0x184] ss:$16 sps:$4 sm:$0xff]  }
  0xe1   : > { %1800 = vmatprep.mubr.bf16.mxu0 %v6104_v38  ;;  %2106 = vmatprep.mubr.bf16.mxu1 %v6104_v38  ;;  %v4995_v38 = vld [vmem:[%s7146_s3 + $0x18c] ss:$16 sps:$4 sm:$0xff]  }
  0xe2   : > { %3196 = vmatpush1.bf16.msra.mxu0 %v4978_v8  ;;  %3502 = vmatpush1.bf16.msra.mxu1 %v4981_v41 }
  0xe3   : > { %3197 = vmatprep.subr.bf16.mxu0 %v4986_v48  ;;  %3503 = vmatprep.subr.bf16.mxu1 %v4989_v22  ;;  %v5014_v22 = vld [vmem:[%s7146_s3 + $0x200] ss:$16 sps:$4 sm:$0xff]  }
  0xe6   : > { %3198 = vmatpush1.bf16.msra.mxu0 %v4984_v1  ;;  %3504 = vmatpush1.bf16.msra.mxu1 %v4987_v3  ;;  %v5017_v1 = vld [vmem:[%s7146_s3 + $0x208] ss:$16 sps:$4 sm:$0xff]  }
  0xe7   : > { %3199 = vmatprep.subr.bf16.mxu0 %v4992_v59  ;;  %3505 = vmatprep.subr.bf16.mxu1 %v4995_v38 }
  0xe8   : > { %1801 = vmatmul.mubr.bf16.gmra.mrb[24].mxu0 %v6114_v61  ;;  %2107 = vmatmul.mubr.bf16.gmra.mrb[24].mxu1 %v6114_v61  ;;  %v5004_v61 = vld [vmem:[%s7146_s3 + $0x1c4] ss:$16 sps:$4 sm:$0xff]  }
  0xe9   : > { %1810 = vmatprep.mubr.bf16.mxu0 %v6131_v44  ;;  %2116 = vmatprep.mubr.bf16.mxu1 %v6131_v44  ;;  %v5007_v44 = vld [vmem:[%s7146_s3 + $0x1cc] ss:$16 sps:$4 sm:$0xff]  }
  0xea   : > { %3200 = vmatpush1.bf16.msra.mxu0 %v4990_v5  ;;  %3506 = vmatpush1.bf16.msra.mxu1 %v4993_v12  ;;  %v5022_v12 = vld [vmem:[%s7146_s3 + $0x224] ss:$16 sps:$4 sm:$0xff]  }
  0xeb   : > { %3201 = vmatprep.subr.bf16.mxu0 %v4998_v39  ;;  %3507 = vmatprep.subr.bf16.mxu1 %v5001_v25  ;;  %v5025_v39 = vld [vmem:[%s7146_s3 + $0x22c] ss:$16 sps:$4 sm:$0xff]  }
  0xee   : > { %3202 = vmatpush1.bf16.msra.mxu0 %v4996_v28  ;;  %3508 = vmatpush1.bf16.msra.mxu1 %v4999_v14 }
  0xef   : > { %3203 = vmatprep.subr.bf16.mxu0 %v5004_v61  ;;  %3509 = vmatprep.subr.bf16.mxu1 %v5007_v44 }
  0xf0   : > { %1811 = vmatmul.mubr.bf16.gmra.mrb[28].mxu0 %v6148_v46  ;;  %2117 = vmatmul.mubr.bf16.gmra.mrb[28].mxu1 %v6148_v46  ;;  %v5010_v46 = vld [vmem:[%s7146_s3 + $0x1e4] ss:$16 sps:$4 sm:$0xff]  }
  0xf1   : > { %1820 = vmatprep.mubr.bf16.mxu0 %v6159_v54  ;;  %2126 = vmatprep.mubr.bf16.mxu1 %v6159_v54  ;;  %v5013_v54 = vld [vmem:[%s7146_s3 + $0x1ec] ss:$16 sps:$4 sm:$0xff]  }
  0xf2   : > { %3204 = vmatpush1.bf16.msra.mxu0 %v5002_v56  ;;  %3510 = vmatpush1.bf16.msra.mxu1 %v5005_v26 }
  0xf3   : > { %3205 = vmatprep.subr.bf16.mxu0 %v5010_v46  ;;  %3511 = vmatprep.subr.bf16.mxu1 %v5013_v54  ;;  %v5020_v54 = vld [vmem:[%s7146_s3 + $0x220] ss:$16 sps:$4 sm:$0xff]  }
  0xf8   : > { %1821 = vmatmul.mubr.bf16.gmra.mrb[32].mxu0 %v7162_v53  ;;  %2127 = vmatmul.mubr.bf16.gmra.mrb[32].mxu1 %v7162_v53 }
  0xf9   : > { %1830 = vmatprep.mubr.bf16.mxu0 %v6183_v18  ;;  %2136 = vmatprep.mubr.bf16.mxu1 %v6183_v18  ;;  %v5008_v18 = vld [vmem:[%s7146_s3 + $0x1e0] ss:$16 sps:$4 sm:$0xff]  }
  0xfa   : > { %3206 = vmatpush1.bf16.msra.mxu0 %v5008_v18  ;;  %v5023_v18 = vld [vmem:[%s7146_s3 + $0x228] ss:$16 sps:$4 sm:$0xff]  }
 0x100   : > { %1831 = vmatmul.mubr.bf16.gmra.mrb[36].mxu0 %v7163_v55  ;;  %2137 = vmatmul.mubr.bf16.gmra.mrb[36].mxu1 %v7163_v55 }
 0x101   : > { %1840 = vmatprep.mubr.bf16.mxu0 %v6199_v19  ;;  %2146 = vmatprep.mubr.bf16.mxu1 %v6199_v19  ;;  %v5011_v19 = vld [vmem:[%s7146_s3 + $0x1e8] ss:$16 sps:$4 sm:$0xff]  }
 0x102   : > { %3512 = vmatpush1.bf16.msra.mxu1 %v5011_v19  ;;  %v5028_v19 = vld [vmem:[%s7146_s3 + $0x244] ss:$16 sps:$4 sm:$0xff]  }
 0x108   : > { %1841 = vmatmul.mubr.bf16.gmra.mrb[40].mxu0 %v6205_v45  ;;  %2147 = vmatmul.mubr.bf16.gmra.mrb[40].mxu1 %v6205_v45  ;;  %v5016_v45 = vld [vmem:[%s7146_s3 + $0x204] ss:$16 sps:$4 sm:$0xff]  }
 0x109   : > { %1850 = vmatprep.mubr.bf16.mxu0 %v6212_v23  ;;  %2156 = vmatprep.mubr.bf16.mxu1 %v6212_v23  ;;  %v5019_v23 = vld [vmem:[%s7146_s3 + $0x20c] ss:$16 sps:$4 sm:$0xff]  }
 0x10a   : > { %3328 = vmatprep.subr.bf16.mxu0 %v5016_v45  ;;  %3634 = vmatprep.subr.bf16.mxu1 %v5019_v23 }
 0x110   : > { %1851 = vmatmul.mubr.bf16.gmra.mrb[44].mxu0 %v6220_v20  ;;  %2157 = vmatmul.mubr.bf16.gmra.mrb[44].mxu1 %v6220_v20  ;;  %v893_v20 = vld [vmem:[%s7145_s2] sm:$0xf] }
 0x111   : > { %v6508_v15 = vrot.slane %v893_v20, %v7165_v21  ;;  %v6512_v30 = vrot.slane %v893_v20, %v7166_v9  ;;  %v6516_v63 = vrot.slane %v893_v20, %v7167_v24  ;;  %v6520_v4 = vrot.slane %v893_v20, %v7168_v37  ;;  %v5031_v21 = vld [vmem:[%s7146_s3 + $0x24c] ss:$16 sps:$4 sm:$0xff]  }
 0x18b   : > { %v1742_v50 = vpop.f32.mrb[0].mxu0  ;;  %v2048_v35 = vpop.f32.mrb[0].mxu1 }
 0x18c   : > { %v4380_v32 = vadd.f32 %v1742_v50, %v6508_v15  ;;  %v4428_v29 = vadd.f32 %v2048_v35, %v6512_v30  ;;  %v1744_v36 = vpop.f32.mrb[1].mxu0  ;;  %v2050_v34 = vpop.f32.mrb[1].mxu1 }
 0x18d   : > { %v4381_v47 = vadd.f32 %v1744_v36, %v6516_v63  ;;  %v4429_v49 = vadd.f32 %v2050_v34, %v6520_v4  ;;  %v1746_v27 = vpop.f32.mrb[2].mxu0  ;;  %v2052_v52 = vpop.f32.mrb[2].mxu1 }
 0x18e   : > { %v4382_v57 = vadd.f32 %v1746_v27, %v6508_v15  ;;  %v4430_v62 = vadd.f32 %v2052_v52, %v6512_v30  ;;  %v1748_v16 = vpop.f32.mrb[3].mxu0  ;;  %v2054_v0 = vpop.f32.mrb[3].mxu1  ;;  %v2167_v51 = vmax.f32 %v4380_v32, 0.0  ;;  %v2169_v11 = vmax.f32 %v4428_v29, 0.0  ;;  %v5029_v27 = vld [vmem:[%s7146_s3 + $0x248] ss:$16 sps:$4 sm:$0xff]  }
 0x18f   : > { %v4383_v60 = vadd.f32 %v1748_v16, %v6516_v63  ;;  %v4431_v17 = vadd.f32 %v2054_v0, %v6520_v4  ;;  %v2168_v43 = vmax.f32 %v4381_v47, 0.0  ;;  %v2170_v2 = vmax.f32 %v4429_v49, 0.0  ;;  %v5026_v49 = vld [vmem:[%s7146_s3 + $0x240] ss:$16 sps:$4 sm:$0xff]   ;;  %v5034_v0 = vld [vmem:[%s7146_s3 + $0x264] ss:$16 sps:$4 sm:$0xff]  }
 0x190   : > { %v2171_v6 = vmax.f32 %v4382_v57, 0.0  ;;  %v2173_v10 = vmax.f32 %v4430_v62, 0.0 }
 0x191   : > { %v2172_v33 = vmax.f32 %v4383_v60, 0.0  ;;  %v2174_v31 = vmax.f32 %v4431_v17, 0.0  ;;  %v5037_v60 = vld [vmem:[%s7146_s3 + $0x26c] ss:$16 sps:$4 sm:$0xff]  }
 0x192   : > { %v2359_v7 = vpack.c.bf16 %v2171_v6, %v2167_v51  ;;  %v6530_v40 = vpack.c.bf16 %v2173_v10, %v2169_v11 }
 0x193   : > { %v2360_v42 = vpack.c.bf16 %v2172_v33, %v2168_v43  ;;  %v6532_v8 = vpack.c.bf16 %v2174_v31, %v2170_v2  ;;  %v1752_v41 = vpop.f32.mrb[4].mxu0  ;;  %v2058_v48 = vpop.f32.mrb[4].mxu1 }
 0x194   : > { %v4384_v3 = vadd.f32 %v1752_v41, %v6508_v15  ;;  %v4432_v59 = vadd.f32 %v2058_v48, %v6512_v30  ;;  %v1754_v38 = vpop.f32.mrb[5].mxu0  ;;  %v2060_v5 = vpop.f32.mrb[5].mxu1  ;;  %v5035_v41 = vld [vmem:[%s7146_s3 + $0x268] ss:$16 sps:$4 sm:$0xff]   ;;  %v5040_v48 = vld [vmem:[%s7146_s3 + $0x284] ss:$16 sps:$4 sm:$0xff]  }
 0x195   : > { %v4385_v25 = vadd.f32 %v1754_v38, %v6516_v63  ;;  %v4433_v28 = vadd.f32 %v2060_v5, %v6520_v4  ;;  %v1756_v14 = vpop.f32.mrb[6].mxu0  ;;  %v2062_v61 = vpop.f32.mrb[6].mxu1  ;;  %3207 = vmatprep.mubr.bf16.mxu0 %v2360_v42  ;;  %3513 = vmatprep.mubr.bf16.mxu1 %v2360_v42  ;;  %v5032_v42 = vld [vmem:[%s7146_s3 + $0x260] ss:$16 sps:$4 sm:$0xff]   ;;  %v5043_v38 = vld [vmem:[%s7146_s3 + $0x28c] ss:$16 sps:$4 sm:$0xff]  }
 0x196   : > { %v4386_v44 = vadd.f32 %v1756_v14, %v6508_v15  ;;  %v4434_v56 = vadd.f32 %v2062_v61, %v6512_v30  ;;  %v1758_v26 = vpop.f32.mrb[7].mxu0  ;;  %v2064_v53 = vpop.f32.mrb[7].mxu1  ;;  %3208 = vmatmul.mubr.bf16.vlgmr.msra.gmra.mrb[48].mxu0 %v2359_v7  ;;  %3514 = vmatmul.mubr.bf16.vlgmr.msra.gmra.mrb[48].mxu1 %v2359_v7  ;;  %v2175_v45 = vmax.f32 %v4384_v3, 0.0  ;;  %v2177_v23 = vmax.f32 %v4432_v59, 0.0 }
 0x197   : > { %v4387_v55 = vadd.f32 %v1758_v26, %v6516_v63  ;;  %v4435_v46 = vadd.f32 %v2064_v53, %v6520_v4  ;;  %3329 = vmatpush1.bf16.msra.mxu0 %v5014_v22  ;;  %3635 = vmatpush1.bf16.msra.mxu1 %v5017_v1  ;;  %v2176_v9 = vmax.f32 %v4385_v25, 0.0  ;;  %v2178_v24 = vmax.f32 %v4433_v28, 0.0  ;;  %v5038_v53 = vld [vmem:[%s7146_s3 + $0x280] ss:$16 sps:$4 sm:$0xff]  }
 0x198   : > { %v2179_v20 = vmax.f32 %v4386_v44, 0.0  ;;  %v2181_v13 = vmax.f32 %v4434_v56, 0.0  ;;  %3330 = vmatprep.subr.bf16.mxu0 %v5022_v12  ;;  %3636 = vmatprep.subr.bf16.mxu1 %v5025_v39 }
 0x199   : > { %v2180_v37 = vmax.f32 %v4387_v55, 0.0  ;;  %v2182_v50 = vmax.f32 %v4435_v46, 0.0  ;;  %v5041_v55 = vld [vmem:[%s7146_s3 + $0x288] ss:$16 sps:$4 sm:$0xff]  }
 0x19a   : > { %v2363_v35 = vpack.c.bf16 %v2179_v20, %v2175_v45  ;;  %v6566_v32 = vpack.c.bf16 %v2181_v13, %v2177_v23  ;;  %v5046_v45 = vld [vmem:[%s7146_s3 + $0x2a4] ss:$16 sps:$4 sm:$0xff]   ;;  %v5049_v23 = vld [vmem:[%s7146_s3 + $0x2ac] ss:$16 sps:$4 sm:$0xff]  }
 0x19b   : > { %v2364_v29 = vpack.c.bf16 %v2180_v37, %v2176_v9  ;;  %v6568_v36 = vpack.c.bf16 %v2182_v50, %v2178_v24  ;;  %v1762_v34 = vpop.f32.mrb[8].mxu0  ;;  %v2068_v47 = vpop.f32.mrb[8].mxu1  ;;  %3331 = vmatpush1.bf16.msra.mxu0 %v5020_v54  ;;  %3637 = vmatpush1.bf16.msra.mxu1 %v5023_v18 }
 0x19c   : > { %v4388_v52 = vadd.f32 %v1762_v34, %v6508_v15  ;;  %v4436_v57 = vadd.f32 %v2068_v47, %v6512_v30  ;;  %v1764_v62 = vpop.f32.mrb[9].mxu0  ;;  %v2070_v16 = vpop.f32.mrb[9].mxu1  ;;  %3332 = vmatprep.subr.bf16.mxu0 %v5028_v19  ;;  %3638 = vmatprep.subr.bf16.mxu1 %v5031_v21  ;;  %v5044_v47 = vld [vmem:[%s7146_s3 + $0x2a0] ss:$16 sps:$4 sm:$0xff]  }
 0x19d   : > { %v4389_v17 = vadd.f32 %v1764_v62, %v6516_v63  ;;  %v4437_v51 = vadd.f32 %v2070_v16, %v6520_v4  ;;  %v1766_v11 = vpop.f32.mrb[10].mxu0  ;;  %v2072_v6 = vpop.f32.mrb[10].mxu1  ;;  %3217 = vmatprep.mubr.bf16.mxu0 %v2364_v29  ;;  %3523 = vmatprep.mubr.bf16.mxu1 %v2364_v29 }
 0x19e   : > { %v4390_v10 = vadd.f32 %v1766_v11, %v6508_v15  ;;  %v4438_v43 = vadd.f32 %v2072_v6, %v6512_v30  ;;  %v1768_v2 = vpop.f32.mrb[11].mxu0  ;;  %v2074_v33 = vpop.f32.mrb[11].mxu1  ;;  %3218 = vmatmul.mubr.bf16.gmra.mrb[52].mxu0 %v2363_v35  ;;  %3524 = vmatmul.mubr.bf16.gmra.mrb[52].mxu1 %v2363_v35  ;;  %v2183_v22 = vmax.f32 %v4388_v52, 0.0  ;;  %v2185_v1 = vmax.f32 %v4436_v57, 0.0 }
 0x19f   : > { %v4391_v31 = vadd.f32 %v1768_v2, %v6516_v63  ;;  %v4439_v7 = vadd.f32 %v2074_v33, %v6520_v4  ;;  %3333 = vmatpush1.bf16.msra.mxu0 %v5026_v49  ;;  %3639 = vmatpush1.bf16.msra.mxu1 %v5029_v27  ;;  %v2184_v5 = vmax.f32 %v4389_v17, 0.0  ;;  %v2186_v12 = vmax.f32 %v4437_v51, 0.0  ;;  %v5047_v49 = vld [vmem:[%s7146_s3 + $0x2a8] ss:$16 sps:$4 sm:$0xff]   ;;  %v5052_v27 = vld [vmem:[%s7146_s3 + $0x2c4] ss:$16 sps:$4 sm:$0xff]  }
 0x1a0   : > { %v2187_v3 = vmax.f32 %v4390_v10, 0.0  ;;  %v2189_v59 = vmax.f32 %v4438_v43, 0.0  ;;  %3334 = vmatprep.subr.bf16.mxu0 %v5034_v0  ;;  %3640 = vmatprep.subr.bf16.mxu1 %v5037_v60  ;;  %v5055_v0 = vld [vmem:[%s7146_s3 + $0x2cc] ss:$16 sps:$4 sm:$0xff]  }
 0x1a1   : > { %v2188_v39 = vmax.f32 %v4391_v31, 0.0  ;;  %v2190_v25 = vmax.f32 %v4439_v7, 0.0  ;;  %v5050_v7 = vld [vmem:[%s7146_s3 + $0x2c0] ss:$16 sps:$4 sm:$0xff]  }
 0x1a2   : > { %v2367_v28 = vpack.c.bf16 %v2187_v3, %v2183_v22  ;;  %v6602_v14 = vpack.c.bf16 %v2189_v59, %v2185_v1  ;;  %v5058_v3 = vld [vmem:[%s7146_s3 + $0x2e4] ss:$16 sps:$4 sm:$0xff]   ;;  %v5061_v59 = vld [vmem:[%s7146_s3 + $0x2ec] ss:$16 sps:$4 sm:$0xff]  }
 0x1a3   : > { %v2368_v61 = vpack.c.bf16 %v2188_v39, %v2184_v5  ;;  %v6604_v44 = vpack.c.bf16 %v2190_v25, %v2186_v12  ;;  %v1772_v56 = vpop.f32.mrb[12].mxu0  ;;  %v2078_v26 = vpop.f32.mrb[12].mxu1  ;;  %3335 = vmatpush1.bf16.msra.mxu0 %v5032_v42  ;;  %3641 = vmatpush1.bf16.msra.mxu1 %v5035_v41  ;;  %v5053_v42 = vld [vmem:[%s7146_s3 + $0x2c8] ss:$16 sps:$4 sm:$0xff]  }
 0x1a4   : > { %v4392_v46 = vadd.f32 %v1772_v56, %v6508_v15  ;;  %v4440_v54 = vadd.f32 %v2078_v26, %v6512_v30  ;;  %v1774_v18 = vpop.f32.mrb[13].mxu0  ;;  %v2080_v19 = vpop.f32.mrb[13].mxu1  ;;  %3336 = vmatprep.subr.bf16.mxu0 %v5040_v48  ;;  %3642 = vmatprep.subr.bf16.mxu1 %v5043_v38 }
 0x1a5   : > { %v4393_v20 = vadd.f32 %v1774_v18, %v6516_v63  ;;  %v4441_v13 = vadd.f32 %v2080_v19, %v6520_v4  ;;  %v1776_v21 = vpop.f32.mrb[14].mxu0  ;;  %v2082_v9 = vpop.f32.mrb[14].mxu1  ;;  %3227 = vmatprep.mubr.bf16.mxu0 %v2368_v61  ;;  %3533 = vmatprep.mubr.bf16.mxu1 %v2368_v61 }
 0x1a6   : > { %v4394_v24 = vadd.f32 %v1776_v21, %v6508_v15  ;;  %v4442_v37 = vadd.f32 %v2082_v9, %v6512_v30  ;;  %v1778_v50 = vpop.f32.mrb[15].mxu0  ;;  %v2084_v35 = vpop.f32.mrb[15].mxu1  ;;  %3228 = vmatmul.mubr.bf16.gmra.mrb[56].mxu0 %v2367_v28  ;;  %3534 = vmatmul.mubr.bf16.gmra.mrb[56].mxu1 %v2367_v28  ;;  %v2191_v52 = vmax.f32 %v4392_v46, 0.0  ;;  %v2193_v57 = vmax.f32 %v4440_v54, 0.0  ;;  %v5059_v46 = vld [vmem:[%s7146_s3 + $0x2e8] ss:$16 sps:$4 sm:$0xff]  }
 0x1a7   : > { %v4395_v29 = vadd.f32 %v1778_v50, %v6516_v63  ;;  %v4443_v34 = vadd.f32 %v2084_v35, %v6520_v4  ;;  %3337 = vmatpush1.bf16.msra.mxu0 %v5038_v53  ;;  %3643 = vmatpush1.bf16.msra.mxu1 %v5041_v55  ;;  %v2192_v60 = vmax.f32 %v4393_v20, 0.0  ;;  %v2194_v17 = vmax.f32 %v4441_v13, 0.0  ;;  %v5056_v55 = vld [vmem:[%s7146_s3 + $0x2e0] ss:$16 sps:$4 sm:$0xff]   ;;  %v5064_v54 = vld [vmem:[%s7146_s3 + $0x304] ss:$16 sps:$4 sm:$0xff]  }
 0x1a8   : > { %v2195_v62 = vmax.f32 %v4394_v24, 0.0  ;;  %v2197_v16 = vmax.f32 %v4442_v37, 0.0  ;;  %3338 = vmatprep.subr.bf16.mxu0 %v5046_v45  ;;  %3644 = vmatprep.subr.bf16.mxu1 %v5049_v23  ;;  %v5067_v20 = vld [vmem:[%s7146_s3 + $0x30c] ss:$16 sps:$4 sm:$0xff]  }
 0x1a9   : > { %v2196_v51 = vmax.f32 %v4395_v29, 0.0  ;;  %v2198_v11 = vmax.f32 %v4443_v34, 0.0 }
 0x1aa   : > { %v2371_v6 = vpack.c.bf16 %v2195_v62, %v2191_v52  ;;  %v6638_v10 = vpack.c.bf16 %v2197_v16, %v2193_v57 }
 0x1ab   : > { %v2372_v43 = vpack.c.bf16 %v2196_v51, %v2192_v60  ;;  %v6640_v2 = vpack.c.bf16 %v2198_v11, %v2194_v17  ;;  %v1782_v33 = vpop.f32.mrb[16].mxu0  ;;  %v2088_v31 = vpop.f32.mrb[16].mxu1  ;;  %3339 = vmatpush1.bf16.msra.mxu0 %v5044_v47  ;;  %3645 = vmatpush1.bf16.msra.mxu1 %v5047_v49  ;;  %v5062_v49 = vld [vmem:[%s7146_s3 + $0x300] ss:$16 sps:$4 sm:$0xff]   ;;  %v5073_v60 = vld [vmem:[%s7146_s3 + $0x32c] ss:$16 sps:$4 sm:$0xff]  }
 0x1ac   : > { %v4396_v41 = vadd.f32 %v1782_v33, %v6508_v15  ;;  %v4444_v48 = vadd.f32 %v2088_v31, %v6512_v30  ;;  %v1784_v22 = vpop.f32.mrb[17].mxu0  ;;  %v2090_v1 = vpop.f32.mrb[17].mxu1  ;;  %3340 = vmatprep.subr.bf16.mxu0 %v5052_v27  ;;  %3646 = vmatprep.subr.bf16.mxu1 %v5055_v0  ;;  %v5065_v27 = vld [vmem:[%s7146_s3 + $0x308] ss:$16 sps:$4 sm:$0xff]   ;;  %v5070_v0 = vld [vmem:[%s7146_s3 + $0x324] ss:$16 sps:$4 sm:$0xff]  }
 0x1ad   : > { %v4397_v38 = vadd.f32 %v1784_v22, %v6516_v63  ;;  %v4445_v5 = vadd.f32 %v2090_v1, %v6520_v4  ;;  %v1786_v12 = vpop.f32.mrb[18].mxu0  ;;  %v2092_v39 = vpop.f32.mrb[18].mxu1  ;;  %3237 = vmatprep.mubr.bf16.mxu0 %v2372_v43  ;;  %3543 = vmatprep.mubr.bf16.mxu1 %v2372_v43  ;;  %v5071_v22 = vld [vmem:[%s7146_s3 + $0x328] ss:$16 sps:$4 sm:$0xff]   ;;  %v5076_v1 = vld [vmem:[%s7146_s3 + $0x344] ss:$16 sps:$4 sm:$0xff]  }
 0x1ae   : > { %v4398_v25 = vadd.f32 %v1786_v12, %v6508_v15  ;;  %v4446_v28 = vadd.f32 %v2092_v39, %v6512_v30  ;;  %v1788_v61 = vpop.f32.mrb[19].mxu0  ;;  %v2094_v56 = vpop.f32.mrb[19].mxu1  ;;  %3238 = vmatmul.mubr.bf16.gmra.mrb[60].mxu0 %v2371_v6  ;;  %3544 = vmatmul.mubr.bf16.gmra.mrb[60].mxu1 %v2371_v6  ;;  %v2199_v18 = vmax.f32 %v4396_v41, 0.0  ;;  %v2201_v19 = vmax.f32 %v4444_v48, 0.0  ;;  %v5068_v48 = vld [vmem:[%s7146_s3 + $0x320] ss:$16 sps:$4 sm:$0xff]  }
 0x1af   : > { %v4399_v26 = vadd.f32 %v1788_v61, %v6516_v63  ;;  %v4447_v53 = vadd.f32 %v2094_v56, %v6520_v4  ;;  %3341 = vmatpush1.bf16.msra.mxu0 %v5050_v7  ;;  %3647 = vmatpush1.bf16.msra.mxu1 %v5053_v42  ;;  %v2200_v13 = vmax.f32 %v4397_v38, 0.0  ;;  %v2202_v21 = vmax.f32 %v4445_v5, 0.0  ;;  %v5079_v12 = vld [vmem:[%s7146_s3 + $0x34c] ss:$16 sps:$4 sm:$0xff]  }
 0x1b0   : > { %v2203_v45 = vmax.f32 %v4398_v25, 0.0  ;;  %v2205_v23 = vmax.f32 %v4446_v28, 0.0  ;;  %3342 = vmatprep.subr.bf16.mxu0 %v5058_v3  ;;  %3648 = vmatprep.subr.bf16.mxu1 %v5061_v59 }
 0x1b1   : > { %v2204_v9 = vmax.f32 %v4399_v26, 0.0  ;;  %v2206_v24 = vmax.f32 %v4447_v53, 0.0 }
 0x1b2   : > { %v2375_v37 = vpack.c.bf16 %v2203_v45, %v2199_v18  ;;  %v6674_v50 = vpack.c.bf16 %v2205_v23, %v2201_v19  ;;  %v5074_v18 = vld [vmem:[%s7146_s3 + $0x340] ss:$16 sps:$4 sm:$0xff]   ;;  %v5077_v19 = vld [vmem:[%s7146_s3 + $0x348] ss:$16 sps:$4 sm:$0xff]  }
 0x1b3   : > { %v2376_v35 = vpack.c.bf16 %v2204_v9, %v2200_v13  ;;  %v6676_v29 = vpack.c.bf16 %v2206_v24, %v2202_v21  ;;  %v1792_v34 = vpop.f32.mrb[20].mxu0  ;;  %v2098_v47 = vpop.f32.mrb[20].mxu1  ;;  %3343 = vmatpush1.bf16.msra.mxu0 %v5056_v55  ;;  %3649 = vmatpush1.bf16.msra.mxu1 %v5059_v46  ;;  %v5082_v21 = vld [vmem:[%s7146_s3 + $0x364] ss:$16 sps:$4 sm:$0xff]   ;;  %v5085_v9 = vld [vmem:[%s7146_s3 + $0x36c] ss:$16 sps:$4 sm:$0xff]  }
 0x1b4   : > { %v4400_v52 = vadd.f32 %v1792_v34, %v6508_v15  ;;  %v4448_v57 = vadd.f32 %v2098_v47, %v6512_v30  ;;  %v1794_v62 = vpop.f32.mrb[21].mxu0  ;;  %v2100_v16 = vpop.f32.mrb[21].mxu1  ;;  %3344 = vmatprep.subr.bf16.mxu0 %v5064_v54  ;;  %3650 = vmatprep.subr.bf16.mxu1 %v5067_v20 }
 0x1b5   : > { %v4401_v17 = vadd.f32 %v1794_v62, %v6516_v63  ;;  %v4449_v51 = vadd.f32 %v2100_v16, %v6520_v4  ;;  %v1796_v11 = vpop.f32.mrb[22].mxu0  ;;  %v2102_v6 = vpop.f32.mrb[22].mxu1  ;;  %3247 = vmatprep.mubr.bf16.mxu0 %v2376_v35  ;;  %3553 = vmatprep.mubr.bf16.mxu1 %v2376_v35  ;;  %v5080_v16 = vld [vmem:[%s7146_s3 + $0x360] ss:$16 sps:$4 sm:$0xff]  }
 0x1b6   : > { %v4402_v43 = vadd.f32 %v1796_v11, %v6508_v15  ;;  %v4450_v33 = vadd.f32 %v2102_v6, %v6512_v30  ;;  %v1798_v31 = vpop.f32.mrb[23].mxu0  ;;  %v2104_v7 = vpop.f32.mrb[23].mxu1  ;;  %3248 = vmatmul.mubr.bf16.gmra.mrb[64].mxu0 %v2375_v37  ;;  %3554 = vmatmul.mubr.bf16.gmra.mrb[64].mxu1 %v2375_v37  ;;  %v2207_v3 = vmax.f32 %v4400_v52, 0.0  ;;  %v2209_v59 = vmax.f32 %v4448_v57, 0.0 }
 0x1b7   : > { %v4403_v42 = vadd.f32 %v1798_v31, %v6516_v63  ;;  %v4451_v41 = vadd.f32 %v2104_v7, %v6520_v4  ;;  %3345 = vmatpush1.bf16.msra.mxu0 %v5062_v49  ;;  %3651 = vmatpush1.bf16.msra.mxu1 %v5065_v27  ;;  %v2208_v39 = vmax.f32 %v4401_v17, 0.0  ;;  %v2210_v25 = vmax.f32 %v4449_v51, 0.0 }
 0x1b8   : > { %v2211_v38 = vmax.f32 %v4402_v43, 0.0  ;;  %v2213_v5 = vmax.f32 %v4450_v33, 0.0  ;;  %3346 = vmatprep.subr.bf16.mxu0 %v5070_v0  ;;  %3652 = vmatprep.subr.bf16.mxu1 %v5073_v60  ;;  %v5083_v0 = vld [vmem:[%s7146_s3 + $0x368] ss:$16 sps:$4 sm:$0xff]   ;;  %v5088_v60 = vld [vmem:[%s7146_s3 + $0x384] ss:$16 sps:$4 sm:$0xff]  }
 0x1b9   : > { %v2212_v28 = vmax.f32 %v4403_v42, 0.0  ;;  %v2214_v61 = vmax.f32 %v4451_v41, 0.0  ;;  %v5091_v43 = vld [vmem:[%s7146_s3 + $0x38c] ss:$16 sps:$4 sm:$0xff]  }
 0x1ba   : > { %v2379_v56 = vpack.c.bf16 %v2211_v38, %v2207_v3  ;;  %v6710_v26 = vpack.c.bf16 %v2213_v5, %v2209_v59  ;;  %v5086_v38 = vld [vmem:[%s7146_s3 + $0x380] ss:$16 sps:$4 sm:$0xff]   ;;  %v5089_v5 = vld [vmem:[%s7146_s3 + $0x388] ss:$16 sps:$4 sm:$0xff]  }
 0x1bb   : > { %v2380_v53 = vpack.c.bf16 %v2212_v28, %v2208_v39  ;;  %v6712_v55 = vpack.c.bf16 %v2214_v61, %v2210_v25  ;;  %v1802_v46 = vpop.f32.mrb[24].mxu0  ;;  %v2108_v54 = vpop.f32.mrb[24].mxu1  ;;  %3347 = vmatpush1.bf16.msra.mxu0 %v5068_v48  ;;  %3653 = vmatpush1.bf16.msra.mxu1 %v5071_v22  ;;  %v5094_v61 = vld [vmem:[%s7146_s3 + $0x3a4] ss:$16 sps:$4 sm:$0xff]  }
 0x1bc   : > { %v4404_v45 = vadd.f32 %v1802_v46, %v6508_v15  ;;  %v4452_v23 = vadd.f32 %v2108_v54, %v6512_v30  ;;  %v1804_v20 = vpop.f32.mrb[25].mxu0  ;;  %v2110_v13 = vpop.f32.mrb[25].mxu1  ;;  %3348 = vmatprep.subr.bf16.mxu0 %v5076_v1  ;;  %3654 = vmatprep.subr.bf16.mxu1 %v5079_v12 }
 0x1bd   : > { %v4405_v24 = vadd.f32 %v1804_v20, %v6516_v63  ;;  %v4453_v37 = vadd.f32 %v2110_v13, %v6520_v4  ;;  %v1806_v35 = vpop.f32.mrb[26].mxu0  ;;  %v2112_v34 = vpop.f32.mrb[26].mxu1  ;;  %3257 = vmatprep.mubr.bf16.mxu0 %v2380_v53  ;;  %3563 = vmatprep.mubr.bf16.mxu1 %v2380_v53 }
 0x1be   : > { %v4406_v47 = vadd.f32 %v1806_v35, %v6508_v15  ;;  %v4454_v49 = vadd.f32 %v2112_v34, %v6512_v30  ;;  %v1808_v27 = vpop.f32.mrb[27].mxu0  ;;  %v2114_v52 = vpop.f32.mrb[27].mxu1  ;;  %3258 = vmatmul.mubr.bf16.gmra.mrb[68].mxu0 %v2379_v56  ;;  %3564 = vmatmul.mubr.bf16.gmra.mrb[68].mxu1 %v2379_v56  ;;  %v2215_v17 = vmax.f32 %v4404_v45, 0.0  ;;  %v2217_v51 = vmax.f32 %v4452_v23, 0.0  ;;  %v5097_v56 = vld [vmem:[%s7146_s3 + $0x3ac] ss:$16 sps:$4 sm:$0xff]  }
 0x1bf   : > { %v4407_v57 = vadd.f32 %v1808_v27, %v6516_v63  ;;  %v4455_v62 = vadd.f32 %v2114_v52, %v6520_v4  ;;  %3349 = vmatpush1.bf16.msra.mxu0 %v5074_v18  ;;  %3655 = vmatpush1.bf16.msra.mxu1 %v5077_v19  ;;  %v2216_v33 = vmax.f32 %v4405_v24, 0.0  ;;  %v2218_v31 = vmax.f32 %v4453_v37, 0.0  ;;  %v5095_v24 = vld [vmem:[%s7146_s3 + $0x3a8] ss:$16 sps:$4 sm:$0xff]   ;;  %v5100_v37 = vld [vmem:[%s7146_s3 + $0x3c4] ss:$16 sps:$4 sm:$0xff]  }
 0x1c0   : > { %v2219_v11 = vmax.f32 %v4406_v47, 0.0  ;;  %v2221_v6 = vmax.f32 %v4454_v49, 0.0  ;;  %3350 = vmatprep.subr.bf16.mxu0 %v5082_v21  ;;  %3656 = vmatprep.subr.bf16.mxu1 %v5085_v9  ;;  %v5092_v9 = vld [vmem:[%s7146_s3 + $0x3a0] ss:$16 sps:$4 sm:$0xff]   ;;  %v5103_v27 = vld [vmem:[%s7146_s3 + $0x3cc] ss:$16 sps:$4 sm:$0xff]  }
 0x1c1   : > { %v2220_v7 = vmax.f32 %v4407_v57, 0.0  ;;  %v2222_v42 = vmax.f32 %v4455_v62, 0.0 }
 0x1c2   : > { %v2383_v41 = vpack.c.bf16 %v2219_v11, %v2215_v17  ;;  %v6746_v48 = vpack.c.bf16 %v2221_v6, %v2217_v51 }
 0x1c3   : > { %v2384_v22 = vpack.c.bf16 %v2220_v7, %v2216_v33  ;;  %v6748_v1 = vpack.c.bf16 %v2222_v42, %v2218_v31  ;;  %v1812_v3 = vpop.f32.mrb[28].mxu0  ;;  %v2118_v59 = vpop.f32.mrb[28].mxu1  ;;  %3351 = vmatpush1.bf16.msra.mxu0 %v5080_v16  ;;  %3657 = vmatpush1.bf16.msra.mxu1 %v5083_v0  ;;  %v5101_v33 = vld [vmem:[%s7146_s3 + $0x3c8] ss:$16 sps:$4 sm:$0xff]  }
 0x1c4   : > { %v4408_v12 = vadd.f32 %v1812_v3, %v6508_v15  ;;  %v4456_v39 = vadd.f32 %v2118_v59, %v6512_v30  ;;  %v1814_v25 = vpop.f32.mrb[29].mxu0  ;;  %v2120_v28 = vpop.f32.mrb[29].mxu1  ;;  %3352 = vmatprep.subr.bf16.mxu0 %v5088_v60  ;;  %3658 = vmatprep.subr.bf16.mxu1 %v5091_v43  ;;  %v5098_v43 = vld [vmem:[%s7146_s3 + $0x3c0] ss:$16 sps:$4 sm:$0xff]   ;;  %v5109_v3 = vld [vmem:[%s7146_s3 + $0x3ec] ss:$16 sps:$4 sm:$0xff]  }
 0x1c5   : > { %v4409_v53 = vadd.f32 %v1814_v25, %v6516_v63  ;;  %v4457_v46 = vadd.f32 %v2120_v28, %v6520_v4  ;;  %v1816_v54 = vpop.f32.mrb[30].mxu0  ;;  %v2122_v18 = vpop.f32.mrb[30].mxu1  ;;  %3267 = vmatprep.mubr.bf16.mxu0 %v2384_v22  ;;  %3573 = vmatprep.mubr.bf16.mxu1 %v2384_v22  ;;  %v5106_v22 = vld [vmem:[%s7146_s3 + $0x3e4] ss:$16 sps:$4 sm:$0xff]  }
 0x1c6   : > { %v4410_v19 = vadd.f32 %v1816_v54, %v6508_v15  ;;  %v4458_v45 = vadd.f32 %v2122_v18, %v6512_v30  ;;  %v1818_v23 = vpop.f32.mrb[31].mxu0  ;;  %v2124_v20 = vpop.f32.mrb[31].mxu1  ;;  %3268 = vmatmul.mubr.bf16.gmra.mrb[72].mxu0 %v2383_v41  ;;  %3574 = vmatmul.mubr.bf16.gmra.mrb[72].mxu1 %v2383_v41  ;;  %v2223_v35 = vmax.f32 %v4408_v12, 0.0  ;;  %v2225_v34 = vmax.f32 %v4456_v39, 0.0  ;;  %v5107_v54 = vld [vmem:[%s7146_s3 + $0x3e8] ss:$16 sps:$4 sm:$0xff]  }
 0x1c7   : > { %v4411_v13 = vadd.f32 %v1818_v23, %v6516_v63  ;;  %v4459_v21 = vadd.f32 %v2124_v20, %v6520_v4  ;;  %3353 = vmatpush1.bf16.msra.mxu0 %v5086_v38  ;;  %3659 = vmatpush1.bf16.msra.mxu1 %v5089_v5  ;;  %v2224_v52 = vmax.f32 %v4409_v53, 0.0  ;;  %v2226_v57 = vmax.f32 %v4457_v46, 0.0  ;;  %v5104_v46 = vld [vmem:[%s7146_s3 + $0x3e0] ss:$16 sps:$4 sm:$0xff]  }
 0x1c8   : > { %v2227_v47 = vmax.f32 %v4410_v19, 0.0  ;;  %v2229_v49 = vmax.f32 %v4458_v45, 0.0  ;;  %3354 = vmatprep.subr.bf16.mxu0 %v5094_v61  ;;  %3660 = vmatprep.subr.bf16.mxu1 %v5097_v56 }
 0x1c9   : > { %v2228_v62 = vmax.f32 %v4411_v13, 0.0  ;;  %v2230_v16 = vmax.f32 %v4459_v21, 0.0 }
 0x1ca   : > { %v2387_v0 = vpack.c.bf16 %v2227_v47, %v2223_v35  ;;  %v6782_v60 = vpack.c.bf16 %v2229_v49, %v2225_v34 }
 0x1cb   : > { %v2388_v17 = vpack.c.bf16 %v2228_v62, %v2224_v52  ;;  %v6784_v51 = vpack.c.bf16 %v2230_v16, %v2226_v57  ;;  %v1822_v11 = vpop.f32.mrb[32].mxu0  ;;  %v2128_v6 = vpop.f32.mrb[32].mxu1  ;;  %3355 = vmatpush1.bf16.msra.mxu0 %v5092_v9  ;;  %3661 = vmatpush1.bf16.msra.mxu1 %v5095_v24 }
 0x1cc   : > { %v4412_v31 = vadd.f32 %v1822_v11, %v6508_v15  ;;  %v4460_v7 = vadd.f32 %v2128_v6, %v6512_v30  ;;  %v1824_v42 = vpop.f32.mrb[33].mxu0  ;;  %v2130_v41 = vpop.f32.mrb[33].mxu1  ;;  %3356 = vmatprep.subr.bf16.mxu0 %v5100_v37  ;;  %3662 = vmatprep.subr.bf16.mxu1 %v5103_v27 }
 0x1cd   : > { %v4413_v59 = vadd.f32 %v1824_v42, %v6516_v63  ;;  %v4461_v38 = vadd.f32 %v2130_v41, %v6520_v4  ;;  %v1826_v5 = vpop.f32.mrb[34].mxu0  ;;  %v2132_v12 = vpop.f32.mrb[34].mxu1  ;;  %3277 = vmatprep.mubr.bf16.mxu0 %v2388_v17  ;;  %3583 = vmatprep.mubr.bf16.mxu1 %v2388_v17 }
 0x1ce   : > { %v4414_v39 = vadd.f32 %v1826_v5, %v6508_v15  ;;  %v4462_v25 = vadd.f32 %v2132_v12, %v6512_v30  ;;  %v1828_v28 = vpop.f32.mrb[35].mxu0  ;;  %v2134_v61 = vpop.f32.mrb[35].mxu1  ;;  %3278 = vmatmul.mubr.bf16.gmra.mrb[76].mxu0 %v2387_v0  ;;  %3584 = vmatmul.mubr.bf16.gmra.mrb[76].mxu1 %v2387_v0  ;;  %v2231_v18 = vmax.f32 %v4412_v31, 0.0  ;;  %v2233_v19 = vmax.f32 %v4460_v7, 0.0 }
 0x1cf   : > { %v4415_v56 = vadd.f32 %v1828_v28, %v6516_v63  ;;  %v4463_v53 = vadd.f32 %v2134_v61, %v6520_v4  ;;  %3357 = vmatpush1.bf16.msra.mxu0 %v5098_v43  ;;  %3663 = vmatpush1.bf16.msra.mxu1 %v5101_v33  ;;  %v2232_v20 = vmax.f32 %v4413_v59, 0.0  ;;  %v2234_v13 = vmax.f32 %v4461_v38, 0.0 }
 0x1d0   : > { %v2235_v45 = vmax.f32 %v4414_v39, 0.0  ;;  %v2237_v23 = vmax.f32 %v4462_v25, 0.0  ;;  %3358 = vmatprep.subr.bf16.mxu0 %v5106_v22  ;;  %3664 = vmatprep.subr.bf16.mxu1 %v5109_v3 }
 0x1d1   : > { %v2236_v21 = vmax.f32 %v4415_v56, 0.0  ;;  %v2238_v9 = vmax.f32 %v4463_v53, 0.0 }
 0x1d2   : > { %v2391_v24 = vpack.c.bf16 %v2235_v45, %v2231_v18  ;;  %v6812_v37 = vpack.c.bf16 %v2237_v23, %v2233_v19 }
 0x1d3   : > { %v2392_v35 = vpack.c.bf16 %v2236_v21, %v2232_v20  ;;  %v6814_v34 = vpack.c.bf16 %v2238_v9, %v2234_v13  ;;  %v1832_v47 = vpop.f32.mrb[36].mxu0  ;;  %v2138_v49 = vpop.f32.mrb[36].mxu1  ;;  %3359 = vmatpush1.bf16.msra.mxu0 %v5104_v46  ;;  %3665 = vmatpush1.bf16.msra.mxu1 %v5107_v54 }
 0x1d4   : > { %v4416_v27 = vadd.f32 %v1832_v47, %v6508_v15  ;;  %v4464_v52 = vadd.f32 %v2138_v49, %v6512_v30  ;;  %v1834_v57 = vpop.f32.mrb[37].mxu0  ;;  %v2140_v62 = vpop.f32.mrb[37].mxu1 }
 0x1d5   : > { %v4417_v16 = vadd.f32 %v1834_v57, %v6516_v63  ;;  %v4465_v0 = vadd.f32 %v2140_v62, %v6520_v4  ;;  %v1836_v17 = vpop.f32.mrb[38].mxu0  ;;  %v2142_v11 = vpop.f32.mrb[38].mxu1  ;;  %3287 = vmatprep.mubr.bf16.mxu0 %v2392_v35  ;;  %3593 = vmatprep.mubr.bf16.mxu1 %v2392_v35 }
 0x1d6   : > { %v4418_v6 = vadd.f32 %v1836_v17, %v6508_v15  ;;  %v4466_v43 = vadd.f32 %v2142_v11, %v6512_v30  ;;  %v1838_v33 = vpop.f32.mrb[39].mxu0  ;;  %v2144_v31 = vpop.f32.mrb[39].mxu1  ;;  %3288 = vmatmul.mubr.bf16.gmra.mrb[80].mxu0 %v2391_v24  ;;  %3594 = vmatmul.mubr.bf16.gmra.mrb[80].mxu1 %v2391_v24  ;;  %v2239_v41 = vmax.f32 %v4416_v27, 0.0  ;;  %v2241_v22 = vmax.f32 %v4464_v52, 0.0 }
 0x1d7   : > { %v4419_v7 = vadd.f32 %v1838_v33, %v6516_v63  ;;  %v4467_v42 = vadd.f32 %v2144_v31, %v6520_v4  ;;  %v2240_v38 = vmax.f32 %v4417_v16, 0.0  ;;  %v2242_v5 = vmax.f32 %v4465_v0, 0.0 }
 0x1d8   : > { %v2243_v3 = vmax.f32 %v4418_v6, 0.0  ;;  %v2245_v59 = vmax.f32 %v4466_v43, 0.0 }
 0x1d9   : > { %v2244_v12 = vmax.f32 %v4419_v7, 0.0  ;;  %v2246_v39 = vmax.f32 %v4467_v42, 0.0 }
 0x1da   : > { %v2395_v25 = vpack.c.bf16 %v2243_v3, %v2239_v41  ;;  %v6824_v28 = vpack.c.bf16 %v2245_v59, %v2241_v22 }
 0x1db   : > { %v2396_v61 = vpack.c.bf16 %v2244_v12, %v2240_v38  ;;  %v6826_v56 = vpack.c.bf16 %v2246_v39, %v2242_v5  ;;  %v1842_v53 = vpop.f32.mrb[40].mxu0  ;;  %v2148_v46 = vpop.f32.mrb[40].mxu1 }
 0x1dc   : > { %v4420_v54 = vadd.f32 %v1842_v53, %v6508_v15  ;;  %v4468_v18 = vadd.f32 %v2148_v46, %v6512_v30  ;;  %v1844_v19 = vpop.f32.mrb[41].mxu0  ;;  %v2150_v45 = vpop.f32.mrb[41].mxu1 }
 0x1dd   : > { %v4421_v23 = vadd.f32 %v1844_v19, %v6516_v63  ;;  %v4469_v20 = vadd.f32 %v2150_v45, %v6520_v4  ;;  %v1846_v13 = vpop.f32.mrb[42].mxu0  ;;  %v2152_v21 = vpop.f32.mrb[42].mxu1  ;;  %3297 = vmatprep.mubr.bf16.mxu0 %v2396_v61  ;;  %3603 = vmatprep.mubr.bf16.mxu1 %v2396_v61 }
 0x1de   : > { %v4422_v9 = vadd.f32 %v1846_v13, %v6508_v15  ;;  %v4470_v24 = vadd.f32 %v2152_v21, %v6512_v30  ;;  %v1848_v35 = vpop.f32.mrb[43].mxu0  ;;  %v2154_v47 = vpop.f32.mrb[43].mxu1  ;;  %3298 = vmatmul.mubr.bf16.gmra.mrb[84].mxu0 %v2395_v25  ;;  %3604 = vmatmul.mubr.bf16.gmra.mrb[84].mxu1 %v2395_v25  ;;  %v2247_v52 = vmax.f32 %v4420_v54, 0.0  ;;  %v2249_v57 = vmax.f32 %v4468_v18, 0.0 }
 0x1df   : > { %v4423_v49 = vadd.f32 %v1848_v35, %v6516_v63  ;;  %v4471_v27 = vadd.f32 %v2154_v47, %v6520_v4  ;;  %v2248_v0 = vmax.f32 %v4421_v23, 0.0  ;;  %v2250_v17 = vmax.f32 %v4469_v20, 0.0 }
 0x1e0   : > { %v2251_v62 = vmax.f32 %v4422_v9, 0.0  ;;  %v2253_v16 = vmax.f32 %v4470_v24, 0.0 }
 0x1e1   : > { %v2252_v11 = vmax.f32 %v4423_v49, 0.0  ;;  %v2254_v6 = vmax.f32 %v4471_v27, 0.0 }
 0x1e2   : > { %v2399_v43 = vpack.c.bf16 %v2251_v62, %v2247_v52  ;;  %v6836_v33 = vpack.c.bf16 %v2253_v16, %v2249_v57  ;;  %v2271_v62 = vld [vmem:[%s5490_s29 + $0x40] sm:$0xff]  ;;  %v2273_v16 = vld [vmem:[%s5490_s29 + $0x50] sm:$0xff] }
 0x1e3   : > { %v2400_v31 = vpack.c.bf16 %v2252_v11, %v2248_v0  ;;  %v6838_v7 = vpack.c.bf16 %v2254_v6, %v2250_v17  ;;  %v1852_v42 = vpop.f32.mrb[44].mxu0  ;;  %v2158_v41 = vpop.f32.mrb[44].mxu1  ;;  %v2272_v0 = vld [vmem:[%s5490_s29 + $0x48] sm:$0xff]  ;;  %v2274_v17 = vld [vmem:[%s5490_s29 + $0x58] sm:$0xff] }
 0x1e4   : > { %v4424_v22 = vadd.f32 %v1852_v42, %v6508_v15  ;;  %v4472_v3 = vadd.f32 %v2158_v41, %v6512_v30  ;;  %v1854_v59 = vpop.f32.mrb[45].mxu0  ;;  %v2160_v38 = vpop.f32.mrb[45].mxu1 }
 0x1e5   : > { %v4425_v5 = vadd.f32 %v1854_v59, %v6516_v63  ;;  %v4473_v12 = vadd.f32 %v2160_v38, %v6520_v4  ;;  %v1856_v39 = vpop.f32.mrb[46].mxu0  ;;  %v2162_v25 = vpop.f32.mrb[46].mxu1  ;;  %3307 = vmatprep.mubr.bf16.mxu0 %v2400_v31  ;;  %3613 = vmatprep.mubr.bf16.mxu1 %v2400_v31 }
 0x1e6   : > { %v4426_v61 = vadd.f32 %v1856_v39, %v6508_v15  ;;  %v4474_v53 = vadd.f32 %v2162_v25, %v6512_v30  ;;  %v1858_v46 = vpop.f32.mrb[47].mxu0  ;;  %v2164_v54 = vpop.f32.mrb[47].mxu1  ;;  %3308 = vmatmul.mubr.bf16.gmra.mrb[88].mxu0 %v2399_v43  ;;  %3614 = vmatmul.mubr.bf16.gmra.mrb[88].mxu1 %v2399_v43  ;;  %v2255_v45 = vmax.f32 %v4424_v22, 0.0  ;;  %v2257_v23 = vmax.f32 %v4472_v3, 0.0  ;;  %v2275_v43 = vld [vmem:[%s5490_s29 + $0x60] sm:$0xff]  ;;  %v2276_v22 = vld [vmem:[%s5490_s29 + $0x68] sm:$0xff] }
 0x1e7   : > { %v4427_v18 = vadd.f32 %v1858_v46, %v6516_v63  ;;  %v4475_v19 = vadd.f32 %v2164_v54, %v6520_v4  ;;  %v2256_v21 = vmax.f32 %v4425_v5, 0.0  ;;  %v2258_v9 = vmax.f32 %v4473_v12, 0.0  ;;  %v5110_v63 = vld [vmem:[%s5419_s27 + $0x10] sm:$0xff]  ;;  %v2278_v3 = vld [vmem:[%s5490_s29 + $0x78] sm:$0xff] }
 0x1e8   : > { %v2259_v20 = vmax.f32 %v4426_v61, 0.0  ;;  %v2261_v13 = vmax.f32 %v4474_v53, 0.0  ;;  %v527_v4 = vadd.f32 %v5110_v63, %v5925_v58 }
 0x1e9   : > { %v2260_v24 = vmax.f32 %v4427_v18, 0.0  ;;  %v2262_v35 = vmax.f32 %v4475_v19, 0.0  ;;  %v2279_v18 = vld [vmem:[%s5490_s29 + $0x80] sm:$0xff]  ;;  %v2281_v19 = vld [vmem:[%s5490_s29 + $0x90] sm:$0xff] }
 0x1ea   : > { %v2403_v47 = vpack.c.bf16 %v2259_v20, %v2255_v45  ;;  %v2405_v15 = vpack.c.bf16 %v2261_v13, %v2257_v23  ;;  %v2280_v45 = vld [vmem:[%s5490_s29 + $0x88] sm:$0xff]  ;;  %v2282_v23 = vld [vmem:[%s5490_s29 + $0x98] sm:$0xff] }
 0x1eb   : > { %v2404_v49 = vpack.c.bf16 %v2260_v24, %v2256_v21  ;;  %v2406_v30 = vpack.c.bf16 %v2262_v35, %v2258_v9  ;;  %v2283_v21 = vld [vmem:[%s5490_s29 + $0xa0] sm:$0xff]  ;;  %v2285_v9 = vld [vmem:[%s5490_s29 + $0xb0] sm:$0xff] }
 0x1ed   : > { %3317 = vmatprep.mubr.bf16.mxu0 %v2404_v49  ;;  %3623 = vmatprep.mubr.bf16.mxu1 %v2404_v49  ;;  %v2284_v49 = vld [vmem:[%s5490_s29 + $0xa8] sm:$0xff] }
 0x1ee   : > { %3318 = vmatmul.mubr.bf16.gmra.mrb[92].mxu0 %v2403_v47  ;;  %3624 = vmatmul.mubr.bf16.gmra.mrb[92].mxu1 %v2403_v47 }
 0x1ef   : > { %3360 = vmatprep.mubr.bf16.mxu0 %v6532_v8  ;;  %3666 = vmatprep.mubr.bf16.mxu1 %v6532_v8  ;;  %v2264_v8 = vld [vmem:[%s5490_s29 + $0x8] sm:$0xff] }
 0x1f6   : > { %3361 = vmatmul.mubr.bf16.vlgmr.msra.gmra.mrb[48].mxu0 %v6530_v40  ;;  %3667 = vmatmul.mubr.bf16.vlgmr.msra.gmra.mrb[48].mxu1 %v6530_v40  ;;  %v2263_v40 = vld [vmem:[%s5490_s29] sm:$0xff] }
 0x1f7   : > { %3370 = vmatprep.mubr.bf16.mxu0 %v6568_v36  ;;  %3676 = vmatprep.mubr.bf16.mxu1 %v6568_v36  ;;  %v5111_v36 = vld [vmem:[%s5419_s27 + $0x30] sm:$0xff]  ;;  %s4379_s27 = smul.u32 12288, %s5182_s21 }
 0x1f9   : > { %s7085_s10 = scalar_lea.hbm %s7148_s5, %s4379_s27 }
 0x1fe   : > { %3371 = vmatmul.mubr.bf16.gmra.mrb[52].mxu0 %v6566_v32  ;;  %3677 = vmatmul.mubr.bf16.gmra.mrb[52].mxu1 %v6566_v32  ;;  %v2266_v32 = vld [vmem:[%s5490_s29 + $0x18] sm:$0xff] }
 0x1ff   : > { %3380 = vmatprep.mubr.bf16.mxu0 %v6604_v44  ;;  %3686 = vmatprep.mubr.bf16.mxu1 %v6604_v44 }
 0x206   : > { %3381 = vmatmul.mubr.bf16.gmra.mrb[56].mxu0 %v6602_v14  ;;  %3687 = vmatmul.mubr.bf16.gmra.mrb[56].mxu1 %v6602_v14  ;;  %v531_v14 = vadd.f32 %v5111_v36, %v5925_v58 }
 0x207   : > { %3390 = vmatprep.mubr.bf16.mxu0 %v6640_v2  ;;  %3696 = vmatprep.mubr.bf16.mxu1 %v6640_v2  ;;  %v2267_v2 = vld [vmem:[%s5490_s29 + $0x20] sm:$0xff] }
 0x20e   : > { %3391 = vmatmul.mubr.bf16.gmra.mrb[60].mxu0 %v6638_v10  ;;  %3697 = vmatmul.mubr.bf16.gmra.mrb[60].mxu1 %v6638_v10 }
 0x20f   : > { %3400 = vmatprep.mubr.bf16.mxu0 %v6676_v29  ;;  %3706 = vmatprep.mubr.bf16.mxu1 %v6676_v29 }
 0x216   : > { %3401 = vmatmul.mubr.bf16.gmra.mrb[64].mxu0 %v6674_v50  ;;  %3707 = vmatmul.mubr.bf16.gmra.mrb[64].mxu1 %v6674_v50 }
 0x217   : > { %3410 = vmatprep.mubr.bf16.mxu0 %v6712_v55  ;;  %3716 = vmatprep.mubr.bf16.mxu1 %v6712_v55 }
 0x21e   : > { %3411 = vmatmul.mubr.bf16.gmra.mrb[68].mxu0 %v6710_v26  ;;  %3717 = vmatmul.mubr.bf16.gmra.mrb[68].mxu1 %v6710_v26 }
 0x21f   : > { %3420 = vmatprep.mubr.bf16.mxu0 %v6748_v1  ;;  %3726 = vmatprep.mubr.bf16.mxu1 %v6748_v1  ;;  %v2270_v1 = vld [vmem:[%s5490_s29 + $0x38] sm:$0xff] }
 0x226   : > { %3421 = vmatmul.mubr.bf16.gmra.mrb[72].mxu0 %v6746_v48  ;;  %3727 = vmatmul.mubr.bf16.gmra.mrb[72].mxu1 %v6746_v48  ;;  %v2268_v48 = vld [vmem:[%s5490_s29 + $0x28] sm:$0xff] }
 0x227   : > { %3430 = vmatprep.mubr.bf16.mxu0 %v6784_v51  ;;  %3736 = vmatprep.mubr.bf16.mxu1 %v6784_v51 }
 0x22e   : > { %3431 = vmatmul.mubr.bf16.gmra.mrb[76].mxu0 %v6782_v60  ;;  %3737 = vmatmul.mubr.bf16.gmra.mrb[76].mxu1 %v6782_v60 }
 0x22f   : > { %3440 = vmatprep.mubr.bf16.mxu0 %v6814_v34  ;;  %3746 = vmatprep.mubr.bf16.mxu1 %v6814_v34 }
 0x236   : > { %3441 = vmatmul.mubr.bf16.gmra.mrb[80].mxu0 %v6812_v37  ;;  %3747 = vmatmul.mubr.bf16.gmra.mrb[80].mxu1 %v6812_v37 }
 0x237   : > { %3450 = vmatprep.mubr.bf16.mxu0 %v6826_v56  ;;  %3756 = vmatprep.mubr.bf16.mxu1 %v6826_v56 }
 0x23e   : > { %3451 = vmatmul.mubr.bf16.gmra.mrb[84].mxu0 %v6824_v28  ;;  %3757 = vmatmul.mubr.bf16.gmra.mrb[84].mxu1 %v6824_v28 }
 0x23f   : > { %3460 = vmatprep.mubr.bf16.mxu0 %v6838_v7  ;;  %3766 = vmatprep.mubr.bf16.mxu1 %v6838_v7 }
 0x246   : > { %3461 = vmatmul.mubr.bf16.gmra.mrb[88].mxu0 %v6836_v33  ;;  %3767 = vmatmul.mubr.bf16.gmra.mrb[88].mxu1 %v6836_v33  ;;  %v2277_v33 = vld [vmem:[%s5490_s29 + $0x70] sm:$0xff] }
 0x247   : > { %3470 = vmatprep.mubr.bf16.mxu0 %v2406_v30  ;;  %3776 = vmatprep.mubr.bf16.mxu1 %v2406_v30  ;;  %v2286_v30 = vld [vmem:[%s5490_s29 + $0xb8] sm:$0xff] }
 0x24e   : > { %3471 = vmatmul.mubr.bf16.gmra.mrb[92].mxu0 %v2405_v15  ;;  %3777 = vmatmul.mubr.bf16.gmra.mrb[92].mxu1 %v2405_v15 }
 0x2c9   : > { %v3362_v44 = vpop.f32.mrb[48].mxu0  ;;  %v3668_v10 = vpop.f32.mrb[48].mxu1 }
 0x2ca   : > { %v3787_v50 = vadd.f32 %v3362_v44, %v2263_v40  ;;  %v3789_v29 = vadd.f32 %v3668_v10, %v527_v4  ;;  %v3364_v26 = vpop.f32.mrb[49].mxu0  ;;  %v3670_v55 = vpop.f32.mrb[49].mxu1 }
 0x2cb   : > { %v3788_v60 = vadd.f32 %v3364_v26, %v2264_v8  ;;  %v3790_v51 = vadd.f32 %v3670_v55, %v2266_v32  ;;  %v3366_v37 = vpop.f32.mrb[50].mxu0  ;;  %v3672_v58 = vpop.f32.mrb[50].mxu1  ;;  %v2288_v26 = vld [vmem:[%s5490_s29 + $0xc8] sm:$0xff]  ;;  %v2290_v55 = vld [vmem:[%s5490_s29 + $0xd8] sm:$0xff] }
 0x2cc   : > { %3883 = vst [vmem:[%s5490_s29] sm:$0xff] %v3787_v50  ;;  %3885 = vst [vmem:[%s5490_s29 + $0x10] sm:$0xff] %v3789_v29  ;;  %v3791_v34 = vadd.f32 %v3366_v37, %v2267_v2  ;;  %v3793_v28 = vadd.f32 %v3672_v58, %v531_v14  ;;  %v3368_v56 = vpop.f32.mrb[51].mxu0  ;;  %v3674_v27 = vpop.f32.mrb[51].mxu1  ;;  %v2287_v50 = vld [vmem:[%s5490_s29 + $0xc0] sm:$0xff]  ;;  %v2289_v29 = vld [vmem:[%s5490_s29 + $0xd0] sm:$0xff] }
 0x2cd   : > { %3884 = vst [vmem:[%s5490_s29 + $0x8] sm:$0xff] %v3788_v60  ;;  %3886 = vst [vmem:[%s5490_s29 + $0x18] sm:$0xff] %v3790_v51  ;;  %v3792_v52 = vadd.f32 %v3368_v56, %v2268_v48  ;;  %v3794_v57 = vadd.f32 %v3674_v27, %v2270_v1  ;;  %v2291_v60 = vld [vmem:[%s5490_s29 + $0xe0] sm:$0xff]  ;;  %v2293_v51 = vld [vmem:[%s5490_s29 + $0xf0] sm:$0xff] }
 0x2ce   : > { %3887 = vst [vmem:[%s5490_s29 + $0x20] sm:$0xff] %v3791_v34  ;;  %3889 = vst [vmem:[%s5490_s29 + $0x30] sm:$0xff] %v3793_v28  ;;  %v2292_v56 = vld [vmem:[%s5490_s29 + $0xe8] sm:$0xff]  ;;  %v2294_v27 = vld [vmem:[%s5490_s29 + $0xf8] sm:$0xff] }
 0x2cf   : > { %3888 = vst [vmem:[%s5490_s29 + $0x28] sm:$0xff] %v3792_v52  ;;  %3890 = vst [vmem:[%s5490_s29 + $0x38] sm:$0xff] %v3794_v57 }
 0x2d1   : > { %v3372_v11 = vpop.f32.mrb[52].mxu0  ;;  %v3678_v6 = vpop.f32.mrb[52].mxu1 }
 0x2d2   : > { %v3795_v31 = vadd.f32 %v3372_v11, %v2271_v62  ;;  %v3797_v7 = vadd.f32 %v3678_v6, %v2273_v16  ;;  %v3374_v42 = vpop.f32.mrb[53].mxu0  ;;  %v3680_v41 = vpop.f32.mrb[53].mxu1 }
 0x2d3   : > { %v3796_v59 = vadd.f32 %v3374_v42, %v2272_v0  ;;  %v3798_v38 = vadd.f32 %v3680_v41, %v2274_v17  ;;  %v3376_v5 = vpop.f32.mrb[54].mxu0  ;;  %v3682_v12 = vpop.f32.mrb[54].mxu1  ;;  %v2296_v42 = vld [vmem:[%s5490_s29 + $0x108] sm:$0xff]  ;;  %v2298_v41 = vld [vmem:[%s5490_s29 + $0x118] sm:$0xff] }
 0x2d4   : > { %3891 = vst [vmem:[%s5490_s29 + $0x40] sm:$0xff] %v3795_v31  ;;  %3893 = vst [vmem:[%s5490_s29 + $0x50] sm:$0xff] %v3797_v7  ;;  %v3799_v39 = vadd.f32 %v3376_v5, %v2275_v43  ;;  %v3801_v25 = vadd.f32 %v3682_v12, %v2277_v33  ;;  %v3378_v61 = vpop.f32.mrb[55].mxu0  ;;  %v3684_v53 = vpop.f32.mrb[55].mxu1  ;;  %v2295_v31 = vld [vmem:[%s5490_s29 + $0x100] sm:$0xff]  ;;  %v2297_v7 = vld [vmem:[%s5490_s29 + $0x110] sm:$0xff] }
 0x2d5   : > { %3892 = vst [vmem:[%s5490_s29 + $0x48] sm:$0xff] %v3796_v59  ;;  %3894 = vst [vmem:[%s5490_s29 + $0x58] sm:$0xff] %v3798_v38  ;;  %v3800_v46 = vadd.f32 %v3378_v61, %v2276_v22  ;;  %v3802_v54 = vadd.f32 %v3684_v53, %v2278_v3  ;;  %v2299_v59 = vld [vmem:[%s5490_s29 + $0x120] sm:$0xff]  ;;  %v2301_v38 = vld [vmem:[%s5490_s29 + $0x130] sm:$0xff] }
 0x2d6   : > { %3895 = vst [vmem:[%s5490_s29 + $0x60] sm:$0xff] %v3799_v39  ;;  %3897 = vst [vmem:[%s5490_s29 + $0x70] sm:$0xff] %v3801_v25  ;;  %v2300_v61 = vld [vmem:[%s5490_s29 + $0x128] sm:$0xff]  ;;  %v2302_v53 = vld [vmem:[%s5490_s29 + $0x138] sm:$0xff] }
 0x2d7   : > { %3896 = vst [vmem:[%s5490_s29 + $0x68] sm:$0xff] %v3800_v46  ;;  %3898 = vst [vmem:[%s5490_s29 + $0x78] sm:$0xff] %v3802_v54 }
 0x2d9   : > { %v3382_v20 = vpop.f32.mrb[56].mxu0  ;;  %v3688_v13 = vpop.f32.mrb[56].mxu1 }
 0x2da   : > { %v3803_v24 = vadd.f32 %v3382_v20, %v2279_v18  ;;  %v3805_v35 = vadd.f32 %v3688_v13, %v2281_v19  ;;  %v3384_v47 = vpop.f32.mrb[57].mxu0  ;;  %v3690_v15 = vpop.f32.mrb[57].mxu1 }
 0x2db   : > { %v3804_v63 = vadd.f32 %v3384_v47, %v2280_v45  ;;  %v3806_v4 = vadd.f32 %v3690_v15, %v2282_v23  ;;  %v3386_v40 = vpop.f32.mrb[58].mxu0  ;;  %v3692_v8 = vpop.f32.mrb[58].mxu1  ;;  %v2304_v47 = vld [vmem:[%s5490_s29 + $0x148] sm:$0xff]  ;;  %v2306_v15 = vld [vmem:[%s5490_s29 + $0x158] sm:$0xff] }
 0x2dc   : > { %3899 = vst [vmem:[%s5490_s29 + $0x80] sm:$0xff] %v3803_v24  ;;  %3901 = vst [vmem:[%s5490_s29 + $0x90] sm:$0xff] %v3805_v35  ;;  %v3807_v32 = vadd.f32 %v3386_v40, %v2283_v21  ;;  %v3809_v36 = vadd.f32 %v3692_v8, %v2285_v9  ;;  %v3388_v14 = vpop.f32.mrb[59].mxu0  ;;  %v3694_v44 = vpop.f32.mrb[59].mxu1  ;;  %v2303_v24 = vld [vmem:[%s5490_s29 + $0x140] sm:$0xff]  ;;  %v2305_v35 = vld [vmem:[%s5490_s29 + $0x150] sm:$0xff] }
 0x2dd   : > { %3900 = vst [vmem:[%s5490_s29 + $0x88] sm:$0xff] %v3804_v63  ;;  %3902 = vst [vmem:[%s5490_s29 + $0x98] sm:$0xff] %v3806_v4  ;;  %v3808_v10 = vadd.f32 %v3388_v14, %v2284_v49  ;;  %v3810_v2 = vadd.f32 %v3694_v44, %v2286_v30  ;;  %v2307_v63 = vld [vmem:[%s5490_s29 + $0x160] sm:$0xff]  ;;  %v2309_v4 = vld [vmem:[%s5490_s29 + $0x170] sm:$0xff] }
 0x2de   : > { %3903 = vst [vmem:[%s5490_s29 + $0xa0] sm:$0xff] %v3807_v32  ;;  %3905 = vst [vmem:[%s5490_s29 + $0xb0] sm:$0xff] %v3809_v36  ;;  %v2308_v14 = vld [vmem:[%s5490_s29 + $0x168] sm:$0xff]  ;;  %v2310_v44 = vld [vmem:[%s5490_s29 + $0x178] sm:$0xff] }
 0x2df   : > { %3904 = vst [vmem:[%s5490_s29 + $0xa8] sm:$0xff] %v3808_v10  ;;  %3906 = vst [vmem:[%s5490_s29 + $0xb8] sm:$0xff] %v3810_v2 }
 0x2e1   : > { %v3392_v48 = vpop.f32.mrb[60].mxu0  ;;  %v3698_v1 = vpop.f32.mrb[60].mxu1 }
 0x2e2   : > { %v3811_v37 = vadd.f32 %v3392_v48, %v2287_v50  ;;  %v3813_v58 = vadd.f32 %v3698_v1, %v2289_v29  ;;  %v3394_v34 = vpop.f32.mrb[61].mxu0  ;;  %v3700_v28 = vpop.f32.mrb[61].mxu1 }
 0x2e3   : > { %v3812_v52 = vadd.f32 %v3394_v34, %v2288_v26  ;;  %v3814_v57 = vadd.f32 %v3700_v28, %v2290_v55  ;;  %v3396_v62 = vpop.f32.mrb[62].mxu0  ;;  %v3702_v16 = vpop.f32.mrb[62].mxu1  ;;  %v2312_v34 = vld [vmem:[%s5490_s29 + $0x188] sm:$0xff]  ;;  %v2314_v28 = vld [vmem:[%s5490_s29 + $0x198] sm:$0xff] }
 0x2e4   : > { %3907 = vst [vmem:[%s5490_s29 + $0xc0] sm:$0xff] %v3811_v37  ;;  %3909 = vst [vmem:[%s5490_s29 + $0xd0] sm:$0xff] %v3813_v58  ;;  %v3815_v0 = vadd.f32 %v3396_v62, %v2291_v60  ;;  %v3817_v17 = vadd.f32 %v3702_v16, %v2293_v51  ;;  %v3398_v11 = vpop.f32.mrb[63].mxu0  ;;  %v3704_v6 = vpop.f32.mrb[63].mxu1  ;;  %v2311_v37 = vld [vmem:[%s5490_s29 + $0x180] sm:$0xff]  ;;  %v2313_v58 = vld [vmem:[%s5490_s29 + $0x190] sm:$0xff] }
 0x2e5   : > { %3908 = vst [vmem:[%s5490_s29 + $0xc8] sm:$0xff] %v3812_v52  ;;  %3910 = vst [vmem:[%s5490_s29 + $0xd8] sm:$0xff] %v3814_v57  ;;  %v3816_v43 = vadd.f32 %v3398_v11, %v2292_v56  ;;  %v3818_v33 = vadd.f32 %v3704_v6, %v2294_v27  ;;  %v2315_v52 = vld [vmem:[%s5490_s29 + $0x1a0] sm:$0xff]  ;;  %v2317_v57 = vld [vmem:[%s5490_s29 + $0x1b0] sm:$0xff] }
 0x2e6   : > { %3911 = vst [vmem:[%s5490_s29 + $0xe0] sm:$0xff] %v3815_v0  ;;  %3913 = vst [vmem:[%s5490_s29 + $0xf0] sm:$0xff] %v3817_v17  ;;  %v2316_v11 = vld [vmem:[%s5490_s29 + $0x1a8] sm:$0xff]  ;;  %v2318_v6 = vld [vmem:[%s5490_s29 + $0x1b8] sm:$0xff] }
 0x2e7   : > { %3912 = vst [vmem:[%s5490_s29 + $0xe8] sm:$0xff] %v3816_v43  ;;  %3914 = vst [vmem:[%s5490_s29 + $0xf8] sm:$0xff] %v3818_v33 }
 0x2e9   : > { %v3402_v22 = vpop.f32.mrb[64].mxu0  ;;  %v3708_v3 = vpop.f32.mrb[64].mxu1 }
 0x2ea   : > { %v3819_v5 = vadd.f32 %v3402_v22, %v2295_v31  ;;  %v3821_v12 = vadd.f32 %v3708_v3, %v2297_v7  ;;  %v3404_v39 = vpop.f32.mrb[65].mxu0  ;;  %v3710_v25 = vpop.f32.mrb[65].mxu1 }
 0x2eb   : > { %v3820_v46 = vadd.f32 %v3404_v39, %v2296_v42  ;;  %v3822_v54 = vadd.f32 %v3710_v25, %v2298_v41  ;;  %v3406_v18 = vpop.f32.mrb[66].mxu0  ;;  %v3712_v19 = vpop.f32.mrb[66].mxu1  ;;  %v2320_v39 = vld [vmem:[%s5490_s29 + $0x1c8] sm:$0xff]  ;;  %v2322_v25 = vld [vmem:[%s5490_s29 + $0x1d8] sm:$0xff] }
 0x2ec   : > { %3915 = vst [vmem:[%s5490_s29 + $0x100] sm:$0xff] %v3819_v5  ;;  %3917 = vst [vmem:[%s5490_s29 + $0x110] sm:$0xff] %v3821_v12  ;;  %v3823_v45 = vadd.f32 %v3406_v18, %v2299_v59  ;;  %v3825_v23 = vadd.f32 %v3712_v19, %v2301_v38  ;;  %v3408_v20 = vpop.f32.mrb[67].mxu0  ;;  %v3714_v13 = vpop.f32.mrb[67].mxu1  ;;  %v2319_v5 = vld [vmem:[%s5490_s29 + $0x1c0] sm:$0xff]  ;;  %v2321_v12 = vld [vmem:[%s5490_s29 + $0x1d0] sm:$0xff] }
 0x2ed   : > { %3916 = vst [vmem:[%s5490_s29 + $0x108] sm:$0xff] %v3820_v46  ;;  %3918 = vst [vmem:[%s5490_s29 + $0x118] sm:$0xff] %v3822_v54  ;;  %v3824_v21 = vadd.f32 %v3408_v20, %v2300_v61  ;;  %v3826_v9 = vadd.f32 %v3714_v13, %v2302_v53  ;;  %v2323_v46 = vld [vmem:[%s5490_s29 + $0x1e0] sm:$0xff]  ;;  %v2325_v54 = vld [vmem:[%s5490_s29 + $0x1f0] sm:$0xff] }
 0x2ee   : > { %3919 = vst [vmem:[%s5490_s29 + $0x120] sm:$0xff] %v3823_v45  ;;  %3921 = vst [vmem:[%s5490_s29 + $0x130] sm:$0xff] %v3825_v23  ;;  %v2324_v20 = vld [vmem:[%s5490_s29 + $0x1e8] sm:$0xff]  ;;  %v2326_v13 = vld [vmem:[%s5490_s29 + $0x1f8] sm:$0xff] }
 0x2ef   : > { %3920 = vst [vmem:[%s5490_s29 + $0x128] sm:$0xff] %v3824_v21  ;;  %3922 = vst [vmem:[%s5490_s29 + $0x138] sm:$0xff] %v3826_v9 }
 0x2f1   : > { %v3412_v49 = vpop.f32.mrb[68].mxu0  ;;  %v3718_v30 = vpop.f32.mrb[68].mxu1 }
 0x2f2   : > { %v3827_v40 = vadd.f32 %v3412_v49, %v2303_v24  ;;  %v3829_v8 = vadd.f32 %v3718_v30, %v2305_v35  ;;  %v3414_v32 = vpop.f32.mrb[69].mxu0  ;;  %v3720_v36 = vpop.f32.mrb[69].mxu1 }
 0x2f3   : > { %v3828_v10 = vadd.f32 %v3414_v32, %v2304_v47  ;;  %v3830_v2 = vadd.f32 %v3720_v36, %v2306_v15  ;;  %v3416_v50 = vpop.f32.mrb[70].mxu0  ;;  %v3722_v29 = vpop.f32.mrb[70].mxu1  ;;  %v2328_v32 = vld [vmem:[%s5490_s29 + $0x208] sm:$0xff]  ;;  %v2330_v36 = vld [vmem:[%s5490_s29 + $0x218] sm:$0xff] }
 0x2f4   : > { %3923 = vst [vmem:[%s5490_s29 + $0x140] sm:$0xff] %v3827_v40  ;;  %3925 = vst [vmem:[%s5490_s29 + $0x150] sm:$0xff] %v3829_v8  ;;  %v3831_v26 = vadd.f32 %v3416_v50, %v2307_v63  ;;  %v3833_v55 = vadd.f32 %v3722_v29, %v2309_v4  ;;  %v3418_v48 = vpop.f32.mrb[71].mxu0  ;;  %v3724_v1 = vpop.f32.mrb[71].mxu1  ;;  %v2327_v40 = vld [vmem:[%s5490_s29 + $0x200] sm:$0xff]  ;;  %v2329_v8 = vld [vmem:[%s5490_s29 + $0x210] sm:$0xff] }
 0x2f5   : > { %3924 = vst [vmem:[%s5490_s29 + $0x148] sm:$0xff] %v3828_v10  ;;  %3926 = vst [vmem:[%s5490_s29 + $0x158] sm:$0xff] %v3830_v2  ;;  %v3832_v60 = vadd.f32 %v3418_v48, %v2308_v14  ;;  %v3834_v51 = vadd.f32 %v3724_v1, %v2310_v44  ;;  %v2331_v10 = vld [vmem:[%s5490_s29 + $0x220] sm:$0xff]  ;;  %v2333_v2 = vld [vmem:[%s5490_s29 + $0x230] sm:$0xff] }
 0x2f6   : > { %3927 = vst [vmem:[%s5490_s29 + $0x160] sm:$0xff] %v3831_v26  ;;  %3929 = vst [vmem:[%s5490_s29 + $0x170] sm:$0xff] %v3833_v55  ;;  %v2332_v48 = vld [vmem:[%s5490_s29 + $0x228] sm:$0xff]  ;;  %v2334_v1 = vld [vmem:[%s5490_s29 + $0x238] sm:$0xff] }
 0x2f7   : > { %3928 = vst [vmem:[%s5490_s29 + $0x168] sm:$0xff] %v3832_v60  ;;  %3930 = vst [vmem:[%s5490_s29 + $0x178] sm:$0xff] %v3834_v51 }
 0x2f9   : > { %v3422_v56 = vpop.f32.mrb[72].mxu0  ;;  %v3728_v27 = vpop.f32.mrb[72].mxu1 }
 0x2fa   : > { %v3835_v62 = vadd.f32 %v3422_v56, %v2311_v37  ;;  %v3837_v16 = vadd.f32 %v3728_v27, %v2313_v58  ;;  %v3424_v0 = vpop.f32.mrb[73].mxu0  ;;  %v3730_v17 = vpop.f32.mrb[73].mxu1 }
 0x2fb   : > { %v3836_v43 = vadd.f32 %v3424_v0, %v2312_v34  ;;  %v3838_v33 = vadd.f32 %v3730_v17, %v2314_v28  ;;  %v3426_v31 = vpop.f32.mrb[74].mxu0  ;;  %v3732_v7 = vpop.f32.mrb[74].mxu1  ;;  %v2336_v0 = vld [vmem:[%s5490_s29 + $0x248] sm:$0xff]  ;;  %v2338_v17 = vld [vmem:[%s5490_s29 + $0x258] sm:$0xff] }
 0x2fc   : > { %3931 = vst [vmem:[%s5490_s29 + $0x180] sm:$0xff] %v3835_v62  ;;  %3933 = vst [vmem:[%s5490_s29 + $0x190] sm:$0xff] %v3837_v16  ;;  %v3839_v42 = vadd.f32 %v3426_v31, %v2315_v52  ;;  %v3841_v41 = vadd.f32 %v3732_v7, %v2317_v57  ;;  %v3428_v22 = vpop.f32.mrb[75].mxu0  ;;  %v3734_v3 = vpop.f32.mrb[75].mxu1  ;;  %v2335_v62 = vld [vmem:[%s5490_s29 + $0x240] sm:$0xff]  ;;  %v2337_v16 = vld [vmem:[%s5490_s29 + $0x250] sm:$0xff] }
 0x2fd   : > { %3932 = vst [vmem:[%s5490_s29 + $0x188] sm:$0xff] %v3836_v43  ;;  %3934 = vst [vmem:[%s5490_s29 + $0x198] sm:$0xff] %v3838_v33  ;;  %v3840_v59 = vadd.f32 %v3428_v22, %v2316_v11  ;;  %v3842_v38 = vadd.f32 %v3734_v3, %v2318_v6  ;;  %v2339_v43 = vld [vmem:[%s5490_s29 + $0x260] sm:$0xff]  ;;  %v2341_v33 = vld [vmem:[%s5490_s29 + $0x270] sm:$0xff] }
 0x2fe   : > { %3935 = vst [vmem:[%s5490_s29 + $0x1a0] sm:$0xff] %v3839_v42  ;;  %3937 = vst [vmem:[%s5490_s29 + $0x1b0] sm:$0xff] %v3841_v41  ;;  %v2340_v22 = vld [vmem:[%s5490_s29 + $0x268] sm:$0xff]  ;;  %v2342_v3 = vld [vmem:[%s5490_s29 + $0x278] sm:$0xff] }
 0x2ff   : > { %3936 = vst [vmem:[%s5490_s29 + $0x1a8] sm:$0xff] %v3840_v59  ;;  %3938 = vst [vmem:[%s5490_s29 + $0x1b8] sm:$0xff] %v3842_v38 }
 0x301   : > { %v3432_v61 = vpop.f32.mrb[76].mxu0  ;;  %v3738_v53 = vpop.f32.mrb[76].mxu1 }
 0x302   : > { %v3843_v18 = vadd.f32 %v3432_v61, %v2319_v5  ;;  %v3845_v19 = vadd.f32 %v3738_v53, %v2321_v12  ;;  %v3434_v45 = vpop.f32.mrb[77].mxu0  ;;  %v3740_v23 = vpop.f32.mrb[77].mxu1 }
 0x303   : > { %v3844_v21 = vadd.f32 %v3434_v45, %v2320_v39  ;;  %v3846_v9 = vadd.f32 %v3740_v23, %v2322_v25  ;;  %v3436_v24 = vpop.f32.mrb[78].mxu0  ;;  %v3742_v35 = vpop.f32.mrb[78].mxu1  ;;  %v2344_v45 = vld [vmem:[%s5490_s29 + $0x288] sm:$0xff]  ;;  %v2346_v23 = vld [vmem:[%s5490_s29 + $0x298] sm:$0xff] }
 0x304   : > { %3939 = vst [vmem:[%s5490_s29 + $0x1c0] sm:$0xff] %v3843_v18  ;;  %3941 = vst [vmem:[%s5490_s29 + $0x1d0] sm:$0xff] %v3845_v19  ;;  %v3847_v47 = vadd.f32 %v3436_v24, %v2323_v46  ;;  %v3849_v15 = vadd.f32 %v3742_v35, %v2325_v54  ;;  %v3438_v49 = vpop.f32.mrb[79].mxu0  ;;  %v3744_v30 = vpop.f32.mrb[79].mxu1  ;;  %v2343_v18 = vld [vmem:[%s5490_s29 + $0x280] sm:$0xff]  ;;  %v2345_v19 = vld [vmem:[%s5490_s29 + $0x290] sm:$0xff] }
 0x305   : > { %3940 = vst [vmem:[%s5490_s29 + $0x1c8] sm:$0xff] %v3844_v21  ;;  %3942 = vst [vmem:[%s5490_s29 + $0x1d8] sm:$0xff] %v3846_v9  ;;  %v3848_v63 = vadd.f32 %v3438_v49, %v2324_v20  ;;  %v3850_v4 = vadd.f32 %v3744_v30, %v2326_v13  ;;  %v2347_v21 = vld [vmem:[%s5490_s29 + $0x2a0] sm:$0xff]  ;;  %v2349_v9 = vld [vmem:[%s5490_s29 + $0x2b0] sm:$0xff] }
 0x306   : > { %3943 = vst [vmem:[%s5490_s29 + $0x1e0] sm:$0xff] %v3847_v47  ;;  %3945 = vst [vmem:[%s5490_s29 + $0x1f0] sm:$0xff] %v3849_v15  ;;  %v2348_v49 = vld [vmem:[%s5490_s29 + $0x2a8] sm:$0xff]  ;;  %v2350_v30 = vld [vmem:[%s5490_s29 + $0x2b8] sm:$0xff] }
 0x307   : > { %3944 = vst [vmem:[%s5490_s29 + $0x1e8] sm:$0xff] %v3848_v63  ;;  %3946 = vst [vmem:[%s5490_s29 + $0x1f8] sm:$0xff] %v3850_v4 }
 0x309   : > { %v3442_v14 = vpop.f32.mrb[80].mxu0  ;;  %v3748_v44 = vpop.f32.mrb[80].mxu1 }
 0x30a   : > { %v3851_v50 = vadd.f32 %v3442_v14, %v2327_v40  ;;  %v3853_v29 = vadd.f32 %v3748_v44, %v2329_v8  ;;  %v3444_v26 = vpop.f32.mrb[81].mxu0  ;;  %v3750_v55 = vpop.f32.mrb[81].mxu1 }
 0x30b   : > { %v3852_v60 = vadd.f32 %v3444_v26, %v2328_v32  ;;  %v3854_v51 = vadd.f32 %v3750_v55, %v2330_v36  ;;  %v3446_v37 = vpop.f32.mrb[82].mxu0  ;;  %v3752_v58 = vpop.f32.mrb[82].mxu1  ;;  %v2352_v26 = vld [vmem:[%s5490_s29 + $0x2c8] sm:$0xff]  ;;  %v2354_v55 = vld [vmem:[%s5490_s29 + $0x2d8] sm:$0xff] }
 0x30c   : > { %3947 = vst [vmem:[%s5490_s29 + $0x200] sm:$0xff] %v3851_v50  ;;  %3949 = vst [vmem:[%s5490_s29 + $0x210] sm:$0xff] %v3853_v29  ;;  %v3855_v34 = vadd.f32 %v3446_v37, %v2331_v10  ;;  %v3857_v28 = vadd.f32 %v3752_v58, %v2333_v2  ;;  %v3448_v56 = vpop.f32.mrb[83].mxu0  ;;  %v3754_v27 = vpop.f32.mrb[83].mxu1  ;;  %v2351_v50 = vld [vmem:[%s5490_s29 + $0x2c0] sm:$0xff]  ;;  %v2353_v29 = vld [vmem:[%s5490_s29 + $0x2d0] sm:$0xff] }
 0x30d   : > { %3948 = vst [vmem:[%s5490_s29 + $0x208] sm:$0xff] %v3852_v60  ;;  %3950 = vst [vmem:[%s5490_s29 + $0x218] sm:$0xff] %v3854_v51  ;;  %v3856_v52 = vadd.f32 %v3448_v56, %v2332_v48  ;;  %v3858_v57 = vadd.f32 %v3754_v27, %v2334_v1  ;;  %v2355_v60 = vld [vmem:[%s5490_s29 + $0x2e0] sm:$0xff]  ;;  %v2357_v51 = vld [vmem:[%s5490_s29 + $0x2f0] sm:$0xff] }
 0x30e   : > { %3951 = vst [vmem:[%s5490_s29 + $0x220] sm:$0xff] %v3855_v34  ;;  %3953 = vst [vmem:[%s5490_s29 + $0x230] sm:$0xff] %v3857_v28  ;;  %v2356_v56 = vld [vmem:[%s5490_s29 + $0x2e8] sm:$0xff]  ;;  %v2358_v27 = vld [vmem:[%s5490_s29 + $0x2f8] sm:$0xff] }
 0x30f   : > { %3952 = vst [vmem:[%s5490_s29 + $0x228] sm:$0xff] %v3856_v52  ;;  %3954 = vst [vmem:[%s5490_s29 + $0x238] sm:$0xff] %v3858_v57 }
 0x311   : > { %v3452_v11 = vpop.f32.mrb[84].mxu0  ;;  %v3758_v6 = vpop.f32.mrb[84].mxu1 }
 0x312   : > { %v3859_v31 = vadd.f32 %v3452_v11, %v2335_v62  ;;  %v3861_v7 = vadd.f32 %v3758_v6, %v2337_v16  ;;  %v3454_v42 = vpop.f32.mrb[85].mxu0  ;;  %v3760_v41 = vpop.f32.mrb[85].mxu1 }
 0x313   : > { %v3860_v59 = vadd.f32 %v3454_v42, %v2336_v0  ;;  %v3862_v38 = vadd.f32 %v3760_v41, %v2338_v17  ;;  %v3456_v5 = vpop.f32.mrb[86].mxu0  ;;  %v3762_v12 = vpop.f32.mrb[86].mxu1 }
 0x314   : > { %3955 = vst [vmem:[%s5490_s29 + $0x240] sm:$0xff] %v3859_v31  ;;  %3957 = vst [vmem:[%s5490_s29 + $0x250] sm:$0xff] %v3861_v7  ;;  %v3863_v39 = vadd.f32 %v3456_v5, %v2339_v43  ;;  %v3865_v25 = vadd.f32 %v3762_v12, %v2341_v33  ;;  %v3458_v61 = vpop.f32.mrb[87].mxu0  ;;  %v3764_v53 = vpop.f32.mrb[87].mxu1 }
 0x315   : > { %3956 = vst [vmem:[%s5490_s29 + $0x248] sm:$0xff] %v3860_v59  ;;  %3958 = vst [vmem:[%s5490_s29 + $0x258] sm:$0xff] %v3862_v38  ;;  %v3864_v46 = vadd.f32 %v3458_v61, %v2340_v22  ;;  %v3866_v54 = vadd.f32 %v3764_v53, %v2342_v3 }
 0x316   : > { %3959 = vst [vmem:[%s5490_s29 + $0x260] sm:$0xff] %v3863_v39  ;;  %3961 = vst [vmem:[%s5490_s29 + $0x270] sm:$0xff] %v3865_v25 }
 0x317   : > { %3960 = vst [vmem:[%s5490_s29 + $0x268] sm:$0xff] %v3864_v46  ;;  %3962 = vst [vmem:[%s5490_s29 + $0x278] sm:$0xff] %v3866_v54 }
 0x319   : > { %v3462_v20 = vpop.f32.mrb[88].mxu0  ;;  %v3768_v13 = vpop.f32.mrb[88].mxu1 }
 0x31a   : > { %v3867_v24 = vadd.f32 %v3462_v20, %v2343_v18  ;;  %v3869_v35 = vadd.f32 %v3768_v13, %v2345_v19  ;;  %v3464_v47 = vpop.f32.mrb[89].mxu0  ;;  %v3770_v15 = vpop.f32.mrb[89].mxu1 }
 0x31b   : > { %v3868_v63 = vadd.f32 %v3464_v47, %v2344_v45  ;;  %v3870_v4 = vadd.f32 %v3770_v15, %v2346_v23  ;;  %v3466_v40 = vpop.f32.mrb[90].mxu0  ;;  %v3772_v8 = vpop.f32.mrb[90].mxu1 }
 0x31c   : > { %3963 = vst [vmem:[%s5490_s29 + $0x280] sm:$0xff] %v3867_v24  ;;  %3965 = vst [vmem:[%s5490_s29 + $0x290] sm:$0xff] %v3869_v35  ;;  %v3871_v32 = vadd.f32 %v3466_v40, %v2347_v21  ;;  %v3873_v36 = vadd.f32 %v3772_v8, %v2349_v9  ;;  %v3468_v14 = vpop.f32.mrb[91].mxu0  ;;  %v3774_v44 = vpop.f32.mrb[91].mxu1 }
 0x31d   : > { %3964 = vst [vmem:[%s5490_s29 + $0x288] sm:$0xff] %v3868_v63  ;;  %3966 = vst [vmem:[%s5490_s29 + $0x298] sm:$0xff] %v3870_v4  ;;  %v3872_v10 = vadd.f32 %v3468_v14, %v2348_v49  ;;  %v3874_v2 = vadd.f32 %v3774_v44, %v2350_v30 }
 0x31e   : > { %3967 = vst [vmem:[%s5490_s29 + $0x2a0] sm:$0xff] %v3871_v32  ;;  %3969 = vst [vmem:[%s5490_s29 + $0x2b0] sm:$0xff] %v3873_v36 }
 0x31f   : > { %3968 = vst [vmem:[%s5490_s29 + $0x2a8] sm:$0xff] %v3872_v10  ;;  %3970 = vst [vmem:[%s5490_s29 + $0x2b8] sm:$0xff] %v3874_v2 }
 0x321   : > { %v3472_v48 = vpop.f32.mrb[92].mxu0  ;;  %v3778_v1 = vpop.f32.mrb[92].mxu1 }
 0x322   : > { %v3875_v37 = vadd.f32 %v3472_v48, %v2351_v50  ;;  %v3877_v58 = vadd.f32 %v3778_v1, %v2353_v29  ;;  %v3474_v34 = vpop.f32.mrb[93].mxu0  ;;  %v3780_v28 = vpop.f32.mrb[93].mxu1 }
 0x323   : > { %v3876_v52 = vadd.f32 %v3474_v34, %v2352_v26  ;;  %v3878_v57 = vadd.f32 %v3780_v28, %v2354_v55  ;;  %v3476_v62 = vpop.f32.mrb[94].mxu0  ;;  %v3782_v16 = vpop.f32.mrb[94].mxu1 }
 0x324   : > { %3971 = vst [vmem:[%s5490_s29 + $0x2c0] sm:$0xff] %v3875_v37  ;;  %3973 = vst [vmem:[%s5490_s29 + $0x2d0] sm:$0xff] %v3877_v58  ;;  %v3879_v0 = vadd.f32 %v3476_v62, %v2355_v60  ;;  %v3881_v17 = vadd.f32 %v3782_v16, %v2357_v51  ;;  %v3478_v11 = vpop.f32.mrb[95].mxu0  ;;  %v3784_v6 = vpop.f32.mrb[95].mxu1 }
 0x325   : > { %3972 = vst [vmem:[%s5490_s29 + $0x2c8] sm:$0xff] %v3876_v52  ;;  %3974 = vst [vmem:[%s5490_s29 + $0x2d8] sm:$0xff] %v3878_v57  ;;  %v3880_v43 = vadd.f32 %v3478_v11, %v2356_v56  ;;  %v3882_v33 = vadd.f32 %v3784_v6, %v2358_v27 }
 0x326   : > { %3975 = vst [vmem:[%s5490_s29 + $0x2e0] sm:$0xff] %v3879_v0  ;;  %3977 = vst [vmem:[%s5490_s29 + $0x2f0] sm:$0xff] %v3881_v17 }
 0x327   : > { %3976 = vst [vmem:[%s5490_s29 + $0x2e8] sm:$0xff] %v3880_v43  ;;  %3978 = vst [vmem:[%s5490_s29 + $0x2f8] sm:$0xff] %v3882_v33 }
 0x328   : > { %5125 = shalt.err (!%p5122_p5)
}
 0x329   : > { %s5126_s25 = scalar_lea.hbm %s7085_s10, 12288  ;;  %s5130_s16 = scalar_lea.hbm %s7148_s5, 24576 }
 0x32a   : > { %p5127_p6 = scmp.ne.s32.totalorder %s7085_s10, %s5126_s25  ;;  %p5131_p10 = scmp.lt.u32.totalorder %s7085_s10, %s7148_s5 }
 0x32b   : > { %p5132_p11 = scmp.lt.u32.totalorder %s5130_s16, %s5126_s25  ;;  %p5134_p13 = scmp.lt.u32.totalorder %s5126_s25, %s7085_s10 }
 0x32c   : > { %p5128_p7 = pnand %p5127_p6, %p5265_p4 }
 0x32d   : > { %p5133_p12 = por %p5132_p11, %p5131_p10 }
 0x32e   : > { %p5129_p9 = pneg %p5128_p7 }
 0x32f   : > { %p5135_p0 = por %p5134_p13, %p5133_p12 }
 0x331   : > { %p5136_p1 = pnand %p5135_p0, %p5129_p9 }
 0x333   : > { %5139 = shalt.err (!%p5136_p1)
}
 0x334   : > { %s5193_s27 = smov 512   ;;  %s5194_s21 = smov 32  }
 0x335   : > { %4669 = dma.vmem_to_hbm [thread:$0]  (%p5265_p4), %s7087_s8, 12288, %s7085_s10, %s7097_s11, %s5193_s27, %s5193_s27, %s5194_s21  }
 0x336 PF: > { %p4675_p2 = scmp.ge.s32.totalorder %s5190_s23, 2  ;;  %s4009_s9 = sand.u32 1, %s5170_s18  }
 0x337   : > { %s4010_s12 = scalar_lea.sflag [#allocation4], %s4009_s9 }
 0x338   : > { %p4672_p3 = pnand %p4675_p2, %p5272_p8 }
 0x33a   : > { %5165 = dma.done.wait (!%p4672_p3), %s4010_s12, 12288  }
 0x33b   : > { %5167 = vsyncadd (!%p4672_p3), %s4010_s12, 4294955008  ;;  %s18_s23 = sadd.s32 1, %s5190_s23   ;;  %s7169_s18 = smov %s5174_s19 }
 0x33c   : > { %p15_p5 = scmp.ge.s32.totalorder %s18_s23, 4   ;;  %s7170_s19 = smov %s5178_s20 }
 0x33d   : > { %s7171_s20 = smov %s5278_s6  ;;  %s7172_s21 = smov %s5186_s22 }
 0x33e   : > { %s7173_s22 = smov %s7175_s26  ;;  %17 = sbr.rel (!%p15_p5) target bundleno = 4 (0x4), region = 88 }
 0x345   :  { %4015 = vsyncpa [#allocation4], 1 }
 0x346   :  { %4017 = vsyncpa [#allocation4 + $0x1], 1 }

</bundles_post_ra>
